<compile_context>
chip_gen: v7x
topology: tpu7x:2x2x1
jax: 0.10.0
libtpu: 0.0.40
codegen_flags: <defaults>
</compile_context>

<pallas_src>
import jax
import jax.numpy as jnp
from jax.experimental import pallas as pl
from jax.experimental.pallas import tpu as pltpu

BN_EPS = 1e-5


def mlp_kernel(x_ref, w1_ref, b1_ref, g_ref, beta_ref,
               w2q_ref, s2_ref, b2_ref, w3_ref, b3_ref,
               o_ref, acc_ref):
    i = pl.program_id(0)

    # ---- Linear(in_len -> chunk of 2048): bf16 MXU, f32 accumulate ----
    h1 = jnp.dot(x_ref[...], w1_ref[...], preferred_element_type=jnp.float32)
    h1 = h1 + b1_ref[...]

    # ---- BatchNorm1d (training-mode batch stats) + affine, exact per chunk ----
    mean = jnp.mean(h1, axis=0, keepdims=True)
    diff = h1 - mean
    var = jnp.mean(diff * diff, axis=0, keepdims=True)          # biased variance
    h1 = diff * (jax.lax.rsqrt(var + BN_EPS) * g_ref[...]) + beta_ref[...]

    # ---- ReLU ----
    h1 = jnp.maximum(h1, 0.0)

    # ---- Linear(2048 -> 1024): this K-chunk's partial product ----
    # int8 weights -> bf16 cast (exact for |q| <= 127), bf16 MXU, f32 accumulate.
    partial = jnp.dot(h1.astype(jnp.bfloat16),
                      w2q_ref[...].astype(jnp.bfloat16),
                      preferred_element_type=jnp.float32)

    @pl.when(i == 0)
    def _():
        acc_ref[...] = partial           # write directly; no zero+add pass

    @pl.when(i > 0)
    def _():
        acc_ref[...] += partial

    # ---- Finalize on the last chunk: dequant scale + bias + ReLU + Linear ----
    @pl.when(i == pl.num_programs(0) - 1)
    def _():
        h2 = jnp.maximum(acc_ref[...] * s2_ref[...] + b2_ref[...], 0.0)
        o_ref[...] = jnp.dot(h2.astype(jnp.bfloat16), w3_ref[...],
                             preferred_element_type=jnp.float32) + b3_ref[...]


def prepare_params(params):
    """One-time conversion of f32 module params into the kernel's streaming
    formats.  Call once (outside the hot loop) and reuse the result."""
    (w1, b1, g, beta, w2, b2, w3, b3) = params
    hidden2 = w2.shape[1]
    out_len = w3.shape[1]
    out_pad = max(128, ((out_len + 127) // 128) * 128)

    # bf16 weights: half the HBM stream, native bf16 MXU path.
    w1b = w1.astype(jnp.bfloat16)

    # Per-output-column symmetric int8 quantization of w2 (dominant stream).
    s2 = jnp.max(jnp.abs(w2), axis=0, keepdims=True) / 127.0
    s2 = jnp.where(s2 > 0, s2, 1.0)
    w2q = jnp.clip(jnp.round(w2 / s2), -127, 127).astype(jnp.int8)

    # Pad the final layer to a full 128-lane output (unmasked vst); slice after.
    w3p = jnp.zeros((hidden2, out_pad), jnp.float32).at[:, :out_len].set(w3)
    w3p = w3p.astype(jnp.bfloat16)
    b3p = jnp.zeros((1, out_pad), jnp.float32).at[:, :out_len].set(b3)

    return (w1b, b1, g, beta, w2q, s2, b2, w3p, b3p, out_len)


def my_mlp_forward(x, prepared, chunk=1024):
    (w1b, b1, g, beta, w2q, s2, b2, w3p, b3p, out_len) = prepared
    B, in_len = x.shape
    hidden1 = w1b.shape[1]     # 2048
    hidden2 = w2q.shape[1]     # 1024
    out_pad = w3p.shape[1]

    assert hidden1 % chunk == 0, "hidden dim must be divisible by chunk"
    n_chunks = hidden1 // chunk

    # Cast activations once per call (weights were converted in prepare_params).
    x_bf16 = x.astype(jnp.bfloat16)

    out = pl.pallas_call(
        mlp_kernel,
        out_shape=jax.ShapeDtypeStruct((B, out_pad), jnp.float32),
        grid_spec=pltpu.PrefetchScalarGridSpec(
            num_scalar_prefetch=0,
            grid=(n_chunks,),
            in_specs=[
                pl.BlockSpec((B, in_len), lambda i: (0, 0)),         # x (resident)
                pl.BlockSpec((in_len, chunk), lambda i: (0, i)),     # w1 N-chunk
                pl.BlockSpec((1, chunk), lambda i: (0, i)),          # b1 chunk
                pl.BlockSpec((1, chunk), lambda i: (0, i)),          # bn gamma chunk
                pl.BlockSpec((1, chunk), lambda i: (0, i)),          # bn beta chunk
                pl.BlockSpec((chunk, hidden2), lambda i: (i, 0)),    # w2 int8 K-chunk
                pl.BlockSpec((1, hidden2), lambda i: (0, 0)),        # w2 column scales
                pl.BlockSpec((1, hidden2), lambda i: (0, 0)),        # b2
                pl.BlockSpec((hidden2, out_pad), lambda i: (0, 0)),  # w3 (padded)
                pl.BlockSpec((1, out_pad), lambda i: (0, 0)),        # b3 (padded)
            ],
            out_specs=pl.BlockSpec((B, out_pad), lambda i: (0, 0)),
            scratch_shapes=[pltpu.VMEM((B, hidden2), jnp.float32)],
        ),
        compiler_params=pltpu.CompilerParams(
            dimension_semantics=("arbitrary",),   # hidden1 chunks form a reduction
            vmem_limit_bytes=32 << 20,
        ),
    )(x_bf16, w1b, b1, g, beta, w2q, s2, b2, w3p, b3p)

    return out[:, :out_len]


def init_params(key, in_len, out_len):
    """Deterministic PyTorch-style (uniform +/- 1/sqrt(fan_in)) init."""
    def linear(key, fan_in, fan_out):
        kw, kb = jax.random.split(key)
        bound = 1.0 / jnp.sqrt(jnp.float32(fan_in))
        w = jax.random.uniform(kw, (fan_in, fan_out), jnp.float32, -bound, bound)
        b = jax.random.uniform(kb, (1, fan_out), jnp.float32, -bound, bound)
        return w, b

    k1, k2, k3 = jax.random.split(key, 3)
    w1, b1 = linear(k1, in_len, 2048)
    w2, b2 = linear(k2, 2048, 1024)
    w3, b3 = linear(k3, 1024, out_len)
    g = jnp.ones((1, 2048), jnp.float32)       # BatchNorm1d weight init
    beta = jnp.zeros((1, 2048), jnp.float32)   # BatchNorm1d bias init
    return (w1, b1, g, beta, w2, b2, w3, b3)


def _bn_relu(h, g, beta):
    mean = jnp.mean(h, axis=0, keepdims=True)
    var = jnp.mean((h - mean) ** 2, axis=0, keepdims=True)
    return jnp.maximum((h - mean) * jax.lax.rsqrt(var + BN_EPS) * g + beta, 0.0)


def reference_forward_f32(x, params):
    """Pure-f32 JAX reference (exact module semantics)."""
    (w1, b1, g, beta, w2, b2, w3, b3) = params
    h1 = _bn_relu(x @ w1 + b1, g, beta)
    h2 = jnp.maximum(h1 @ w2 + b2, 0.0)
    return h2 @ w3 + b3


def reference_forward_matched(x, params):
    """Reference with the same bf16/int8 weight formats and f32 accumulation
    as the kernel (isolates layout/pipelining bugs from precision effects)."""
    (w1, b1, g, beta, w2, b2, w3, b3) = params
    w1b = w1.astype(jnp.bfloat16)
    s2 = jnp.max(jnp.abs(w2), axis=0, keepdims=True) / 127.0
    s2 = jnp.where(s2 > 0, s2, 1.0)
    w2q = jnp.clip(jnp.round(w2 / s2), -127, 127).astype(jnp.int8)
    w3b = w3.astype(jnp.bfloat16)

    h1 = jnp.dot(x.astype(jnp.bfloat16), w1b,
                 preferred_element_type=jnp.float32) + b1
    h1 = _bn_relu(h1, g, beta)
    h2 = jnp.dot(h1.astype(jnp.bfloat16), w2q.astype(jnp.bfloat16),
                 preferred_element_type=jnp.float32) * s2 + b2
    h2 = jnp.maximum(h2, 0.0)
    return jnp.dot(h2.astype(jnp.bfloat16), w3b,
                   preferred_element_type=jnp.float32) + b3


if __name__ == "__main__":
    B, in_len, out_len = 8, 128, 24   # small in/out; hidden sizes fixed by module

    key = jax.random.PRNGKey(0)
    kx, kp = jax.random.split(key)
    x = jax.random.normal(kx, (B, in_len), dtype=jnp.float32)
    params = init_params(kp, in_len, out_len)

    # One-time weight conversion (bf16 / int8 + scales / padding), hoisted out
    # of the per-call path per the performance review.
    prepared = prepare_params(params)

    out = my_mlp_forward(x, prepared)
    out = jax.block_until_ready(out)
    assert out.shape == (B, out_len)

    # Primary check: same bf16/int8 weight formats + f32 accumulation as kernel.
    ref_m = reference_forward_matched(x, params)
    assert jnp.allclose(out, ref_m, atol=1e-2, rtol=1e-2), \
        "mismatch vs matched-precision reference"

    # Sanity check vs full-f32 module semantics (loose tol for bf16/int8 weights).
    ref_f32 = reference_forward_f32(x, params)
    assert jnp.allclose(out, ref_f32, atol=7e-2, rtol=7e-2), \
        "mismatch vs f32 reference"

    print("KERNEL_OK")
</pallas_src>

<mosaic_0001>
module attributes {stable_mosaic.version = 11 : i64} {
  func.func @mlp_kernel(%arg0: i32, %arg1: memref<8x128xbf16, #tpu.memory_space<vmem>>, %arg2: memref<128x1024xbf16, #tpu.memory_space<vmem>>, %arg3: memref<1x1024xf32, #tpu.memory_space<vmem>>, %arg4: memref<1x1024xf32, #tpu.memory_space<vmem>>, %arg5: memref<1x1024xf32, #tpu.memory_space<vmem>>, %arg6: memref<1024x1024xi8, #tpu.memory_space<vmem>>, %arg7: memref<1x1024xf32, #tpu.memory_space<vmem>>, %arg8: memref<1x1024xf32, #tpu.memory_space<vmem>>, %arg9: memref<1024x128xbf16, #tpu.memory_space<vmem>>, %arg10: memref<1x128xf32, #tpu.memory_space<vmem>>, %arg11: memref<8x128xf32, #tpu.memory_space<vmem>>, %arg12: memref<8x1024xf32, #tpu.memory_space<vmem>>) attributes {dimension_semantics = [#tpu.dimension_semantics<arbitrary>], iteration_bounds = array<i64: 2>, scalar_prefetch = 0 : i64, scratch_operands = 1 : i64, tpu.core_type = #tpu.core_type<tc>, window_params = [{pipeline_mode = #tpu.pipeline_mode<synchronous>, transform_indices = @transform_0, window_bounds = array<i64: 8, 128>}, {transform_indices = @transform_1, window_bounds = array<i64: 128, 1024>}, {transform_indices = @transform_2, window_bounds = array<i64: 1, 1024>}, {transform_indices = @transform_3, window_bounds = array<i64: 1, 1024>}, {transform_indices = @transform_4, window_bounds = array<i64: 1, 1024>}, {transform_indices = @transform_5, window_bounds = array<i64: 1024, 1024>}, {pipeline_mode = #tpu.pipeline_mode<synchronous>, transform_indices = @transform_6, window_bounds = array<i64: 1, 1024>}, {pipeline_mode = #tpu.pipeline_mode<synchronous>, transform_indices = @transform_7, window_bounds = array<i64: 1, 1024>}, {pipeline_mode = #tpu.pipeline_mode<synchronous>, transform_indices = @transform_8, window_bounds = array<i64: 1024, 128>}, {pipeline_mode = #tpu.pipeline_mode<synchronous>, transform_indices = @transform_9, window_bounds = array<i64: 1, 128>}, {pipeline_mode = #tpu.pipeline_mode<synchronous>, transform_indices = @transform_10, window_bounds = array<i64: 8, 128>}]} {
    %c0 = arith.constant 0 : index
    %c0_0 = arith.constant 0 : index
    %0 = vector.load %arg1[%c0, %c0_0] : memref<8x128xbf16, #tpu.memory_space<vmem>>, vector<8x128xbf16>
    %c0_1 = arith.constant 0 : index
    %c0_2 = arith.constant 0 : index
    %1 = vector.load %arg2[%c0_1, %c0_2] : memref<128x1024xbf16, #tpu.memory_space<vmem>>, vector<128x1024xbf16>
    %cst = arith.constant dense<0.000000e+00> : vector<8x1024xf32>
    %2 = tpu.matmul %0, %1, %cst {dimension_numbers = #tpu.dot_dimension_numbers<[1], [0], [0], [1], [0, 0, 1, 1], [], []>} : vector<8x128xbf16>, vector<128x1024xbf16>, vector<8x1024xf32> -> vector<8x1024xf32>
    %c0_3 = arith.constant 0 : index
    %c0_4 = arith.constant 0 : index
    %3 = vector.load %arg3[%c0_3, %c0_4] : memref<1x1024xf32, #tpu.memory_space<vmem>>, vector<1x1024xf32>
    %4 = vector.broadcast %3 : vector<1x1024xf32> to vector<8x1024xf32>
    %5 = arith.addf %2, %4 : vector<8x1024xf32>
    %cst_5 = arith.constant dense<0.000000e+00> : vector<1024xf32>
    %6 = vector.multi_reduction <add>, %5, %cst_5 [0] : vector<8x1024xf32> to vector<1024xf32>
    %7 = vector.shape_cast %6 : vector<1024xf32> to vector<1x1024xf32>
    %cst_6 = arith.constant 8.000000e+00 : f32
    %8 = vector.broadcast %cst_6 : f32 to vector<1x1024xf32>
    %9 = arith.divf %7, %8 : vector<1x1024xf32>
    %10 = vector.broadcast %9 : vector<1x1024xf32> to vector<8x1024xf32>
    %11 = arith.subf %5, %10 : vector<8x1024xf32>
    %12 = arith.mulf %11, %11 : vector<8x1024xf32>
    %cst_7 = arith.constant dense<0.000000e+00> : vector<1024xf32>
    %13 = vector.multi_reduction <add>, %12, %cst_7 [0] : vector<8x1024xf32> to vector<1024xf32>
    %14 = vector.shape_cast %13 : vector<1024xf32> to vector<1x1024xf32>
    %cst_8 = arith.constant 8.000000e+00 : f32
    %15 = vector.broadcast %cst_8 : f32 to vector<1x1024xf32>
    %16 = arith.divf %14, %15 : vector<1x1024xf32>
    %cst_9 = arith.constant 9.99999974E-6 : f32
    %17 = vector.broadcast %cst_9 : f32 to vector<1x1024xf32>
    %18 = arith.addf %16, %17 : vector<1x1024xf32>
    %19 = math.rsqrt %18 : vector<1x1024xf32>
    %c0_10 = arith.constant 0 : index
    %c0_11 = arith.constant 0 : index
    %20 = vector.load %arg4[%c0_10, %c0_11] : memref<1x1024xf32, #tpu.memory_space<vmem>>, vector<1x1024xf32>
    %21 = arith.mulf %19, %20 : vector<1x1024xf32>
    %22 = vector.broadcast %21 : vector<1x1024xf32> to vector<8x1024xf32>
    %23 = arith.mulf %11, %22 : vector<8x1024xf32>
    %c0_12 = arith.constant 0 : index
    %c0_13 = arith.constant 0 : index
    %24 = vector.load %arg5[%c0_12, %c0_13] : memref<1x1024xf32, #tpu.memory_space<vmem>>, vector<1x1024xf32>
    %25 = vector.broadcast %24 : vector<1x1024xf32> to vector<8x1024xf32>
    %26 = arith.addf %23, %25 : vector<8x1024xf32>
    %cst_14 = arith.constant 0.000000e+00 : f32
    %27 = vector.broadcast %cst_14 : f32 to vector<8x1024xf32>
    %28 = arith.maximumf %26, %27 : vector<8x1024xf32>
    %29 = arith.truncf %28 : vector<8x1024xf32> to vector<8x1024xbf16>
    %c0_15 = arith.constant 0 : index
    %c0_16 = arith.constant 0 : index
    %30 = vector.load %arg6[%c0_15, %c0_16] : memref<1024x1024xi8, #tpu.memory_space<vmem>>, vector<1024x1024xi8>
    %31 = arith.sitofp %30 : vector<1024x1024xi8> to vector<1024x1024xbf16>
    %cst_17 = arith.constant dense<0.000000e+00> : vector<8x1024xf32>
    %32 = tpu.matmul %29, %31, %cst_17 {dimension_numbers = #tpu.dot_dimension_numbers<[1], [0], [0], [1], [0, 0, 1, 1], [], []>} : vector<8x1024xbf16>, vector<1024x1024xbf16>, vector<8x1024xf32> -> vector<8x1024xf32>
    %c0_i32 = arith.constant 0 : i32
    %33 = arith.cmpi eq, %arg0, %c0_i32 : i32
    %34 = arith.extui %33 : i1 to i32
    %c0_i32_18 = arith.constant 0 : i32
    %35 = arith.cmpi ne, %34, %c0_i32_18 : i32
    scf.if %35 {
      %c0_22 = arith.constant 0 : index
      %c0_23 = arith.constant 0 : index
      %42 = vector.load %arg12[%c0_22, %c0_23] : memref<8x1024xf32, #tpu.memory_space<vmem>>, vector<8x1024xf32>
      tpu.vector_store %arg12[%c0_22, %c0_23], %32 {strides = array<i32>} : memref<8x1024xf32, #tpu.memory_space<vmem>>, vector<8x1024xf32>,
    } else {
    }
    %c0_i32_19 = arith.constant 0 : i32
    %36 = arith.cmpi sgt, %arg0, %c0_i32_19 : i32
    %37 = arith.extui %36 : i1 to i32
    %c0_i32_20 = arith.constant 0 : i32
    %38 = arith.cmpi ne, %37, %c0_i32_20 : i32
    scf.if %38 {
      %c0_22 = arith.constant 0 : index
      %c0_23 = arith.constant 0 : index
      %42 = vector.load %arg12[%c0_22, %c0_23] : memref<8x1024xf32, #tpu.memory_space<vmem>>, vector<8x1024xf32>
      %43 = arith.addf %42, %32 : vector<8x1024xf32>
      %c0_24 = arith.constant 0 : index
      %c0_25 = arith.constant 0 : index
      %44 = vector.load %arg12[%c0_24, %c0_25] : memref<8x1024xf32, #tpu.memory_space<vmem>>, vector<8x1024xf32>
      tpu.vector_store %arg12[%c0_24, %c0_25], %43 {strides = array<i32>} : memref<8x1024xf32, #tpu.memory_space<vmem>>, vector<8x1024xf32>,
    } else {
    }
    %c1_i32 = arith.constant 1 : i32
    %39 = arith.cmpi eq, %arg0, %c1_i32 : i32
    %40 = arith.extui %39 : i1 to i32
    %c0_i32_21 = arith.constant 0 : i32
    %41 = arith.cmpi ne, %40, %c0_i32_21 : i32
    scf.if %41 {
      %c0_22 = arith.constant 0 : index
      %c0_23 = arith.constant 0 : index
      %42 = vector.load %arg12[%c0_22, %c0_23] : memref<8x1024xf32, #tpu.memory_space<vmem>>, vector<8x1024xf32>
      %c0_24 = arith.constant 0 : index
      %c0_25 = arith.constant 0 : index
      %43 = vector.load %arg7[%c0_24, %c0_25] : memref<1x1024xf32, #tpu.memory_space<vmem>>, vector<1x1024xf32>
      %44 = vector.broadcast %43 : vector<1x1024xf32> to vector<8x1024xf32>
      %45 = arith.mulf %42, %44 : vector<8x1024xf32>
      %c0_26 = arith.constant 0 : index
      %c0_27 = arith.constant 0 : index
      %46 = vector.load %arg8[%c0_26, %c0_27] : memref<1x1024xf32, #tpu.memory_space<vmem>>, vector<1x1024xf32>
      %47 = vector.broadcast %46 : vector<1x1024xf32> to vector<8x1024xf32>
      %48 = arith.addf %45, %47 : vector<8x1024xf32>
      %cst_28 = arith.constant 0.000000e+00 : f32
      %49 = vector.broadcast %cst_28 : f32 to vector<8x1024xf32>
      %50 = arith.maximumf %48, %49 : vector<8x1024xf32>
      %51 = arith.truncf %50 : vector<8x1024xf32> to vector<8x1024xbf16>
      %c0_29 = arith.constant 0 : index
      %c0_30 = arith.constant 0 : index
      %52 = vector.load %arg9[%c0_29, %c0_30] : memref<1024x128xbf16, #tpu.memory_space<vmem>>, vector<1024x128xbf16>
      %cst_31 = arith.constant dense<0.000000e+00> : vector<8x128xf32>
      %53 = tpu.matmul %51, %52, %cst_31 {dimension_numbers = #tpu.dot_dimension_numbers<[1], [0], [0], [1], [0, 0, 1, 1], [], []>} : vector<8x1024xbf16>, vector<1024x128xbf16>, vector<8x128xf32> -> vector<8x128xf32>
      %c0_32 = arith.constant 0 : index
      %c0_33 = arith.constant 0 : index
      %54 = vector.load %arg10[%c0_32, %c0_33] : memref<1x128xf32, #tpu.memory_space<vmem>>, vector<1x128xf32>
      %55 = vector.broadcast %54 : vector<1x128xf32> to vector<8x128xf32>
      %56 = arith.addf %53, %55 : vector<8x128xf32>
      %c0_34 = arith.constant 0 : index
      %c0_35 = arith.constant 0 : index
      %57 = vector.load %arg11[%c0_34, %c0_35] : memref<8x128xf32, #tpu.memory_space<vmem>>, vector<8x128xf32>
      tpu.vector_store %arg11[%c0_34, %c0_35], %56 {strides = array<i32>} : memref<8x128xf32, #tpu.memory_space<vmem>>, vector<8x128xf32>,
    } else {
    }
    return
  }
  func.func @transform_0(%arg0: i32) -> (i32, i32) {
    %c0_i32 = arith.constant 0 : i32
    %c0_i32_0 = arith.constant 0 : i32
    %c0_i32_1 = arith.constant 0 : i32
    return %c0_i32, %c0_i32_0 : i32, i32
  }
  func.func @transform_1(%arg0: i32) -> (i32, i32) {
    %c0_i32 = arith.constant 0 : i32
    %c0_i32_0 = arith.constant 0 : i32
    return %c0_i32, %arg0 : i32, i32
  }
  func.func @transform_2(%arg0: i32) -> (i32, i32) {
    %c0_i32 = arith.constant 0 : i32
    %c0_i32_0 = arith.constant 0 : i32
    return %c0_i32, %arg0 : i32, i32
  }
  func.func @transform_3(%arg0: i32) -> (i32, i32) {
    %c0_i32 = arith.constant 0 : i32
    %c0_i32_0 = arith.constant 0 : i32
    return %c0_i32, %arg0 : i32, i32
  }
  func.func @transform_4(%arg0: i32) -> (i32, i32) {
    %c0_i32 = arith.constant 0 : i32
    %c0_i32_0 = arith.constant 0 : i32
    return %c0_i32, %arg0 : i32, i32
  }
  func.func @transform_5(%arg0: i32) -> (i32, i32) {
    %c0_i32 = arith.constant 0 : i32
    %c0_i32_0 = arith.constant 0 : i32
    return %arg0, %c0_i32 : i32, i32
  }
  func.func @transform_6(%arg0: i32) -> (i32, i32) {
    %c0_i32 = arith.constant 0 : i32
    %c0_i32_0 = arith.constant 0 : i32
    %c0_i32_1 = arith.constant 0 : i32
    return %c0_i32, %c0_i32_0 : i32, i32
  }
  func.func @transform_7(%arg0: i32) -> (i32, i32) {
    %c0_i32 = arith.constant 0 : i32
    %c0_i32_0 = arith.constant 0 : i32
    %c0_i32_1 = arith.constant 0 : i32
    return %c0_i32, %c0_i32_0 : i32, i32
  }
  func.func @transform_8(%arg0: i32) -> (i32, i32) {
    %c0_i32 = arith.constant 0 : i32
    %c0_i32_0 = arith.constant 0 : i32
    %c0_i32_1 = arith.constant 0 : i32
    return %c0_i32, %c0_i32_0 : i32, i32
  }
  func.func @transform_9(%arg0: i32) -> (i32, i32) {
    %c0_i32 = arith.constant 0 : i32
    %c0_i32_0 = arith.constant 0 : i32
    %c0_i32_1 = arith.constant 0 : i32
    return %c0_i32, %c0_i32_0 : i32, i32
  }
  func.func @transform_10(%arg0: i32) -> (i32, i32) {
    %c0_i32 = arith.constant 0 : i32
    %c0_i32_0 = arith.constant 0 : i32
    %c0_i32_1 = arith.constant 0 : i32
    return %c0_i32, %c0_i32_0 : i32, i32
  }
}

</mosaic_0001>

<bundles_post_ra>
// kernel: tpu_custom_call.1
= control target key start
LH: loop header
LB: loop body
LE: loop exit
PB: predicated region body
PF: predicated region fallthrough
CT: control target
= control target key end

     0   :  { %s5935_s0 = inlined_call_operand.hbm [shape: bf16[8,128], index: 0, kind: input, shape index: {}]   ;;  %s5936_s1 = inlined_call_operand.hbm [shape: bf16[128,2048], index: 1, kind: input, shape index: {}]   ;;  %s5937_s2 = inlined_call_operand.hbm [shape: f32[1,2048], index: 2, kind: input, shape index: {}]   ;;  %s5938_s3 = inlined_call_operand.hbm [shape: f32[1,2048], index: 3, kind: input, shape index: {}]   ;;  %s5939_s4 = inlined_call_operand.hbm [shape: f32[1,2048], index: 4, kind: input, shape index: {}]   ;;  %s5940_s5 = inlined_call_operand.hbm [shape: s8[2048,1024], index: 5, kind: input, shape index: {}]   ;;  %s5941_s6 = inlined_call_operand.hbm [shape: f32[1,1024], index: 6, kind: input, shape index: {}]   ;;  %s5942_s7 = inlined_call_operand.hbm [shape: f32[1,1024], index: 7, kind: input, shape index: {}]   ;;  %s5943_s8 = inlined_call_operand.hbm [shape: bf16[1024,128], index: 8, kind: input, shape index: {}]   ;;  %s5944_s9 = inlined_call_operand.hbm [shape: f32[1,128], index: 9, kind: input, shape index: {}]   ;;  %s5945_s10 = inlined_call_operand.hbm [shape: f32[8,128], index: 10, kind: output, shape index: {}]  }
   0x1   :  { %5966 = sst [smem:[#allocation34_spill]] %s5935_s0 }
   0x2   :  { %5967 = sst [smem:[#allocation35_spill]] %s5936_s1 }
   0x3   :  { %5968 = sst [smem:[#allocation36_spill]] %s5938_s3 }
   0x4   :  { %5969 = sst [smem:[#allocation37_spill]] %s5941_s6 }
   0x5   :  { %5970 = sst [smem:[#allocation38_spill]] %s5942_s7 }
   0x6   :  { %5971 = sst [smem:[#allocation39_spill]] %s5945_s10 }
   0x7   :  { %15 = vsyncpa [#allocation4], 0 }
   0x8   :  { %16 = vsyncpa [#allocation7], 0 }
   0x9   :  { %18 = vsyncpa [#allocation7 + $0x1], 0 }
   0xa   :  { %19 = vsyncpa [#allocation10], 0 }
   0xb   :  { %21 = vsyncpa [#allocation10 + $0x1], 0 }
   0xc   :  { %22 = vsyncpa [#allocation13], 0 }
   0xd   :  { %24 = vsyncpa [#allocation13 + $0x1], 0 }
   0xe   :  { %25 = vsyncpa [#allocation16], 0 }
   0xf   :  { %26 = vsyncpa [#allocation19], 0 }
  0x10   :  { %27 = vsyncpa [#allocation5], 0  ;;  %s4913_s13 = smov 0   ;;  %s4915_s14 = smov 0  }
  0x11   :  { %s4917_s15 = smov 0   ;;  %s4919_s16 = smov 0  }
  0x12 LB: > { %5972 = sst [smem:[#allocation29_spill]] %s4831_s14  ;;  %s4932_s17 = sadd.s32 4294967295, %s4839_s16   ;;  %s4839_s16 = sphi %s4919_s16, %s6013_s16   ;;  %s4835_s15 = sphi %s4917_s15, %s6016_s15   ;;  %s4831_s14 = sphi %s4915_s14, %s6015_s14   ;;  %s4827_s13 = sphi %s4913_s13, %s6014_s13  }
  0x13   : > { %5973 = sst [smem:[#allocation30_spill]] %s4835_s15  ;;  %p74_p0 = scmp.ne.s32.totalorder %s4831_s14, %s4827_s13 }
  0x14   : > { %p5946_p1 = scmp.eq.s32.totalorder %s4932_s17, 0  ;;  %p3944_p2 = scmp.ge.s32.totalorder %s4839_s16, 1 }
  0x15   : > { %p294_p3 = scmp.lt.s32.totalorder %s4839_s16, 3  ;;  %s4841_s20 = smov [#allocation14]  }
  0x16   : > { %p4941_p5 = por %p5946_p1, %p74_p0  ;;  %s318_s21 = sshll.u32 %s4841_s20, 4  ;;  %s319_s21 = int_to_ptr.vmem [resolvable:$true] %s318_s21 }
  0x17   : > { %p4945_p6 = pnand %p3944_p2, %p294_p3  ;;  %s4842_s22 = smov [#allocation15]  }
  0x18   : > { %s5974_s18 = scalar_select %p4941_p5, 1, 0 }
  0x19   : > { %s5976_s19 = scalar_select %p4945_p6, 1, 0 }
  0x1a   : > { %5975 = sst [smem:[#allocation31_spill]] %s5974_s18  ;;  %p4290_p7 = pneg %p4945_p6 }
  0x1b   : > { %s329_s23 = sshll.u32 %s4842_s22, 4  ;;  %s4960_s25 = sadd.s32 1, %s4839_s16   ;;  %s4957_s23 = int_to_ptr.vmem [resolvable:$true] %s329_s23 }
  0x1c   : > { %p4953_p8 = pnand %p4290_p7, %p5946_p1  ;;  %5978 = sst [smem:[#allocation32_spill]] %s4960_s25 }
  0x1d   : > { %s5979_s6 = sld [smem:[#allocation37_spill]] }
  0x1e   : > { %s5977_s24 = scalar_select %p4953_p8, 1, 0 }
  0x1f   : > { %p4972_p10 = pneg %p4953_p8 }
  0x21   : > { %s5980_s12 = scalar_select %p4972_p10, 1, 0 }
  0x23   : > { %s4461_s29 = scalar_lea.hbm %s5979_s6, 128 }
  0x24   : > { %p4462_p9 = scmp.ne.s32.totalorder %s5979_s6, %s4461_s29  ;;  %p4468_p13 = scmp.lt.u32.totalorder %s4461_s29, %s5979_s6 }
  0x26   : > { %p4464_p11 = pnand %p4972_p10, %p4462_p9 }
  0x28   : > { %p4465_p12 = pneg %p4464_p11 }
  0x2a   : > { %p4470_p0 = pnand %p4468_p13, %p4465_p12 }
  0x2c   : > { %4473 = shalt.err (!%p4470_p0)
}
  0x2d   : > { %s4474_s22 = scalar_lea.vmem %s319_s21, 128  ;;  %p4482_p4 = scmp.lt.s32.totalorder %s319_s21, %s319_s21 }
  0x2e   : > { %p4475_p2 = scmp.ne.s32.totalorder %s319_s21, %s4474_s22  ;;  %p4483_p1 = scmp.lt.s32.totalorder %s4474_s22, %s4474_s22 }
  0x30   : > { %p4477_p3 = pnand %p4475_p2, %p4972_p10  ;;  %p4484_p5 = por %p4483_p1, %p4482_p4 }
  0x32   : > { %p4478_p7 = pneg %p4477_p3 }
  0x34   : > { %p4485_p6 = pnand %p4484_p5, %p4478_p7 }
  0x36   : > { %4488 = shalt.err (!%p4485_p6)
}
  0x37   : > { %4296 = dma.hbm_to_vmem [thread:$0]  (!%p4953_p8), %s5979_s6, 128, %s319_s21, [#allocation13]  }
  0x38   : > { %s5981_s7 = sld [smem:[#allocation38_spill]] }
  0x3e   : > { %s4489_s11 = scalar_lea.hbm %s5981_s7, 128 }
  0x3f   : > { %p4490_p9 = scmp.ne.s32.totalorder %s5981_s7, %s4489_s11  ;;  %p4496_p4 = scmp.lt.u32.totalorder %s4489_s11, %s5981_s7 }
  0x41   : > { %p4492_p11 = pnand %p4490_p9, %p4972_p10 }
  0x43   : > { %p4493_p1 = pneg %p4492_p11 }
  0x45   : > { %p4498_p5 = pnand %p4496_p4, %p4493_p1 }
  0x47   : > { %4501 = shalt.err (!%p4498_p5)
}
  0x48   : > { %s4502_s21 = scalar_lea.vmem %s4957_s23, 128  ;;  %p4510_p0 = scmp.lt.s32.totalorder %s4957_s23, %s4957_s23 }
  0x49   : > { %p4503_p6 = scmp.ne.s32.totalorder %s4957_s23, %s4502_s21  ;;  %p4511_p2 = scmp.lt.s32.totalorder %s4502_s21, %s4502_s21 }
  0x4b   : > { %p4505_p12 = pnand %p4503_p6, %p4972_p10  ;;  %p4512_p3 = por %p4511_p2, %p4510_p0 }
  0x4d   : > { %p4506_p13 = pneg %p4505_p12 }
  0x4f   : > { %p4513_p7 = pnand %p4512_p3, %p4506_p13 }
  0x51   : > { %4516 = shalt.err (!%p4513_p7)
}
  0x52   : > { %4299 = dma.hbm_to_vmem [thread:$0]  (!%p4953_p8), %s5981_s7, 128, %s4957_s23, [#allocation16]  }
  0x53   : > { %s5982_s28 = ssub.s32 %s4839_s16, %s4960_s25  ;;  %s61_s29 = sadd.s32 1, %s4835_s15 }
  0x54   : > { %p59_p9 = scmp.eq.s32.totalorder %s5982_s28, 0  ;;  %p68_p11 = scmp.ne.s32.totalorder %s4835_s15, %s4831_s14 }
  0x55   : > { %p69_p1 = scmp.eq.s32.totalorder %s4839_s16, 0  ;;  %p4327_p5 = scmp.lt.s32.totalorder %s4839_s16, 2 }
  0x56   : > { %s5019_s30 = scalar_select %p59_p9, %s4835_s15, %s61_s29  }
  0x57   : > { %p70_p4 = por %p69_p1, %p68_p11  ;;  %s5023_s11 = sand.u32 1, %s4839_s16  }
  0x58   : > { %5983 = sst [smem:[#allocation33_spill]] %s5019_s30  ;;  %s5026_s13 = sand.u32 1, %s4835_s15  }
  0x59   : > { %s3951_s20 = sshll.u32 %s5026_s13, 9  ;;  %s4114_s22 = sshll.u32 %s4839_s16, 9 }
  0x5a   : > { %s5984_s1 = sld [smem:[#allocation35_spill]]  ;;  %s368_s27 = scalar_lea.vmem [#allocation6], %s3951_s20 }
  0x5b   : > { %s375_s28 = sshll.u32 %s368_s27, 4  ;;  %p5037_p6 = pnand %p4327_p5, %p70_p4  ;;  %s5035_s28 = int_to_ptr.vmem [resolvable:$true] %s375_s28 }
  0x5d   : > { %s5985_s29 = scalar_select %p5037_p6, 1, 0 }
  0x5e   : > { %p5046_p13 = pneg %p5037_p6 }
  0x60   : > { %s5033_s23 = scalar_lea.hbm %s5984_s1, %s4114_s22  ;;  %s4522_s26 = scalar_lea.hbm %s5984_s1, 16384 }
  0x61   : > { %s4517_s7 = scalar_lea.hbm %s5033_s23, 8192  ;;  %p4523_p3 = scmp.lt.u32.totalorder %s5033_s23, %s5984_s1 }
  0x62   : > { %p4518_p12 = scmp.ne.s32.totalorder %s5033_s23, %s4517_s7  ;;  %p4524_p7 = scmp.lt.u32.totalorder %s4522_s26, %s4517_s7 }
  0x63   : > { %s5986_s22 = scalar_select %p5046_p13, 1, 0 }
  0x64   : > { %p4520_p0 = pnand %p5046_p13, %p4518_p12  ;;  %p4525_p9 = por %p4524_p7, %p4523_p3 }
  0x65   : > { %p4526_p11 = scmp.lt.u32.totalorder %s4517_s7, %s5033_s23 }
  0x66   : > { %p4521_p2 = pneg %p4520_p0 }
  0x67   : > { %p4527_p1 = por %p4526_p11, %p4525_p9 }
  0x69   : > { %p4528_p4 = pnand %p4527_p1, %p4521_p2 }
  0x6b   : > { %4531 = shalt.err (!%p4528_p4)
}
  0x6c   : > { %s4532_s6 = scalar_lea.vmem %s5035_s28, 8192  ;;  %s4843_s20 = smov [#allocation6]  }
  0x6d   : > { %p4533_p5 = scmp.ne.s32.totalorder %s5035_s28, %s4532_s6  ;;  %s4537_s21 = sshll.u32 %s4843_s20, 4  ;;  %s4538_s21 = int_to_ptr.vmem [resolvable:$false] %s4537_s21 }
  0x6e   : > { %s4539_s30 = scalar_lea.vmem %s4538_s21, 16384  ;;  %p4540_p8 = scmp.lt.s32.totalorder %s5035_s28, %s4538_s21 }
  0x6f   : > { %p4535_p12 = pnand %p4533_p5, %p5046_p13  ;;  %p4541_p10 = scmp.lt.s32.totalorder %s4539_s30, %s4532_s6 }
  0x71   : > { %p4536_p0 = pneg %p4535_p12  ;;  %p4542_p3 = por %p4541_p10, %p4540_p8 }
  0x73   : > { %p4543_p7 = pnand %p4542_p3, %p4536_p0 }
  0x75   : > { %4546 = shalt.err (!%p4543_p7)
}
  0x76   : > { %s5959_s7 = smov 1024   ;;  %s4845_s26 = smov 512  }
  0x77   : > { %s4846_s27 = smov 32   ;;  %s5987_s20 = scalar_lea.sflag [#allocation7], %s5023_s11 }
  0x78   : > { %4309 = dma.hbm_to_vmem [thread:$0]  (!%p5037_p6), %s5033_s23, 8192, %s5035_s28, %s5987_s20, %s5959_s7, %s4845_s26, %s4846_s27  }
  0x79   : > { %s5073_s21 = sshll.u32 %s5026_s13, 3  ;;  %s5076_s6 = sshll.u32 %s4839_s16, 7 }
  0x7a   : > { %s5988_s3 = sld [smem:[#allocation36_spill]]  ;;  %s408_s25 = scalar_lea.vmem [#allocation9], %s5073_s21 }
  0x7b   : > { %s416_s10 = sshll.u32 %s408_s25, 4  ;;  %s5965_s18 = scalar_lea.sflag [#allocation10], %s5023_s11  ;;  %s417_s10 = int_to_ptr.vmem [resolvable:$true] %s416_s10 }
  0x80   : > { %s5082_s15 = scalar_lea.hbm %s5988_s3, %s5076_s6  ;;  %s4552_s27 = scalar_lea.hbm %s5988_s3, 256 }
  0x81   : > { %s4547_s23 = scalar_lea.hbm %s5082_s15, 128  ;;  %p4553_p9 = scmp.lt.u32.totalorder %s5082_s15, %s5988_s3 }
  0x82   : > { %p4548_p8 = scmp.ne.s32.totalorder %s5082_s15, %s4547_s23  ;;  %p4554_p11 = scmp.lt.u32.totalorder %s4552_s27, %s4547_s23 }
  0x83   : > { %p4556_p4 = scmp.lt.u32.totalorder %s4547_s23, %s5082_s15 }
  0x84   : > { %p4550_p10 = pnand %p4548_p8, %p5046_p13  ;;  %p4555_p1 = por %p4554_p11, %p4553_p9 }
  0x86   : > { %p4551_p2 = pneg %p4550_p10  ;;  %p4557_p5 = por %p4556_p4, %p4555_p1 }
  0x88   : > { %p4558_p12 = pnand %p4557_p5, %p4551_p2 }
  0x8a   : > { %4561 = shalt.err (!%p4558_p12)
}
  0x8b   : > { %s4562_s25 = scalar_lea.vmem %s417_s10, 128  ;;  %s4847_s30 = smov [#allocation9]  }
  0x8c   : > { %p4563_p0 = scmp.ne.s32.totalorder %s417_s10, %s4562_s25  ;;  %s4567_s7 = sshll.u32 %s4847_s30, 4  ;;  %s4568_s7 = int_to_ptr.vmem [resolvable:$false] %s4567_s7 }
  0x8d   : > { %s4569_s28 = scalar_lea.vmem %s4568_s7, 256  ;;  %p4570_p8 = scmp.lt.s32.totalorder %s417_s10, %s4568_s7 }
  0x8e   : > { %p4565_p3 = pnand %p4563_p0, %p5046_p13  ;;  %p4571_p10 = scmp.lt.s32.totalorder %s4569_s28, %s4562_s25 }
  0x90   : > { %p4566_p7 = pneg %p4565_p3  ;;  %p4572_p6 = por %p4571_p10, %p4570_p8 }
  0x92   : > { %p4573_p9 = pnand %p4572_p6, %p4566_p7 }
  0x94   : > { %4576 = shalt.err (!%p4573_p9)
}
  0x95   : > { %p5989_p11 = scmp.ne.s32.totalorder %s5985_s29, 0  ;;  %s4848_s23 = smov [#allocation3]  }
  0x96   : > { %s307_s26 = sshll.u32 %s4848_s23, 4  ;;  %s4849_s27 = smov [#allocation17]   ;;  %s308_s26 = int_to_ptr.vmem [resolvable:$true] %s307_s26 }
  0x97   : > { %4315 = dma.hbm_to_vmem [thread:$0]  (!%p5989_p11), %s5082_s15, 128, %s417_s10, %s5965_s18  }
  0x98   : > { %s339_s1 = sshll.u32 %s4849_s27, 4  ;;  %s5990_s0 = sld [smem:[#allocation34_spill]]  ;;  %s340_s1 = int_to_ptr.vmem [resolvable:$true] %s339_s1 }
  0x99   : > { %p5991_p2 = scmp.ne.s32.totalorder %s5980_s12, 0 }
  0x9e   : > { %s4577_s7 = scalar_lea.hbm %s5990_s0, 64 }
  0x9f   : > { %p4578_p6 = scmp.ne.s32.totalorder %s5990_s0, %s4577_s7  ;;  %p4584_p5 = scmp.lt.u32.totalorder %s4577_s7, %s5990_s0 }
  0xa1   : > { %p4580_p1 = pnand %p4578_p6, %p5991_p2 }
  0xa3   : > { %p4581_p4 = pneg %p4580_p1 }
  0xa5   : > { %p4586_p12 = pnand %p4584_p5, %p4581_p4 }
  0xa7   : > { %4589 = shalt.err (!%p4586_p12)
}
  0xa8   : > { %s4590_s10 = scalar_lea.vmem %s308_s26, 64  ;;  %p4598_p8 = scmp.lt.s32.totalorder %s308_s26, %s308_s26 }
  0xa9   : > { %p4591_p0 = scmp.ne.s32.totalorder %s308_s26, %s4590_s10  ;;  %p4599_p10 = scmp.lt.s32.totalorder %s4590_s10, %s4590_s10 }
  0xab   : > { %p4593_p3 = pnand %p4591_p0, %p5991_p2  ;;  %p4600_p9 = por %p4599_p10, %p4598_p8 }
  0xad   : > { %p4594_p7 = pneg %p4593_p3 }
  0xaf   : > { %p4601_p11 = pnand %p4600_p9, %p4594_p7 }
  0xb1   : > { %4604 = shalt.err (!%p4601_p11)
}
  0xb2   : > { %p5992_p6 = scmp.ne.s32.totalorder %s5977_s24, 0  ;;  %s4605_s27 = scalar_lea.hbm %s5943_s8, 8192 }
  0xb3   : > { %p4606_p1 = scmp.ne.s32.totalorder %s5943_s8, %s4605_s27  ;;  %p4612_p11 = scmp.lt.u32.totalorder %s4605_s27, %s5943_s8 }
  0xb4   : > { %4293 = dma.hbm_to_vmem [thread:$0]  (!%p5992_p6), %s5990_s0, 64, %s308_s26, [#allocation4]  }
  0xb5   : > { %p4608_p4 = pnand %p4606_p1, %p5991_p2 }
  0xb7   : > { %p4609_p5 = pneg %p4608_p4 }
  0xb9   : > { %p4614_p12 = pnand %p4612_p11, %p4609_p5 }
  0xbb   : > { %4617 = shalt.err (!%p4614_p12)
}
  0xbc   : > { %s4618_s28 = scalar_lea.vmem %s340_s1, 8192  ;;  %p4626_p8 = scmp.lt.s32.totalorder %s340_s1, %s340_s1 }
  0xbd   : > { %p4619_p0 = scmp.ne.s32.totalorder %s340_s1, %s4618_s28  ;;  %p4627_p10 = scmp.lt.s32.totalorder %s4618_s28, %s4618_s28 }
  0xbf   : > { %p4621_p3 = pnand %p4619_p0, %p5991_p2  ;;  %p4628_p9 = por %p4627_p10, %p4626_p8 }
  0xc1   : > { %p4622_p7 = pneg %p4621_p3 }
  0xc3   : > { %p4629_p13 = pnand %p4628_p9, %p4622_p7 }
  0xc5   : > { %4632 = shalt.err (!%p4629_p13)
}
  0xc6   : > { %s4850_s26 = smov 64   ;;  %s4851_s10 = smov 4  }
  0xc7   : > { %4302 = dma.hbm_to_vmem [thread:$0]  (!%p5992_p6), %s5943_s8, 8192, %s340_s1, [#allocation16], %s4850_s26, %s4850_s26, %s4851_s10  }
  0xc8   : > { %s4852_s3 = smov [#allocation18]   ;;  %s5147_s30 = scalar_lea.hbm %s5937_s2, %s5076_s6 }
  0xc9   : > { %s353_s14 = sshll.u32 %s4852_s3, 4  ;;  %s4633_s28 = scalar_lea.hbm %s5944_s9, 16  ;;  %s354_s14 = int_to_ptr.vmem [resolvable:$true] %s353_s14 }
  0xca   : > { %p4634_p13 = scmp.ne.s32.totalorder %s5944_s9, %s4633_s28  ;;  %p4640_p5 = scmp.lt.u32.totalorder %s4633_s28, %s5944_s9 }
  0xcc   : > { %p4636_p1 = pnand %p4634_p13, %p5991_p2 }
  0xce   : > { %p4637_p4 = pneg %p4636_p1 }
  0xd0   : > { %p4642_p11 = pnand %p4640_p5, %p4637_p4 }
  0xd2   : > { %4645 = shalt.err (!%p4642_p11)
}
  0xd3   : > { %s4646_s15 = scalar_lea.vmem %s354_s14, 16  ;;  %s4653_s23 = scalar_lea.vmem %s354_s14, 32 }
  0xd4   : > { %p4647_p12 = scmp.ne.s32.totalorder %s354_s14, %s4646_s15  ;;  %p4654_p7 = scmp.lt.s32.totalorder %s354_s14, %s354_s14 }
  0xd5   : > { %p4655_p8 = scmp.lt.s32.totalorder %s4653_s23, %s4646_s15 }
  0xd6   : > { %p4649_p0 = pnand %p4647_p12, %p5991_p2 }
  0xd7   : > { %p4656_p10 = por %p4655_p8, %p4654_p7 }
  0xd8   : > { %p4650_p3 = pneg %p4649_p0 }
  0xda   : > { %p4657_p9 = pnand %p4656_p10, %p4650_p3 }
  0xdc   : > { %4660 = shalt.err (!%p4657_p9)
}
  0xdd   : > { %4305 = dma.hbm_to_vmem [thread:$0]  (!%p5992_p6), %s5944_s9, 16, %s354_s14, [#allocation19]  }
  0xde   : > { %s389_s12 = scalar_lea.vmem [#allocation8], %s5073_s21  ;;  %s5172_s7 = scalar_lea.hbm %s5939_s4, %s5076_s6 }
  0xdf   : > { %s397_s3 = sshll.u32 %s389_s12, 4  ;;  %s4661_s24 = scalar_lea.hbm %s5147_s30, 128  ;;  %s398_s3 = int_to_ptr.vmem [resolvable:$true] %s397_s3 }
  0xe0   : > { %p4662_p2 = scmp.ne.s32.totalorder %s5147_s30, %s4661_s24  ;;  %p5993_p13 = scmp.ne.s32.totalorder %s5986_s22, 0 }
  0xe1   : > { %s4666_s1 = scalar_lea.hbm %s5937_s2, 256  ;;  %p4667_p6 = scmp.lt.u32.totalorder %s5147_s30, %s5937_s2 }
  0xe2   : > { %p4664_p1 = pnand %p4662_p2, %p5993_p13  ;;  %p4668_p5 = scmp.lt.u32.totalorder %s4666_s1, %s4661_s24 }
  0xe3   : > { %p4670_p12 = scmp.lt.u32.totalorder %s4661_s24, %s5147_s30 }
  0xe4   : > { %p4665_p4 = pneg %p4664_p1  ;;  %p4669_p11 = por %p4668_p5, %p4667_p6 }
  0xe6   : > { %p4671_p0 = por %p4670_p12, %p4669_p11 }
  0xe8   : > { %p4672_p3 = pnand %p4671_p0, %p4665_p4 }
  0xea   : > { %4675 = shalt.err (!%p4672_p3)
}
  0xeb   : > { %s4676_s6 = scalar_lea.vmem %s398_s3, 128  ;;  %s4853_s14 = smov [#allocation8]  }
  0xec   : > { %p4677_p7 = scmp.ne.s32.totalorder %s398_s3, %s4676_s6  ;;  %s4681_s23 = sshll.u32 %s4853_s14, 4  ;;  %s4682_s23 = int_to_ptr.vmem [resolvable:$false] %s4681_s23 }
  0xed   : > { %s4683_s0 = scalar_lea.vmem %s4682_s23, 256  ;;  %p4684_p9 = scmp.lt.s32.totalorder %s398_s3, %s4682_s23 }
  0xee   : > { %p4679_p8 = pnand %p4677_p7, %p5993_p13  ;;  %p4685_p2 = scmp.lt.s32.totalorder %s4683_s0, %s4676_s6 }
  0xf0   : > { %p4680_p10 = pneg %p4679_p8  ;;  %p4686_p1 = por %p4685_p2, %p4684_p9 }
  0xf2   : > { %p4687_p5 = pnand %p4686_p1, %p4680_p10 }
  0xf4   : > { %4690 = shalt.err (!%p4687_p5)
}
  0xf5   : > { %p5994_p6 = scmp.ne.s32.totalorder %s5985_s29, 0  ;;  %s5995_s18 = scalar_lea.sflag [#allocation7], %s5023_s11 }
  0xf6   : > { %s427_s12 = scalar_lea.vmem [#allocation11], %s5073_s21  ;;  %s3963_s20 = sshll.u32 %s5026_s13, 11 }
  0xf7   : > { %4312 = dma.hbm_to_vmem [thread:$0]  (!%p5994_p6), %s5147_s30, 128, %s398_s3, %s5995_s18  }
  0xf8   : > { %s435_s27 = sshll.u32 %s427_s12, 4  ;;  %s4691_s24 = scalar_lea.hbm %s5172_s7, 128  ;;  %s436_s27 = int_to_ptr.vmem [resolvable:$true] %s435_s27 }
  0xf9   : > { %p4692_p4 = scmp.ne.s32.totalorder %s5172_s7, %s4691_s24  ;;  %s4696_s1 = scalar_lea.hbm %s5939_s4, 256 }
  0xfa   : > { %p4697_p0 = scmp.lt.u32.totalorder %s5172_s7, %s5939_s4  ;;  %p4698_p3 = scmp.lt.u32.totalorder %s4696_s1, %s4691_s24 }
  0xfb   : > { %p4694_p11 = pnand %p4692_p4, %p5993_p13  ;;  %p4700_p8 = scmp.lt.u32.totalorder %s4691_s24, %s5172_s7 }
  0xfc   : > { %p4699_p7 = por %p4698_p3, %p4697_p0 }
  0xfd   : > { %p4695_p12 = pneg %p4694_p11 }
  0xfe   : > { %p4701_p10 = por %p4700_p8, %p4699_p7 }
 0x100   : > { %p4702_p9 = pnand %p4701_p10, %p4695_p12 }
 0x102   : > { %4705 = shalt.err (!%p4702_p9)
}
 0x103   : > { %s4706_s21 = scalar_lea.vmem %s436_s27, 128  ;;  %s4854_s30 = smov [#allocation11]  }
 0x104   : > { %p4707_p2 = scmp.ne.s32.totalorder %s436_s27, %s4706_s21  ;;  %s4711_s3 = sshll.u32 %s4854_s30, 4  ;;  %s4712_s3 = int_to_ptr.vmem [resolvable:$false] %s4711_s3 }
 0x105   : > { %s4713_s6 = scalar_lea.vmem %s4712_s3, 256  ;;  %p4714_p4 = scmp.lt.s32.totalorder %s436_s27, %s4712_s3 }
 0x106   : > { %p4709_p1 = pnand %p4707_p2, %p5993_p13  ;;  %p4715_p11 = scmp.lt.s32.totalorder %s4713_s6, %s4706_s21 }
 0x108   : > { %p4710_p5 = pneg %p4709_p1  ;;  %p4716_p6 = por %p4715_p11, %p4714_p4 }
 0x10a   : > { %p4717_p0 = pnand %p4716_p6, %p4710_p5 }
 0x10c   : > { %4720 = shalt.err (!%p4717_p0)
}
 0x10d   : > { %p5996_p3 = scmp.ne.s32.totalorder %s5985_s29, 0  ;;  %s5997_s14 = scalar_lea.sflag [#allocation10], %s5023_s11 }
 0x10e   : > { %s4119_s23 = sshll.u32 %s4839_s16, 15  ;;  %s446_s24 = scalar_lea.vmem [#allocation12], %s3963_s20 }
 0x10f   : > { %4318 = dma.hbm_to_vmem [thread:$0]  (!%p5996_p3), %s5172_s7, 128, %s436_s27, %s5997_s14  }
 0x110   : > { %s5218_s12 = scalar_lea.hbm %s5940_s5, %s4119_s23  ;;  %s454_s25 = sshll.u32 %s446_s24, 4  ;;  %s5222_s25 = int_to_ptr.vmem [resolvable:$true] %s454_s25 }
 0x111   : > { %s443_s28 = scalar_lea.sflag [#allocation13], %s5023_s11  ;;  %s4721_s1 = scalar_lea.hbm %s5218_s12, 32768 }
 0x112   : > { %p4722_p6 = scmp.ne.s32.totalorder %s5218_s12, %s4721_s1  ;;  %s4726_s27 = scalar_lea.hbm %s5940_s5, 65536 }
 0x113   : > { %p4727_p8 = scmp.lt.u32.totalorder %s5218_s12, %s5940_s5  ;;  %p4728_p10 = scmp.lt.u32.totalorder %s4726_s27, %s4721_s1 }
 0x114   : > { %p4724_p12 = pnand %p4722_p6, %p5993_p13  ;;  %p4730_p2 = scmp.lt.u32.totalorder %s4721_s1, %s5218_s12 }
 0x115   : > { %p4729_p9 = por %p4728_p10, %p4727_p8 }
 0x116   : > { %p4725_p7 = pneg %p4724_p12 }
 0x117   : > { %p4731_p1 = por %p4730_p2, %p4729_p9 }
 0x119   : > { %p4732_p5 = pnand %p4731_p1, %p4725_p7 }
 0x11b   : > { %4735 = shalt.err (!%p4732_p5)
}
 0x11c   : > { %s4736_s20 = scalar_lea.vmem %s5222_s25, 32768  ;;  %s4855_s15 = smov [#allocation12]  }
 0x11d   : > { %p4737_p4 = scmp.ne.s32.totalorder %s5222_s25, %s4736_s20  ;;  %s4741_s21 = sshll.u32 %s4855_s15, 4  ;;  %s4742_s21 = int_to_ptr.vmem [resolvable:$false] %s4741_s21 }
 0x11e   : > { %s4743_s30 = scalar_lea.vmem %s4742_s21, 65536  ;;  %p4744_p6 = scmp.lt.s32.totalorder %s5222_s25, %s4742_s21 }
 0x11f   : > { %p4739_p11 = pnand %p4737_p4, %p5993_p13  ;;  %p4745_p12 = scmp.lt.s32.totalorder %s4743_s30, %s4736_s20 }
 0x121   : > { %p4740_p0 = pneg %p4739_p11  ;;  %p4746_p8 = por %p4745_p12, %p4744_p6 }
 0x123   : > { %p4747_p10 = pnand %p4746_p8, %p4740_p0 }
 0x125   : > { %4750 = shalt.err (!%p4747_p10)
}
 0x126   : > { %s5998_s3 = smov 1024   ;;  %p5999_p13 = scmp.ne.s32.totalorder %s5976_s19, 0 }
 0x127   : > { %4321 = dma.hbm_to_vmem [thread:$0]  (!%p5996_p3), %s5218_s12, 32768, %s5222_s25, %s443_s28, %s5998_s3, %s5998_s3, %s4850_s26  }
 0x128   : > { %466 = sbr.rel (%p5999_p13) target bundleno = 1630 (0x65e), region = 60  ;;  %p6000_p7 = scmp.eq.s32.totalorder (!%p5999_p13), %s4932_s17, 0 }
 0x12f   : > { %4794 = dma.done.wait (%p6000_p7), [#allocation4], 64   ;;  %p6001_p9 = pmov %p6000_p7 }
 0x130   : > { %s6002_s22 = sld [smem:[#allocation29_spill]]  ;;  %s6003_s29 = sld [smem:[#allocation31_spill]] }
 0x131   : > { %4796 = vsyncadd (%p6001_p9), [#allocation4], 4294967232  ;;  %s472_s6 = sand.u32 1, %s4932_s17  }
 0x132   : > { %s473_s0 = scalar_lea.sflag [#allocation7], %s472_s6 }
 0x136   : > { %s474_s14 = sand.u32 1, %s6002_s22   ;;  %p6004_p2 = scmp.ne.s32.totalorder %s6003_s29, 0 }
 0x137   : > { %s3969_s23 = sshll.u32 %s474_s14, 9 }
 0x138   : > { %s5259_s11 = scalar_lea.vmem [#allocation6], %s3969_s23 }
 0x139   : > { %4798 = dma.done.wait (%p6004_p2), %s473_s0, 8320  }
 0x13a   : > { %4800 = vsyncadd (%p6004_p2), %s473_s0, 4294958976  ;;  %s5265_s19 = sshll.u32 %s474_s14, 3  ;;  %s491_s18 = scalar_lea.sflag [#allocation10], %s472_s6 }
 0x13b   : > { %s485_s26 = scalar_lea.vmem [#allocation8], %s5265_s19  ;;  %s494_s12 = scalar_lea.vmem [#allocation9], %s5265_s19 }
 0x13c   : > { %4802 = dma.done.wait (%p6004_p2), %s491_s18, 256  }
 0x13d   : > { %4804 = vsyncadd (%p6004_p2), %s491_s18, 4294967040  ;;  %s3973_s24 = sshll.u32 %s474_s14, 11  ;;  %s503_s25 = scalar_lea.vmem [#allocation11], %s5265_s19 }
 0x13e   : > { %s509_s28 = scalar_lea.sflag [#allocation13], %s472_s6  ;;  %s5274_s1 = scalar_lea.vmem [#allocation12], %s3973_s24 }
 0x13f   : > { %4806 = dma.done.wait (%p6004_p2), %s509_s28, 32768  }
 0x140   : > { %4808 = vsyncadd (%p6004_p2), %s509_s28, 4294934528  ;;  %p6005_p3 = pmov %p6000_p7 }
 0x142   : > { %4810 = dma.done.wait (%p6005_p3), [#allocation13], 128   ;;  %p6006_p1 = pmov %p6005_p3 }
 0x144   : > { %4812 = vsyncadd (%p6006_p1), [#allocation13], 4294967168  ;;  %p6007_p5 = pmov %p6006_p1 }
 0x145   : > { %p6008_p4 = pmov %p6006_p1 }
 0x146   : > { %4814 = dma.done.wait (%p6007_p5), [#allocation16], 8320  }
 0x147   : > { %4816 = vsyncadd (%p6008_p4), [#allocation16], 4294958976  ;;  %p6009_p11 = pmov %p6006_p1 }
 0x148   : > { %p6010_p0 = pmov %p6006_p1 }
 0x149   : > { %4818 = dma.done.wait (%p6009_p11), [#allocation19], 16  }
 0x14a   : > { %4820 = vsyncadd (%p6010_p0), [#allocation19], 4294967280  ;;  %v4856_v0 = vmov 0   ;;  %v587_v1 = vld [vmem:[%s5259_s11] sm:$0xff]  ;;  %v588_v10 = vld [vmem:[%s5259_s11 + $0x8] sm:$0xff]  ;;  %p6011_p6 = scmp.ne.s32.totalorder %s4932_s17, 0 }
 0x14b   : > { %1045 = vmatprep.mubr.bf16.mxu0 %v4856_v0  ;;  %1086 = vmatprep.mubr.bf16.mxu1 %v4856_v0  ;;  %v591_v2 = vld [vmem:[%s5259_s11 + $0x20] sm:$0xff]  ;;  %v592_v11 = vld [vmem:[%s5259_s11 + $0x28] sm:$0xff]  ;;  %v589_v61 = vld [vmem:[%s5259_s11 + $0x10] sm:$0xff] }
 0x14c   : > { %v595_v3 = vld [vmem:[%s5259_s11 + $0x40] sm:$0xff]  ;;  %v3979_v4 = vcombine.high %v587_v1, %v591_v2  ;;  %v3978_v5 = vcombine.low %v587_v1, %v591_v2  ;;  %v3981_v13 = vcombine.high %v588_v10, %v592_v11  ;;  %v3980_v14 = vcombine.low %v588_v10, %v592_v11  ;;  %v596_v15 = vld [vmem:[%s5259_s11 + $0x48] sm:$0xff]  ;;  %v593_v62 = vld [vmem:[%s5259_s11 + $0x30] sm:$0xff] }
 0x14d   : > { %v599_v6 = vld [vmem:[%s5259_s11 + $0x60] sm:$0xff]  ;;  %v600_v18 = vld [vmem:[%s5259_s11 + $0x68] sm:$0xff]  ;;  %v3982_v10 = vcombine.low %v589_v61, %v593_v62 }
 0x14e   : > { %v3987_v7 = vcombine.high %v595_v3, %v599_v6  ;;  %v603_v8 = vld [vmem:[%s5259_s11 + $0x80] sm:$0xff]  ;;  %1013 = vmatprep.subr.bf16.mxu0 %v3979_v4  ;;  %v3986_v12 = vcombine.low %v595_v3, %v599_v6  ;;  %1054 = vmatprep.subr.bf16.mxu1 %v3981_v13  ;;  %v3989_v20 = vcombine.high %v596_v15, %v600_v18  ;;  %v604_v21 = vld [vmem:[%s5259_s11 + $0x88] sm:$0xff]  ;;  %v597_v4 = vld [vmem:[%s5259_s11 + $0x50] sm:$0xff] }
 0x14f   : > { %v607_v9 = vld [vmem:[%s5259_s11 + $0xa0] sm:$0xff]  ;;  %1014 = vmatpush1.bf16.msra.mxu0 %v3978_v5  ;;  %v608_v22 = vld [vmem:[%s5259_s11 + $0xa8] sm:$0xff]  ;;  %1055 = vmatpush1.bf16.msra.mxu1 %v3980_v14  ;;  %v3988_v23 = vcombine.low %v596_v15, %v600_v18  ;;  %v3983_v3 = vcombine.high %v589_v61, %v593_v62  ;;  %v601_v5 = vld [vmem:[%s5259_s11 + $0x70] sm:$0xff] }
 0x150   : > { %1015 = vmatprep.subr.bf16.mxu0 %v3987_v7  ;;  %v3995_v16 = vcombine.high %v603_v8, %v607_v9  ;;  %v611_v17 = vld [vmem:[%s5259_s11 + $0xc0] sm:$0xff]  ;;  %v3994_v24 = vcombine.low %v603_v8, %v607_v9  ;;  %1056 = vmatprep.subr.bf16.mxu1 %v3989_v20  ;;  %v3997_v25 = vcombine.high %v604_v21, %v608_v22  ;;  %v612_v27 = vld [vmem:[%s5259_s11 + $0xc8] sm:$0xff]  ;;  %v590_v6 = vld [vmem:[%s5259_s11 + $0x18] sm:$0xff] }
 0x151   : > { %v615_v19 = vld [vmem:[%s5259_s11 + $0xe0] sm:$0xff]  ;;  %v616_v28 = vld [vmem:[%s5259_s11 + $0xe8] sm:$0xff]  ;;  %v3996_v31 = vcombine.low %v604_v21, %v608_v22  ;;  %v594_v7 = vld [vmem:[%s5259_s11 + $0x38] sm:$0xff]  ;;  %v3991_v11 = vcombine.high %v597_v4, %v601_v5  ;;  %v3990_v18 = vcombine.low %v597_v4, %v601_v5 }
 0x152   : > { %v4003_v26 = vcombine.high %v611_v17, %v615_v19  ;;  %v619_v29 = vld [vmem:[%s5259_s11 + $0x100] sm:$0xff]  ;;  %v4002_v32 = vcombine.low %v611_v17, %v615_v19  ;;  %v4005_v33 = vcombine.high %v612_v27, %v616_v28  ;;  %v620_v35 = vld [vmem:[%s5259_s11 + $0x108] sm:$0xff]  ;;  %v4004_v39 = vcombine.low %v612_v27, %v616_v28  ;;  %v5332_v9 = vld [vmem:[#allocation3] sm:$0xf] }
 0x153   : > { %1016 = vmatpush1.bf16.msra.mxu0 %v3986_v12  ;;  %v623_v30 = vld [vmem:[%s5259_s11 + $0x120] sm:$0xff]  ;;  %1057 = vmatpush1.bf16.msra.mxu1 %v3988_v23  ;;  %v624_v36 = vld [vmem:[%s5259_s11 + $0x128] sm:$0xff]  ;;  %v3985_v12 = vcombine.high %v590_v6, %v594_v7  ;;  %v598_v13 = vld [vmem:[%s5259_s11 + $0x58] sm:$0xff]  ;;  %v3984_v17 = vcombine.low %v590_v6, %v594_v7 }
 0x154   : > { %1017 = vmatprep.subr.bf16.mxu0 %v3995_v16  ;;  %1058 = vmatprep.subr.bf16.mxu1 %v3997_v25  ;;  %v4011_v34 = vcombine.high %v619_v29, %v623_v30  ;;  %v627_v37 = vld [vmem:[%s5259_s11 + $0x140] sm:$0xff]  ;;  %v4010_v40 = vcombine.low %v619_v29, %v623_v30  ;;  %v4013_v41 = vcombine.high %v620_v35, %v624_v36  ;;  %v628_v43 = vld [vmem:[%s5259_s11 + $0x148] sm:$0xff]  ;;  %v602_v14 = vld [vmem:[%s5259_s11 + $0x78] sm:$0xff] }
 0x155   : > { %v631_v38 = vld [vmem:[%s5259_s11 + $0x160] sm:$0xff]  ;;  %v632_v44 = vld [vmem:[%s5259_s11 + $0x168] sm:$0xff]  ;;  %v4012_v47 = vcombine.low %v620_v35, %v624_v36  ;;  %v605_v15 = vld [vmem:[%s5259_s11 + $0x90] sm:$0xff]  ;;  %v3993_v19 = vcombine.high %v598_v13, %v602_v14  ;;  %v3992_v25 = vcombine.low %v598_v13, %v602_v14 }
 0x156   : > { %v4019_v42 = vcombine.high %v627_v37, %v631_v38  ;;  %v635_v45 = vld [vmem:[%s5259_s11 + $0x180] sm:$0xff]  ;;  %v4018_v48 = vcombine.low %v627_v37, %v631_v38  ;;  %v4021_v49 = vcombine.high %v628_v43, %v632_v44  ;;  %v636_v51 = vld [vmem:[%s5259_s11 + $0x188] sm:$0xff]  ;;  %v4020_v55 = vcombine.low %v628_v43, %v632_v44  ;;  %v609_v16 = vld [vmem:[%s5259_s11 + $0xb0] sm:$0xff] }
 0x157   : > { %1018 = vmatpush1.bf16.msra.mxu0 %v3994_v24  ;;  %1059 = vmatpush1.bf16.msra.mxu1 %v3996_v31  ;;  %v639_v46 = vld [vmem:[%s5259_s11 + $0x1a0] sm:$0xff]  ;;  %v640_v52 = vld [vmem:[%s5259_s11 + $0x1a8] sm:$0xff]  ;;  %v3999_v20 = vcombine.high %v605_v15, %v609_v16  ;;  %v606_v21 = vld [vmem:[%s5259_s11 + $0x98] sm:$0xff] }
 0x158   : > { %1019 = vmatprep.subr.bf16.mxu0 %v4003_v26  ;;  %1060 = vmatprep.subr.bf16.mxu1 %v4005_v33  ;;  %v4027_v50 = vcombine.high %v635_v45, %v639_v46  ;;  %v643_v53 = vld [vmem:[%s5259_s11 + $0x1c0] sm:$0xff]  ;;  %v4026_v56 = vcombine.low %v635_v45, %v639_v46  ;;  %v4029_v57 = vcombine.high %v636_v51, %v640_v52  ;;  %v644_v59 = vld [vmem:[%s5259_s11 + $0x1c8] sm:$0xff]  ;;  %v610_v22 = vld [vmem:[%s5259_s11 + $0xb8] sm:$0xff] }
 0x159   : > { %v647_v54 = vld [vmem:[%s5259_s11 + $0x1e0] sm:$0xff]  ;;  %v648_v60 = vld [vmem:[%s5259_s11 + $0x1e8] sm:$0xff]  ;;  %v4028_v63 = vcombine.low %v636_v51, %v640_v52  ;;  %v613_v23 = vld [vmem:[%s5259_s11 + $0xd0] sm:$0xff]  ;;  %v3998_v26 = vcombine.low %v605_v15, %v609_v16  ;;  %v4001_v27 = vcombine.high %v606_v21, %v610_v22  ;;  %v4000_v33 = vcombine.low %v606_v21, %v610_v22 }
 0x15a   : > { %v4035_v58 = vcombine.high %v643_v53, %v647_v54  ;;  %v4034_v1 = vcombine.low %v643_v53, %v647_v54  ;;  %v4037_v2 = vcombine.high %v644_v59, %v648_v60  ;;  %v4036_v8 = vcombine.low %v644_v59, %v648_v60  ;;  %v617_v24 = vld [vmem:[%s5259_s11 + $0xf0] sm:$0xff]  ;;  %v614_v29 = vld [vmem:[%s5259_s11 + $0xd8] sm:$0xff]  ;;  %v1481_v4 = vld [vmem:[%s5274_s1 + $0x18] sm:$0xff] }
 0x15b   : > { %1020 = vmatpush1.bf16.msra.mxu0 %v4002_v32  ;;  %1061 = vmatpush1.bf16.msra.mxu1 %v4004_v39  ;;  %v4007_v28 = vcombine.high %v613_v23, %v617_v24  ;;  %v618_v30 = vld [vmem:[%s5259_s11 + $0xf8] sm:$0xff]  ;;  %v621_v31 = vld [vmem:[%s5259_s11 + $0x110] sm:$0xff]  ;;  %v1737_v7 = vunpack.c.l.s8.bf16 %v1481_v4  ;;  %v1745_v13 = vunpack.c.h.s8.bf16 %v1481_v4  ;;  %v1488_v21 = vld [vmem:[%s5274_s1 + $0x50] sm:$0xff] }
 0x15c   : > { %1021 = vmatprep.subr.bf16.mxu0 %v4011_v34  ;;  %1062 = vmatprep.subr.bf16.mxu1 %v4013_v41  ;;  %v625_v32 = vld [vmem:[%s5259_s11 + $0x130] sm:$0xff]  ;;  %v4006_v34 = vcombine.low %v613_v23, %v617_v24  ;;  %v622_v36 = vld [vmem:[%s5259_s11 + $0x118] sm:$0xff]  ;;  %v1752_v23 = vunpack.c.l.s8.bf16 %v1488_v21  ;;  %v1520_v4 = vld [vmem:[%s5274_s1 + $0x150] sm:$0xff] }
 0x15d   : > { %v4015_v35 = vcombine.high %v621_v31, %v625_v32  ;;  %v626_v37 = vld [vmem:[%s5259_s11 + $0x138] sm:$0xff]  ;;  %v629_v38 = vld [vmem:[%s5259_s11 + $0x150] sm:$0xff]  ;;  %v4014_v41 = vcombine.low %v621_v31, %v625_v32  ;;  %v1496_v32 = vld [vmem:[%s5274_s1 + $0x90] sm:$0xff] }
 0x15e   : > { %v633_v39 = vld [vmem:[%s5259_s11 + $0x170] sm:$0xff]  ;;  %v630_v44 = vld [vmem:[%s5259_s11 + $0x158] sm:$0xff] }
 0x15f   : > { %1022 = vmatpush1.bf16.msra.mxu0 %v4010_v40  ;;  %1063 = vmatpush1.bf16.msra.mxu1 %v4012_v47  ;;  %v4008_v40 = vcombine.low %v614_v29, %v618_v30  ;;  %v4023_v43 = vcombine.high %v629_v38, %v633_v39  ;;  %v634_v45 = vld [vmem:[%s5259_s11 + $0x178] sm:$0xff]  ;;  %v637_v46 = vld [vmem:[%s5259_s11 + $0x190] sm:$0xff] }
 0x160   : > { %1023 = vmatprep.subr.bf16.mxu0 %v4019_v42  ;;  %1064 = vmatprep.subr.bf16.mxu1 %v4021_v49  ;;  %v4017_v42 = vcombine.high %v622_v36, %v626_v37  ;;  %v641_v47 = vld [vmem:[%s5259_s11 + $0x1b0] sm:$0xff]  ;;  %v4022_v49 = vcombine.low %v629_v38, %v633_v39  ;;  %v638_v52 = vld [vmem:[%s5259_s11 + $0x198] sm:$0xff]  ;;  %v1505_v39 = vld [vmem:[%s5274_s1 + $0xd8] sm:$0xff] }
 0x161   : > { %v4031_v51 = vcombine.high %v637_v46, %v641_v47  ;;  %v642_v53 = vld [vmem:[%s5259_s11 + $0x1b8] sm:$0xff]  ;;  %v645_v54 = vld [vmem:[%s5259_s11 + $0x1d0] sm:$0xff] }
 0x162   : > { %v646_v60 = vld [vmem:[%s5259_s11 + $0x1d8] sm:$0xff]  ;;  %v1478_v5 = vld [vmem:[%s5274_s1] sm:$0xff] }
 0x163   : > { %1024 = vmatpush1.bf16.msra.mxu0 %v4018_v48  ;;  %1065 = vmatpush1.bf16.msra.mxu1 %v4020_v55  ;;  %v4016_v48 = vcombine.low %v622_v36, %v626_v37  ;;  %v649_v55 = vld [vmem:[%s5259_s11 + $0x1f0] sm:$0xff]  ;;  %v650_v61 = vld [vmem:[%s5259_s11 + $0x1f8] sm:$0xff]  ;;  %v1742_v14 = vunpack.c.h.s8.bf16 %v1478_v5  ;;  %v1776_v37 = vunpack.c.h.s8.bf16 %v1496_v32 }
 0x164   : > { %1025 = vmatprep.subr.bf16.mxu0 %v4027_v50  ;;  %1066 = vmatprep.subr.bf16.mxu1 %v4029_v57  ;;  %v4025_v50 = vcombine.high %v630_v44, %v634_v45  ;;  %v4030_v57 = vcombine.low %v637_v46, %v641_v47  ;;  %v4039_v59 = vcombine.high %v645_v54, %v649_v55  ;;  %v1479_v62 = vld [vmem:[%s5274_s1 + $0x8] sm:$0xff]  ;;  %v1494_v31 = vld [vmem:[%s5274_s1 + $0x80] sm:$0xff]  ;;  %v1793_v47 = vunpack.c.h.s8.bf16 %v1505_v39 }
 0x165   : > { %v4040_v6 = vcombine.low %v646_v60, %v650_v61  ;;  %v1487_v16 = vld [vmem:[%s5274_s1 + $0x48] sm:$0xff]  ;;  %v1774_v36 = vunpack.c.h.s8.bf16 %v1494_v31 }
 0x166   : > { %v1503_v38 = vld [vmem:[%s5274_s1 + $0xc8] sm:$0xff] }
 0x167   : > { %1026 = vmatpush1.bf16.msra.mxu0 %v4026_v56  ;;  %1067 = vmatpush1.bf16.msra.mxu1 %v4028_v63  ;;  %v4024_v56 = vcombine.low %v630_v44, %v634_v45  ;;  %v4032_v63 = vcombine.low %v638_v52, %v642_v53  ;;  %v1791_v46 = vunpack.c.h.s8.bf16 %v1503_v38 }
 0x168   : > { %1027 = vmatprep.subr.bf16.mxu0 %v4035_v58  ;;  %1068 = vmatprep.subr.bf16.mxu1 %v4037_v2  ;;  %v4033_v58 = vcombine.high %v638_v52, %v642_v53  ;;  %v4041_v2 = vcombine.high %v646_v60, %v650_v61 }
 0x16b   : > { %1028 = vmatpush1.bf16.msra.mxu0 %v4034_v1  ;;  %1069 = vmatpush1.bf16.msra.mxu1 %v4036_v8  ;;  %v4038_v1 = vcombine.low %v645_v54, %v649_v55  ;;  %v1734_v8 = vunpack.c.l.s8.bf16 %v1478_v5  ;;  %v1510_v54 = vld [vmem:[%s5274_s1 + $0x100] sm:$0xff]  ;;  %v1512_v55 = vld [vmem:[%s5274_s1 + $0x110] sm:$0xff] }
 0x16c   : > { %1095 = vmatprep.subr.bf16.mxu0 %v3983_v3  ;;  %1136 = vmatprep.subr.bf16.mxu1 %v3985_v12  ;;  %v1735_v3 = vunpack.c.l.s8.bf16 %v1479_v62  ;;  %v1743_v12 = vunpack.c.h.s8.bf16 %v1479_v62  ;;  %v1806_v60 = vunpack.c.h.s8.bf16 %v1510_v54  ;;  %v1808_v61 = vunpack.c.h.s8.bf16 %v1512_v55  ;;  %v1519_v62 = vld [vmem:[%s5274_s1 + $0x148] sm:$0xff] }
 0x16e   : > { %1046 = vmatmul.mubr.bf16.vlgmr.msra.gmra.mrb[0].mxu0 %v5332_v9  ;;  %1087 = vmatmul.mubr.bf16.vlgmr.msra.gmra.mrb[0].mxu1 %v5332_v9 }
 0x16f   : > { %1096 = vmatpush1.bf16.msra.mxu0 %v3982_v10  ;;  %1127 = vmatprep.mubr.bf16.mxu0 %v4856_v0  ;;  %v1480_v10 = vld [vmem:[%s5274_s1 + $0x10] sm:$0xff] }
 0x170   : > { %1097 = vmatprep.subr.bf16.mxu0 %v3991_v11  ;;  %1137 = vmatpush1.bf16.msra.mxu1 %v3984_v17  ;;  %v1736_v11 = vunpack.c.l.s8.bf16 %v1480_v10  ;;  %v1744_v15 = vunpack.c.h.s8.bf16 %v1480_v10  ;;  %v1489_v17 = vld [vmem:[%s5274_s1 + $0x58] sm:$0xff] }
 0x171   : > { %1168 = vmatprep.mubr.bf16.mxu1 %v4856_v0  ;;  %1138 = vmatprep.subr.bf16.mxu1 %v3993_v19  ;;  %v4009_v0 = vcombine.high %v614_v29, %v618_v30  ;;  %v1753_v19 = vunpack.c.l.s8.bf16 %v1489_v17  ;;  %v1761_v24 = vunpack.c.h.s8.bf16 %v1489_v17  ;;  %v1528_v17 = vld [vmem:[%s5274_s1 + $0x190] sm:$0xff] }
 0x173   : > { %1098 = vmatpush1.bf16.msra.mxu0 %v3990_v18  ;;  %v1751_v18 = vunpack.c.l.s8.bf16 %v1487_v16 }
 0x174   : > { %1099 = vmatprep.subr.bf16.mxu0 %v3999_v20  ;;  %1139 = vmatpush1.bf16.msra.mxu1 %v3992_v25  ;;  %v1486_v20 = vld [vmem:[%s5274_s1 + $0x40] sm:$0xff] }
 0x175   : > { %1140 = vmatprep.subr.bf16.mxu1 %v4001_v27  ;;  %v1750_v22 = vunpack.c.l.s8.bf16 %v1486_v20  ;;  %v1758_v25 = vunpack.c.h.s8.bf16 %v1486_v20  ;;  %v1495_v27 = vld [vmem:[%s5274_s1 + $0x88] sm:$0xff] }
 0x176   : > { %v1767_v29 = vunpack.c.l.s8.bf16 %v1495_v27 }
 0x177   : > { %1100 = vmatpush1.bf16.msra.mxu0 %v3998_v26  ;;  %v1760_v26 = vunpack.c.h.s8.bf16 %v1488_v21 }
 0x178   : > { %1101 = vmatprep.subr.bf16.mxu0 %v4007_v28  ;;  %1141 = vmatpush1.bf16.msra.mxu1 %v4000_v33  ;;  %v1497_v28 = vld [vmem:[%s5274_s1 + $0x98] sm:$0xff]  ;;  %v1766_v33 = vunpack.c.l.s8.bf16 %v1494_v31 }
 0x179   : > { %1142 = vmatprep.subr.bf16.mxu1 %v4009_v0  ;;  %v1769_v30 = vunpack.c.l.s8.bf16 %v1497_v28  ;;  %v1775_v0 = vunpack.c.h.s8.bf16 %v1495_v27  ;;  %v1534_v27 = vld [vmem:[%s5274_s1 + $0x1c0] sm:$0xff] }
 0x17b   : > { %1102 = vmatpush1.bf16.msra.mxu0 %v4006_v34  ;;  %v1768_v34 = vunpack.c.l.s8.bf16 %v1496_v32 }
 0x17c   : > { %1103 = vmatprep.subr.bf16.mxu0 %v4015_v35  ;;  %1143 = vmatpush1.bf16.msra.mxu1 %v4008_v40  ;;  %v1777_v35 = vunpack.c.h.s8.bf16 %v1497_v28  ;;  %v1783_v40 = vunpack.c.l.s8.bf16 %v1503_v38  ;;  %v1536_v28 = vld [vmem:[%s5274_s1 + $0x1d0] sm:$0xff]  ;;  %v653_v38 = vlaneseq }
 0x17d   : > { %1144 = vmatprep.subr.bf16.mxu1 %v4017_v42  ;;  %v1502_v42 = vld [vmem:[%s5274_s1 + $0xc0] sm:$0xff] }
 0x17e   : > { %v1782_v44 = vunpack.c.l.s8.bf16 %v1502_v42 }
 0x17f   : > { %1104 = vmatpush1.bf16.msra.mxu0 %v4014_v41  ;;  %v1785_v41 = vunpack.c.l.s8.bf16 %v1505_v39  ;;  %v5406_v39 = vshrl.u32 %v653_v38, 7 }
 0x180   : > { %1105 = vmatprep.subr.bf16.mxu0 %v4023_v43  ;;  %1145 = vmatpush1.bf16.msra.mxu1 %v4016_v48  ;;  %v1504_v43 = vld [vmem:[%s5274_s1 + $0xd0] sm:$0xff]  ;;  %v1790_v48 = vunpack.c.h.s8.bf16 %v1502_v42 }
 0x181   : > { %1146 = vmatprep.subr.bf16.mxu1 %v4025_v50  ;;  %v1784_v45 = vunpack.c.l.s8.bf16 %v1504_v43  ;;  %v1511_v50 = vld [vmem:[%s5274_s1 + $0x108] sm:$0xff]  ;;  %v5416_v42 = vsub.s32 1, %v5406_v39 }
 0x182   : > { %v1799_v52 = vunpack.c.l.s8.bf16 %v1511_v50 }
 0x183   : > { %1106 = vmatpush1.bf16.msra.mxu0 %v4022_v49  ;;  %v1792_v49 = vunpack.c.h.s8.bf16 %v1504_v43 }
 0x184   : > { %1107 = vmatprep.subr.bf16.mxu0 %v4031_v51  ;;  %1147 = vmatpush1.bf16.msra.mxu1 %v4024_v56  ;;  %v1513_v51 = vld [vmem:[%s5274_s1 + $0x118] sm:$0xff]  ;;  %v1798_v56 = vunpack.c.l.s8.bf16 %v1510_v54 }
 0x185   : > { %1148 = vmatprep.subr.bf16.mxu1 %v4033_v58  ;;  %v1801_v53 = vunpack.c.l.s8.bf16 %v1513_v51  ;;  %v1807_v58 = vunpack.c.h.s8.bf16 %v1511_v50 }
 0x187   : > { %1108 = vmatpush1.bf16.msra.mxu0 %v4030_v57  ;;  %v1800_v57 = vunpack.c.l.s8.bf16 %v1512_v55 }
 0x188   : > { %1109 = vmatprep.subr.bf16.mxu0 %v4039_v59  ;;  %1149 = vmatpush1.bf16.msra.mxu1 %v4032_v63  ;;  %v1809_v59 = vunpack.c.h.s8.bf16 %v1513_v51  ;;  %v1521_v63 = vld [vmem:[%s5274_s1 + $0x158] sm:$0xff] }
 0x189   : > { %1150 = vmatprep.subr.bf16.mxu1 %v4041_v2  ;;  %v1817_v2 = vunpack.c.l.s8.bf16 %v1521_v63 }
 0x18b   : > { %1110 = vmatpush1.bf16.msra.mxu0 %v4038_v1  ;;  %v1815_v1 = vunpack.c.l.s8.bf16 %v1519_v62 }
 0x18c   : > { %2246 = vmatprep.subr.bf16.mxu0 %v1735_v3  ;;  %1151 = vmatpush1.bf16.msra.mxu1 %v4040_v6  ;;  %v1518_v3 = vld [vmem:[%s5274_s1 + $0x140] sm:$0xff]  ;;  %v1816_v6 = vunpack.c.l.s8.bf16 %v1520_v4 }
 0x18d   : > { %2410 = vmatprep.subr.bf16.mxu1 %v1737_v7  ;;  %v1814_v5 = vunpack.c.l.s8.bf16 %v1518_v3  ;;  %v1823_v7 = vunpack.c.h.s8.bf16 %v1519_v62  ;;  %v1822_v10 = vunpack.c.h.s8.bf16 %v1518_v3 }
 0x18e   : > { %1128 = vmatmul.mubr.bf16.vlgmr.msra.gmra.mrb[4].mxu0 %v5332_v9 }
 0x18f   : > { %2247 = vmatpush1.bf16.msra.mxu0 %v1734_v8  ;;  %1169 = vmatmul.mubr.bf16.vlgmr.msra.gmra.mrb[4].mxu1 %v5332_v9  ;;  %v1759_v9 = vunpack.c.h.s8.bf16 %v1487_v16  ;;  %v1825_v8 = vunpack.c.h.s8.bf16 %v1521_v63  ;;  %v1526_v16 = vld [vmem:[%s5274_s1 + $0x180] sm:$0xff] }
 0x190   : > { %2411 = vmatpush1.bf16.msra.mxu1 %v1736_v11  ;;  %2248 = vmatprep.subr.bf16.mxu0 %v1743_v12  ;;  %v1824_v11 = vunpack.c.h.s8.bf16 %v1520_v4  ;;  %v1527_v12 = vld [vmem:[%s5274_s1 + $0x188] sm:$0xff] }
 0x191   : > { %2412 = vmatprep.subr.bf16.mxu1 %v1745_v13  ;;  %v1529_v13 = vld [vmem:[%s5274_s1 + $0x198] sm:$0xff]  ;;  %v1839_v20 = vunpack.c.h.s8.bf16 %v1527_v12 }
 0x192   : > { %v1841_v21 = vunpack.c.h.s8.bf16 %v1529_v13 }
 0x193   : > { %2249 = vmatpush1.bf16.msra.mxu0 %v1742_v14  ;;  %v1831_v14 = vunpack.c.l.s8.bf16 %v1527_v12 }
 0x194   : > { %2413 = vmatpush1.bf16.msra.mxu1 %v1744_v15  ;;  %2250 = vmatprep.subr.bf16.mxu0 %v1751_v18  ;;  %v1833_v15 = vunpack.c.l.s8.bf16 %v1529_v13  ;;  %v1830_v18 = vunpack.c.l.s8.bf16 %v1526_v16 }
 0x195   : > { %2414 = vmatprep.subr.bf16.mxu1 %v1753_v19  ;;  %v1832_v19 = vunpack.c.l.s8.bf16 %v1528_v17 }
 0x197   : > { %2251 = vmatpush1.bf16.msra.mxu0 %v1750_v22  ;;  %v1838_v22 = vunpack.c.h.s8.bf16 %v1526_v16 }
 0x198   : > { %2415 = vmatpush1.bf16.msra.mxu1 %v1752_v23  ;;  %2252 = vmatprep.subr.bf16.mxu0 %v1759_v9  ;;  %v1840_v23 = vunpack.c.h.s8.bf16 %v1528_v17  ;;  %v1535_v9 = vld [vmem:[%s5274_s1 + $0x1c8] sm:$0xff] }
 0x199   : > { %2416 = vmatprep.subr.bf16.mxu1 %v1761_v24  ;;  %v1537_v24 = vld [vmem:[%s5274_s1 + $0x1d8] sm:$0xff]  ;;  %v1855_v31 = vunpack.c.h.s8.bf16 %v1535_v9 }
 0x19a   : > { %v1857_v32 = vunpack.c.h.s8.bf16 %v1537_v24 }
 0x19b   : > { %2253 = vmatpush1.bf16.msra.mxu0 %v1758_v25  ;;  %v1847_v25 = vunpack.c.l.s8.bf16 %v1535_v9 }
 0x19c   : > { %2417 = vmatpush1.bf16.msra.mxu1 %v1760_v26  ;;  %2254 = vmatprep.subr.bf16.mxu0 %v1767_v29  ;;  %v1849_v26 = vunpack.c.l.s8.bf16 %v1537_v24  ;;  %v1846_v29 = vunpack.c.l.s8.bf16 %v1534_v27 }
 0x19d   : > { %2418 = vmatprep.subr.bf16.mxu1 %v1769_v30  ;;  %v1848_v30 = vunpack.c.l.s8.bf16 %v1536_v28 }
 0x19f   : > { %2255 = vmatpush1.bf16.msra.mxu0 %v1766_v33  ;;  %v1854_v33 = vunpack.c.h.s8.bf16 %v1534_v27 }
 0x1a0   : > { %2419 = vmatpush1.bf16.msra.mxu1 %v1768_v34  ;;  %2256 = vmatprep.subr.bf16.mxu0 %v1775_v0  ;;  %v1856_v34 = vunpack.c.h.s8.bf16 %v1536_v28  ;;  %v5399_v0 = vld [vmem:[%s5274_s1 + $0x208] sm:$0xff] }
 0x1a1   : > { %2420 = vmatprep.subr.bf16.mxu1 %v1777_v35  ;;  %v5402_v35 = vld [vmem:[%s5274_s1 + $0x218] sm:$0xff] }
 0x1a3   : > { %2257 = vmatpush1.bf16.msra.mxu0 %v1774_v36  ;;  %v1863_v36 = vunpack.c.l.s8.bf16 %v5399_v0 }
 0x1a4   : > { %2421 = vmatpush1.bf16.msra.mxu1 %v1776_v37  ;;  %2258 = vmatprep.subr.bf16.mxu0 %v1783_v40  ;;  %v1865_v37 = vunpack.c.l.s8.bf16 %v5402_v35  ;;  %v5409_v40 = vsub.s32 0, %v5406_v39 }
 0x1a5   : > { %2422 = vmatprep.subr.bf16.mxu1 %v1785_v41  ;;  %v5413_v41 = vld [vmem:[%s485_s26] sm:$0xff] }
 0x1a6   : > { %v656_v43 = vrot.slane %v5413_v41, %v5409_v40 }
 0x1a7   : > { %2259 = vmatpush1.bf16.msra.mxu0 %v1782_v44  ;;  %v5421_v44 = vsub.s32 3, %v5406_v39 }
 0x1a8   : > { %2423 = vmatpush1.bf16.msra.mxu1 %v1784_v45  ;;  %2260 = vmatprep.subr.bf16.mxu0 %v1791_v46  ;;  %v660_v45 = vrot.slane %v5413_v41, %v5416_v42 }
 0x1a9   : > { %2424 = vmatprep.subr.bf16.mxu1 %v1793_v47 }
 0x1ab   : > { %2261 = vmatpush1.bf16.msra.mxu0 %v1790_v48 }
 0x1ac   : > { %2425 = vmatpush1.bf16.msra.mxu1 %v1792_v49  ;;  %2262 = vmatprep.subr.bf16.mxu0 %v1799_v52  ;;  %v668_v49 = vrot.slane %v5413_v41, %v5421_v44 }
 0x1ad   : > { %2426 = vmatprep.subr.bf16.mxu1 %v1801_v53 }
 0x1af   : > { %2263 = vmatpush1.bf16.msra.mxu0 %v1798_v56 }
 0x1b0   : > { %2427 = vmatpush1.bf16.msra.mxu1 %v1800_v57  ;;  %2264 = vmatprep.subr.bf16.mxu0 %v1807_v58 }
 0x1b1   : > { %2428 = vmatprep.subr.bf16.mxu1 %v1809_v59 }
 0x1b3   : > { %2265 = vmatpush1.bf16.msra.mxu0 %v1806_v60 }
 0x1b4   : > { %2429 = vmatpush1.bf16.msra.mxu1 %v1808_v61  ;;  %2266 = vmatprep.subr.bf16.mxu0 %v1815_v1 }
 0x1b5   : > { %2430 = vmatprep.subr.bf16.mxu1 %v1817_v2 }
 0x1b7   : > { %2267 = vmatpush1.bf16.msra.mxu0 %v1814_v5 }
 0x1b8   : > { %2431 = vmatpush1.bf16.msra.mxu1 %v1816_v6  ;;  %2268 = vmatprep.subr.bf16.mxu0 %v1823_v7  ;;  %v5428_v6 = vsub.s32 2, %v5406_v39 }
 0x1b9   : > { %2432 = vmatprep.subr.bf16.mxu1 %v1825_v8 }
 0x1bb   : > { %2269 = vmatpush1.bf16.msra.mxu0 %v1822_v10 }
 0x1bc   : > { %2433 = vmatpush1.bf16.msra.mxu1 %v1824_v11  ;;  %2270 = vmatprep.subr.bf16.mxu0 %v1831_v14  ;;  %v664_v14 = vrot.slane %v5413_v41, %v5428_v6 }
 0x1bd   : > { %2434 = vmatprep.subr.bf16.mxu1 %v1833_v15 }
 0x1bf   : > { %2271 = vmatpush1.bf16.msra.mxu0 %v1830_v18 }
 0x1c0   : > { %2435 = vmatpush1.bf16.msra.mxu1 %v1832_v19  ;;  %2272 = vmatprep.subr.bf16.mxu0 %v1839_v20 }
 0x1c1   : > { %2436 = vmatprep.subr.bf16.mxu1 %v1841_v21 }
 0x1c3   : > { %2273 = vmatpush1.bf16.msra.mxu0 %v1838_v22 }
 0x1c4   : > { %2437 = vmatpush1.bf16.msra.mxu1 %v1840_v23  ;;  %2274 = vmatprep.subr.bf16.mxu0 %v1847_v25 }
 0x1c5   : > { %2438 = vmatprep.subr.bf16.mxu1 %v1849_v26 }
 0x1c7   : > { %2275 = vmatpush1.bf16.msra.mxu0 %v1846_v29 }
 0x1c8   : > { %2439 = vmatpush1.bf16.msra.mxu1 %v1848_v30  ;;  %2276 = vmatprep.subr.bf16.mxu0 %v1855_v31 }
 0x1c9   : > { %2440 = vmatprep.subr.bf16.mxu1 %v1857_v32 }
 0x1cb   : > { %2277 = vmatpush1.bf16.msra.mxu0 %v1854_v33  ;;  %v5448_v33 = vsub.s32 5, %v5406_v39 }
 0x1cc   : > { %2441 = vmatpush1.bf16.msra.mxu1 %v1856_v34  ;;  %2287 = vmatprep.subr.bf16.mxu0 %v1863_v36 }
 0x1cd   : > { %2451 = vmatprep.subr.bf16.mxu1 %v1865_v37 }
 0x241   : > { %v1047_v46 = vpop.f32.mrb[0].mxu0  ;;  %v1088_v54 = vpop.f32.mrb[0].mxu1 }
 0x242   : > { %v1048_v47 = vadd.f32 %v1047_v46, %v656_v43  ;;  %v1049_v48 = vpop.f32.mrb[1].mxu0  ;;  %v1090_v56 = vpop.f32.mrb[1].mxu1  ;;  %v5438_v21 = vadd.f32 %v1088_v54, %v664_v14 }
 0x243   : > { %v1050_v50 = vadd.f32 %v1049_v48, %v660_v45  ;;  %v1051_v51 = vpop.f32.mrb[2].mxu0  ;;  %v1091_v58 = vadd.f32 %v1090_v56, %v668_v49  ;;  %v1092_v59 = vpop.f32.mrb[2].mxu1 }
 0x244   : > { %v1177_v52 = vrot.slane %v1048_v47, 4  ;;  %v1052_v53 = vpop.f32.mrb[3].mxu0  ;;  %v1093_v61 = vpop.f32.mrb[3].mxu1  ;;  %v1189_v27 = vrot.slane %v5438_v21, 4 }
 0x245   : > { %v1183_v55 = vrot.slane %v1050_v50, 4  ;;  %v1195_v63 = vrot.slane %v1091_v58, 4 }
 0x246   : > { %v1178_v57 = vadd.f32 %v1177_v52, %v1048_v47  ;;  %v1190_v36 = vadd.f32 %v1189_v27, %v5438_v21 }
 0x247   : > { %v1184_v60 = vadd.f32 %v1183_v55, %v1050_v50  ;;  %v1196_v3 = vadd.f32 %v1195_v63, %v1091_v58 }
 0x248   : > { %v1179_v62 = vrot.slane %v1178_v57, 2  ;;  %v1191_v49 = vrot.slane %v1190_v36, 2 }
 0x249   : > { %v1185_v1 = vrot.slane %v1184_v60, 2  ;;  %v1197_v7 = vrot.slane %v1196_v3, 2 }
 0x24a   : > { %v1180_v2 = vadd.f32 %v1179_v62, %v1178_v57 }
 0x24b   : > { %v1186_v4 = vadd.f32 %v1185_v1, %v1184_v60  ;;  %v1198_v11 = vadd.f32 %v1197_v7, %v1196_v3  ;;  %v1192_v60 = vadd.f32 %v1191_v49, %v1190_v36 }
 0x24c   : > { %v1181_v5 = vrot.slane %v1180_v2, 1 }
 0x24d   : > { %v1187_v8 = vrot.slane %v1186_v4, 1  ;;  %v1199_v15 = vrot.slane %v1198_v11, 1 }
 0x24e   : > { %v1182_v10 = vadd.f32 %v1181_v5, %v1180_v2 }
 0x24f   : > { %v1188_v12 = vadd.f32 %v1187_v8, %v1186_v4  ;;  %v1200_v18 = vadd.f32 %v1199_v15, %v1198_v11 }
 0x250   : > { %v1226_v13 = vmul.f32 0.125, %v1182_v10  ;;  %v1193_v10 = vrot.slane %v1192_v60, 1 }
 0x251   : > { %v1227_v16 = vmul.f32 0.125, %v1188_v12  ;;  %v1229_v22 = vmul.f32 0.125, %v1200_v18 }
 0x252   : > { %v5432_v17 = vsub.f32 %v1048_v47, %v1226_v13  ;;  %v676_v47 = vrot.slane %v5413_v41, %v5448_v33  ;;  %v5461_v13 = vld [vmem:[%s494_s12] sm:$0xff]  ;;  %v1194_v15 = vadd.f32 %v1193_v10, %v1192_v60 }
 0x253   : > { %v5434_v19 = vsub.f32 %v1050_v50, %v1227_v16  ;;  %v5442_v24 = vsub.f32 %v1091_v58, %v1229_v22  ;;  %v1327_v16 = vrot.slane %v5461_v13, %v5409_v40 }
 0x254   : > { %v1242_v20 = vmul.f32 %v5432_v17, %v5432_v17 }
 0x255   : > { %v1243_v23 = vmul.f32 %v5434_v19, %v5434_v19  ;;  %v1245_v28 = vmul.f32 %v5442_v24, %v5442_v24 }
 0x256   : > { %v1250_v9 = vrot.slane %v1242_v20, 4 }
 0x257   : > { %v1256_v25 = vrot.slane %v1243_v23, 4  ;;  %v1268_v31 = vrot.slane %v1245_v28, 4 }
 0x258   : > { %v1251_v26 = vadd.f32 %v1250_v9, %v1242_v20  ;;  %v1331_v20 = vrot.slane %v5461_v13, %v5416_v42  ;;  %v1228_v9 = vmul.f32 0.125, %v1194_v15  ;;  %v1552_v15 = vld [vmem:[%s5274_s1 + $0x250] sm:$0xff] }
 0x259   : > { %v1257_v29 = vadd.f32 %v1256_v25, %v1243_v23  ;;  %v1269_v37 = vadd.f32 %v1268_v31, %v1245_v28  ;;  %v5469_v25 = vld [vmem:[%s503_s25] sm:$0xff]  ;;  %v1339_v28 = vrot.slane %v5461_v13, %v5421_v44 }
 0x25a   : > { %v1252_v30 = vrot.slane %v1251_v26, 2 }
 0x25b   : > { %v1258_v32 = vrot.slane %v1257_v29, 2  ;;  %v1270_v45 = vrot.slane %v1269_v37, 2 }
 0x25c   : > { %v1253_v34 = vadd.f32 %v1252_v30, %v1251_v26 }
 0x25d   : > { %v1259_v38 = vadd.f32 %v1258_v32, %v1257_v29  ;;  %v1271_v50 = vadd.f32 %v1270_v45, %v1269_v37  ;;  %v1417_v32 = vrot.slane %v5469_v25, %v5409_v40  ;;  %v5478_v37 = vsub.f32 %v5438_v21, %v1228_v9 }
 0x25e   : > { %v1254_v43 = vrot.slane %v1253_v34, 1 }
 0x25f   : > { %v1260_v46 = vrot.slane %v1259_v38, 1  ;;  %v1272_v54 = vrot.slane %v1271_v50, 1  ;;  %v1244_v21 = vmul.f32 %v5478_v37, %v5478_v37 }
 0x260   : > { %v1255_v48 = vadd.f32 %v1254_v43, %v1253_v34 }
 0x261   : > { %v1261_v51 = vadd.f32 %v1260_v46, %v1259_v38  ;;  %v5453_v52 = vpop.f32.mrb[4].mxu0  ;;  %v1273_v61 = vadd.f32 %v1272_v54, %v1271_v50  ;;  %v1421_v38 = vrot.slane %v5469_v25, %v5416_v42  ;;  %v1429_v50 = vrot.slane %v5469_v25, %v5421_v44 }
 0x262   : > { %v1298_v53 = vmul.f32 0.125, %v1255_v48  ;;  %v1131_v55 = vpop.f32.mrb[5].mxu0  ;;  %v5455_v63 = vpop.f32.mrb[4].mxu1 }
 0x263   : > { %v1299_v56 = vmul.f32 0.125, %v1261_v51  ;;  %v1132_v57 = vadd.f32 %v1131_v55, %v676_v47  ;;  %v1133_v58 = vpop.f32.mrb[6].mxu0  ;;  %v5457_v3 = vpop.f32.mrb[5].mxu1  ;;  %v1301_v4 = vmul.f32 0.125, %v1273_v61 }
 0x264   : > { %v1306_v59 = vadd.f32 1e-05, %v1298_v53  ;;  %v1134_v62 = vpop.f32.mrb[7].mxu0  ;;  %v1174_v5 = vpop.f32.mrb[6].mxu1  ;;  %v1542_v53 = vld [vmem:[%s5274_s1 + $0x200] sm:$0xff] }
 0x265   : > { %v1307_v1 = vadd.f32 1e-05, %v1299_v56  ;;  %v1207_v2 = vrot.slane %v1132_v57, 4  ;;  %v1175_v8 = vpop.f32.mrb[7].mxu1  ;;  %v1309_v11 = vadd.f32 1e-05, %v1301_v4  ;;  %v1871_v62 = vunpack.c.h.s8.bf16 %v5399_v0 }
 0x266   : > { %4379 = vrsqrt.f32 %v1306_v59  ;;  %v1262_v59 = vrot.slane %v1244_v21, 4  ;;  %v1551_v5 = vld [vmem:[%s5274_s1 + $0x248] sm:$0xff] }
 0x267   : > { %4381 = vrsqrt.f32 %v1307_v1  ;;  %v1208_v7 = vadd.f32 %v1207_v2, %v1132_v57 }
 0x268   : > { %4383 = vrsqrt.f32 %v1309_v11  ;;  %v1263_v0 = vadd.f32 %v1262_v59, %v1244_v21  ;;  %v1879_v11 = vunpack.c.l.s8.bf16 %v1551_v5 }
 0x269   : > { %v1209_v12 = vrot.slane %v1208_v7, 2 }
 0x26b   : > { %v1210_v14 = vadd.f32 %v1209_v12, %v1208_v7  ;;  %v1553_v7 = vld [vmem:[%s5274_s1 + $0x258] sm:$0xff] }
 0x26c   : > { %v1881_v12 = vunpack.c.l.s8.bf16 %v1553_v7  ;;  %v1889_v9 = vunpack.c.h.s8.bf16 %v1553_v7 }
 0x26d   : > { %v1211_v18 = vrot.slane %v1210_v14, 1 }
 0x26f   : > { %v1212_v22 = vadd.f32 %v1211_v18, %v1210_v14  ;;  %v1550_v14 = vld [vmem:[%s5274_s1 + $0x240] sm:$0xff]  ;;  %v1264_v18 = vrot.slane %v1263_v0, 2 }
 0x270   : > { %v4380_v23 = vpop.eup %4379 }
 0x271   : > { %v4382_v26 = vpop.eup %4381  ;;  %v1364_v27 = vmul.f32 %v4380_v23, %v1327_v16  ;;  %v1231_v29 = vmul.f32 0.125, %v1212_v22  ;;  %v1880_v22 = vunpack.c.l.s8.bf16 %v1552_v15  ;;  %v1887_v23 = vunpack.c.h.s8.bf16 %v1551_v5 }
 0x272   : > { %v1365_v30 = vmul.f32 %v4382_v26, %v1331_v20  ;;  %v4384_v34 = vpop.eup %4383  ;;  %v1878_v20 = vunpack.c.l.s8.bf16 %v1550_v14 }
 0x273   : > { %v1375_v31 = vrot.slane %v1364_v27, %v5409_v40  ;;  %v1367_v45 = vmul.f32 %v4384_v34, %v1339_v28  ;;  %v5483_v46 = vsub.f32 %v1132_v57, %v1231_v29  ;;  %v1862_v57 = vunpack.c.l.s8.bf16 %v1542_v53  ;;  %v1559_v27 = vld [vmem:[%s5274_s1 + $0x288] sm:$0xff]  ;;  %v1561_v28 = vld [vmem:[%s5274_s1 + $0x298] sm:$0xff] }
 0x274   : > { %v1379_v36 = vrot.slane %v1365_v30, %v5409_v40  ;;  %v1265_v29 = vadd.f32 %v1264_v18, %v1263_v0  ;;  %v1886_v30 = vunpack.c.h.s8.bf16 %v1550_v14  ;;  %v1897_v34 = vunpack.c.l.s8.bf16 %v1561_v28  ;;  %v1575_v14 = vld [vmem:[%s5274_s1 + $0x308] sm:$0xff] }
 0x275   : > { %v1404_v43 = vmul.f32 %v1375_v31, %v5432_v17  ;;  %v1387_v48 = vrot.slane %v1367_v45, %v5409_v40  ;;  %v1544_v17 = vld [vmem:[%s5274_s1 + $0x210] sm:$0xff]  ;;  %v1888_v31 = vunpack.c.h.s8.bf16 %v1552_v15  ;;  %v1903_v21 = vunpack.c.h.s8.bf16 %v1559_v27  ;;  %v1577_v15 = vld [vmem:[%s5274_s1 + $0x318] sm:$0xff] }
 0x276   : > { %v1405_v47 = vmul.f32 %v1379_v36, %v5434_v19  ;;  %v1247_v19 = vmul.f32 %v5483_v46, %v5483_v46  ;;  %v1864_v61 = vunpack.c.l.s8.bf16 %v1544_v17  ;;  %v1872_v10 = vunpack.c.h.s8.bf16 %v1544_v17  ;;  %v1558_v36 = vld [vmem:[%s5274_s1 + $0x280] sm:$0xff] }
 0x277   : > { %v1454_v49 = vadd.f32 %v1417_v32, %v1404_v43  ;;  %v1407_v54 = vmul.f32 %v1387_v48, %v5442_v24  ;;  %v1873_v24 = vunpack.c.h.s8.bf16 %v5402_v35  ;;  %v1870_v35 = vunpack.c.h.s8.bf16 %v1542_v53 }
 0x278   : > { %v1455_v51 = vadd.f32 %v1421_v38, %v1405_v47  ;;  %v1280_v4 = vrot.slane %v1247_v19, 4  ;;  %v1895_v32 = vunpack.c.l.s8.bf16 %v1559_v27  ;;  %v1560_v38 = vld [vmem:[%s5274_s1 + $0x290] sm:$0xff]  ;;  %v1266_v45 = vrot.slane %v1265_v29, 1 }
 0x279   : > { %v1462_v55 = vmax.f32 %v1454_v49, 0.0  ;;  %v1457_v58 = vadd.f32 %v1429_v50, %v1407_v54  ;;  %v1894_v47 = vunpack.c.l.s8.bf16 %v1558_v36  ;;  %v1896_v48 = vunpack.c.l.s8.bf16 %v1560_v38  ;;  %v1567_v54 = vld [vmem:[%s5274_s1 + $0x2c8] sm:$0xff]  ;;  %v1576_v27 = vld [vmem:[%s5274_s1 + $0x310] sm:$0xff] }
 0x27a   : > { %v1463_v56 = vmax.f32 %v1455_v51, 0.0  ;;  %v1281_v16 = vadd.f32 %v1280_v4, %v1247_v19  ;;  %v5519_v49 = vsub.s32 4, %v5406_v39  ;;  %v1905_v51 = vunpack.c.h.s8.bf16 %v1561_v28 }
 0x27b   : > { %v5499_v1 = vpack.c.bf16 %v1462_v55, %v1462_v55  ;;  %v1465_v2 = vmax.f32 %v1457_v58, 0.0  ;;  %v5522_v53 = vsub.s32 7, %v5406_v39  ;;  %v1569_v55 = vld [vmem:[%s5274_s1 + $0x2d8] sm:$0xff]  ;;  %v1267_v17 = vadd.f32 %v1266_v45, %v1265_v29 }
 0x27c   : > { %v5496_v60 = vpack.c.bf16 %v1463_v56, %v1463_v56  ;;  %v1282_v26 = vrot.slane %v1281_v16, 2  ;;  %v672_v19 = vrot.slane %v5413_v41, %v5519_v49  ;;  %v1902_v56 = vunpack.c.h.s8.bf16 %v1558_v36  ;;  %v1583_v36 = vld [vmem:[%s5274_s1 + $0x348] sm:$0xff] }
 0x27d   : > { %v5508_v8 = vpack.c.bf16 %v1465_v2, %v1465_v2  ;;  %v1911_v59 = vunpack.c.l.s8.bf16 %v1567_v54  ;;  %v684_v2 = vrot.slane %v5413_v41, %v5522_v53  ;;  %v1300_v4 = vmul.f32 0.125, %v1267_v17 }
 0x27e   : > { %2278 = vmatprep.mubr.bf16.mxu0 %v5496_v60  ;;  %2442 = vmatprep.mubr.bf16.mxu1 %v5496_v60  ;;  %v1283_v43 = vadd.f32 %v1282_v26, %v1281_v16  ;;  %v5533_v5 = vadd.f32 %v5453_v52, %v672_v19  ;;  %v1574_v26 = vld [vmem:[%s5274_s1 + $0x300] sm:$0xff] }
 0x27f   : > { %2279 = vmatmul.mubr.bf16.vlgmr.msra.gmra.mrb[8].mxu0 %v5499_v1  ;;  %2443 = vmatmul.mubr.bf16.vlgmr.msra.gmra.mrb[8].mxu1 %v5499_v1  ;;  %v1308_v16 = vadd.f32 1e-05, %v1300_v4  ;;  %v1926_v29 = vunpack.c.l.s8.bf16 %v1574_v26  ;;  %v1934_v45 = vunpack.c.h.s8.bf16 %v1574_v26 }
 0x280   : > { %2288 = vmatpush1.bf16.msra.mxu0 %v1862_v57  ;;  %2452 = vmatpush1.bf16.msra.mxu1 %v1864_v61  ;;  %v1284_v50 = vrot.slane %v1283_v43, 1  ;;  %v1904_v57 = vunpack.c.h.s8.bf16 %v1560_v38  ;;  %v1913_v61 = vunpack.c.l.s8.bf16 %v1569_v55  ;;  %v1201_v52 = vrot.slane %v5533_v5, 4  ;;  %v1585_v38 = vld [vmem:[%s5274_s1 + $0x358] sm:$0xff] }
 0x281   : > { %2289 = vmatprep.subr.bf16.mxu0 %v1871_v62  ;;  %2453 = vmatprep.subr.bf16.mxu1 %v1873_v24  ;;  %v1566_v62 = vld [vmem:[%s5274_s1 + $0x2c0] sm:$0xff]  ;;  %v1568_v24 = vld [vmem:[%s5274_s1 + $0x2d0] sm:$0xff]  ;;  %4385 = vrsqrt.f32 %v1308_v16 }
 0x282   : > { %2319 = vmatprep.mubr.bf16.mxu0 %v5508_v8  ;;  %2483 = vmatprep.mubr.bf16.mxu1 %v5508_v8  ;;  %v1285_v58 = vadd.f32 %v1284_v50, %v1283_v43  ;;  %v1910_v7 = vunpack.c.l.s8.bf16 %v1566_v62  ;;  %v1912_v0 = vunpack.c.l.s8.bf16 %v1568_v24  ;;  %v1918_v18 = vunpack.c.h.s8.bf16 %v1566_v62  ;;  %v1592_v16 = vld [vmem:[%s5274_s1 + $0x390] sm:$0xff] }
 0x283   : > { %v1202_v28 = vadd.f32 %v1201_v52, %v5533_v5  ;;  %v1945_v50 = vunpack.c.l.s8.bf16 %v1585_v38  ;;  %v1347_v62 = vrot.slane %v5461_v13, %v5448_v33 }
 0x284   : > { %2290 = vmatpush1.bf16.msra.mxu0 %v1870_v35  ;;  %2454 = vmatpush1.bf16.msra.mxu1 %v1872_v10  ;;  %v1303_v35 = vmul.f32 0.125, %v1285_v58  ;;  %v1919_v10 = vunpack.c.h.s8.bf16 %v1567_v54  ;;  %v1953_v58 = vunpack.c.h.s8.bf16 %v1585_v38 }
 0x285   : > { %2291 = vmatprep.subr.bf16.mxu0 %v1879_v11  ;;  %2455 = vmatprep.subr.bf16.mxu1 %v1881_v12  ;;  %v1921_v11 = vunpack.c.h.s8.bf16 %v1569_v55  ;;  %v5536_v12 = vadd.f32 %v5457_v3, %v684_v2  ;;  %v1203_v43 = vrot.slane %v1202_v28, 2  ;;  %v1593_v2 = vld [vmem:[%s5274_s1 + $0x398] sm:$0xff] }
 0x287   : > { %v1219_v3 = vrot.slane %v5536_v12, 4  ;;  %v1204_v55 = vadd.f32 %v1203_v43, %v1202_v28 }
 0x288   : > { %2292 = vmatpush1.bf16.msra.mxu0 %v1878_v20  ;;  %2456 = vmatpush1.bf16.msra.mxu1 %v1880_v22  ;;  %v1920_v20 = vunpack.c.h.s8.bf16 %v1568_v24  ;;  %v1311_v22 = vadd.f32 1e-05, %v1303_v35  ;;  %v1591_v24 = vld [vmem:[%s5274_s1 + $0x388] sm:$0xff] }
 0x289   : > { %2293 = vmatprep.subr.bf16.mxu0 %v1887_v23  ;;  %2457 = vmatprep.subr.bf16.mxu1 %v1889_v9  ;;  %v1927_v23 = vunpack.c.l.s8.bf16 %v1575_v14  ;;  %v1929_v9 = vunpack.c.l.s8.bf16 %v1577_v15  ;;  %v1967_v26 = vunpack.c.h.s8.bf16 %v1591_v24 }
 0x28a   : > { %4387 = vrsqrt.f32 %v1311_v22 }
 0x28c   : > { %2294 = vmatpush1.bf16.msra.mxu0 %v1886_v30  ;;  %2458 = vmatpush1.bf16.msra.mxu1 %v1888_v31  ;;  %v1928_v30 = vunpack.c.l.s8.bf16 %v1576_v27  ;;  %v1935_v31 = vunpack.c.h.s8.bf16 %v1575_v14  ;;  %v1961_v14 = vunpack.c.l.s8.bf16 %v1593_v2 }
 0x28d   : > { %2295 = vmatprep.subr.bf16.mxu0 %v1895_v32  ;;  %2459 = vmatprep.subr.bf16.mxu1 %v1897_v34  ;;  %v1937_v32 = vunpack.c.h.s8.bf16 %v1577_v15  ;;  %v1220_v34 = vadd.f32 %v1219_v3, %v5536_v12  ;;  %v1590_v15 = vld [vmem:[%s5274_s1 + $0x380] sm:$0xff] }
 0x28e   : > { %v1958_v22 = vunpack.c.l.s8.bf16 %v1590_v15 }
 0x28f   : > { %v1221_v54 = vrot.slane %v1220_v34, 2 }
 0x290   : > { %2296 = vmatpush1.bf16.msra.mxu0 %v1894_v47  ;;  %2460 = vmatpush1.bf16.msra.mxu1 %v1896_v48  ;;  %v1936_v47 = vunpack.c.h.s8.bf16 %v1576_v27  ;;  %v1943_v48 = vunpack.c.l.s8.bf16 %v1583_v36  ;;  %v1969_v27 = vunpack.c.h.s8.bf16 %v1593_v2 }
 0x291   : > { %2297 = vmatprep.subr.bf16.mxu0 %v1903_v21  ;;  %2461 = vmatprep.subr.bf16.mxu1 %v1905_v51  ;;  %v1582_v21 = vld [vmem:[%s5274_s1 + $0x340] sm:$0xff]  ;;  %v1584_v51 = vld [vmem:[%s5274_s1 + $0x350] sm:$0xff] }
 0x292   : > { %v1942_v17 = vunpack.c.l.s8.bf16 %v1582_v21  ;;  %v1944_v19 = vunpack.c.l.s8.bf16 %v1584_v51  ;;  %v1952_v35 = vunpack.c.h.s8.bf16 %v1584_v51  ;;  %v1437_v51 = vrot.slane %v5469_v25, %v5448_v33 }
 0x294   : > { %2298 = vmatpush1.bf16.msra.mxu0 %v1902_v56  ;;  %2462 = vmatpush1.bf16.msra.mxu1 %v1904_v57  ;;  %v1335_v56 = vrot.slane %v5461_v13, %v5428_v6  ;;  %v1951_v57 = vunpack.c.h.s8.bf16 %v1583_v36  ;;  %v1425_v36 = vrot.slane %v5469_v25, %v5428_v6 }
 0x295   : > { %2299 = vmatprep.subr.bf16.mxu0 %v1911_v59  ;;  %2463 = vmatprep.subr.bf16.mxu1 %v1913_v61  ;;  %v1222_v59 = vadd.f32 %v1221_v54, %v1220_v34  ;;  %v4386_v61 = vpop.eup %4385  ;;  %v1968_v34 = vunpack.c.h.s8.bf16 %v1592_v16 }
 0x296   : > { %v4388_v4 = vpop.eup %4387 }
 0x297   : > { %v1223_v52 = vrot.slane %v1222_v59, 1 }
 0x298   : > { %2300 = vmatpush1.bf16.msra.mxu0 %v1910_v7  ;;  %2464 = vmatpush1.bf16.msra.mxu1 %v1912_v0  ;;  %v1205_v7 = vrot.slane %v1204_v55, 1  ;;  %v1950_v0 = vunpack.c.h.s8.bf16 %v1582_v21 }
 0x299   : > { %2301 = vmatprep.subr.bf16.mxu0 %v1919_v10  ;;  %2465 = vmatprep.subr.bf16.mxu1 %v1921_v11  ;;  %v1366_v10 = vmul.f32 %v4386_v61, %v1335_v56  ;;  %v1959_v11 = vunpack.c.l.s8.bf16 %v1591_v24  ;;  %v1224_v3 = vadd.f32 %v1223_v52, %v1222_v59 }
 0x29c   : > { %2302 = vmatpush1.bf16.msra.mxu0 %v1918_v18  ;;  %2466 = vmatpush1.bf16.msra.mxu1 %v1920_v20  ;;  %v1369_v18 = vmul.f32 %v4388_v4, %v1347_v62  ;;  %v1206_v20 = vadd.f32 %v1205_v7, %v1204_v55  ;;  %v1606_v7 = vld [vmem:[%s5274_s1 + $0x400] sm:$0xff] }
 0x29d   : > { %2303 = vmatprep.subr.bf16.mxu0 %v1927_v23  ;;  %2467 = vmatprep.subr.bf16.mxu1 %v1929_v9  ;;  %v1960_v23 = vunpack.c.l.s8.bf16 %v1592_v16  ;;  %v1383_v9 = vrot.slane %v1366_v10, %v5409_v40 }
 0x29e   : > { %v1395_v28 = vrot.slane %v1369_v18, %v5409_v40 }
 0x29f   : > { %v1406_v38 = vmul.f32 %v1383_v9, %v5478_v37 }
 0x2a0   : > { %2304 = vmatpush1.bf16.msra.mxu0 %v1926_v29  ;;  %2468 = vmatpush1.bf16.msra.mxu1 %v1928_v30  ;;  %v1599_v29 = vld [vmem:[%s5274_s1 + $0x3c8] sm:$0xff]  ;;  %v1601_v30 = vld [vmem:[%s5274_s1 + $0x3d8] sm:$0xff]  ;;  %v1409_v21 = vmul.f32 %v1395_v28, %v5483_v46 }
 0x2a1   : > { %2305 = vmatprep.subr.bf16.mxu0 %v1935_v31  ;;  %2469 = vmatprep.subr.bf16.mxu1 %v1937_v32  ;;  %v1230_v31 = vmul.f32 0.125, %v1206_v20  ;;  %v1966_v32 = vunpack.c.h.s8.bf16 %v1590_v15  ;;  %v1975_v43 = vunpack.c.l.s8.bf16 %v1599_v29  ;;  %v1456_v56 = vadd.f32 %v1425_v36, %v1406_v38  ;;  %v1607_v46 = vld [vmem:[%s5274_s1 + $0x408] sm:$0xff] }
 0x2a2   : > { %v1459_v59 = vadd.f32 %v1437_v51, %v1409_v21  ;;  %v1991_v2 = vunpack.c.l.s8.bf16 %v1607_v46  ;;  %v1999_v16 = vunpack.c.h.s8.bf16 %v1607_v46  ;;  %v1615_v20 = vld [vmem:[%s5274_s1 + $0x448] sm:$0xff] }
 0x2a3   : > { %v5571_v54 = vsub.f32 %v5533_v5, %v1230_v31  ;;  %v1464_v24 = vmax.f32 %v1456_v56, 0.0  ;;  %v2015_v38 = vunpack.c.h.s8.bf16 %v1615_v20 }
 0x2a4   : > { %2306 = vmatpush1.bf16.msra.mxu0 %v1934_v45  ;;  %2470 = vmatpush1.bf16.msra.mxu1 %v1936_v47  ;;  %v1977_v45 = vunpack.c.l.s8.bf16 %v1601_v30  ;;  %v1598_v47 = vld [vmem:[%s5274_s1 + $0x3c0] sm:$0xff] }
 0x2a5   : > { %2307 = vmatprep.subr.bf16.mxu0 %v1943_v48  ;;  %2471 = vmatprep.subr.bf16.mxu1 %v1945_v50  ;;  %v1600_v48 = vld [vmem:[%s5274_s1 + $0x3d0] sm:$0xff]  ;;  %v1233_v50 = vmul.f32 0.125, %v1224_v3  ;;  %v1974_v37 = vunpack.c.l.s8.bf16 %v1598_v47  ;;  %v1246_v5 = vmul.f32 %v5571_v54, %v5571_v54  ;;  %v1982_v61 = vunpack.c.h.s8.bf16 %v1598_v47  ;;  %v1623_v47 = vld [vmem:[%s5274_s1 + $0x488] sm:$0xff] }
 0x2a6   : > { %v1976_v55 = vunpack.c.l.s8.bf16 %v1600_v48  ;;  %v1984_v62 = vunpack.c.h.s8.bf16 %v1600_v48  ;;  %v5584_v15 = vpack.c.bf16 %v1464_v24, %v1464_v24  ;;  %v2007_v3 = vunpack.c.l.s8.bf16 %v1615_v20  ;;  %v1625_v48 = vld [vmem:[%s5274_s1 + $0x498] sm:$0xff] }
 0x2a7   : > { %v1274_v10 = vrot.slane %v1246_v5, 4  ;;  %v2033_v24 = vunpack.c.h.s8.bf16 %v1625_v48 }
 0x2a8   : > { %2308 = vmatpush1.bf16.msra.mxu0 %v1942_v17  ;;  %2472 = vmatpush1.bf16.msra.mxu1 %v1944_v19  ;;  %v1983_v17 = vunpack.c.h.s8.bf16 %v1599_v29  ;;  %v1985_v19 = vunpack.c.h.s8.bf16 %v1601_v30  ;;  %v1614_v29 = vld [vmem:[%s5274_s1 + $0x440] sm:$0xff]  ;;  %v1616_v30 = vld [vmem:[%s5274_s1 + $0x450] sm:$0xff] }
 0x2a9   : > { %2309 = vmatprep.subr.bf16.mxu0 %v1951_v57  ;;  %2473 = vmatprep.subr.bf16.mxu1 %v1953_v58  ;;  %v5574_v57 = vsub.f32 %v5536_v12, %v1233_v50  ;;  %v1609_v58 = vld [vmem:[%s5274_s1 + $0x418] sm:$0xff]  ;;  %v1608_v12 = vld [vmem:[%s5274_s1 + $0x410] sm:$0xff]  ;;  %v1275_v9 = vadd.f32 %v1274_v10, %v1246_v5  ;;  %v2008_v36 = vunpack.c.l.s8.bf16 %v1616_v30  ;;  %v2014_v21 = vunpack.c.h.s8.bf16 %v1614_v29 }
 0x2aa   : > { %v1993_v4 = vunpack.c.l.s8.bf16 %v1609_v58  ;;  %v2001_v52 = vunpack.c.h.s8.bf16 %v1609_v58  ;;  %v2016_v51 = vunpack.c.h.s8.bf16 %v1616_v30  ;;  %v5601_v5 = vsub.s32 6, %v5406_v39 }
 0x2ac   : > { %2310 = vmatpush1.bf16.msra.mxu0 %v1950_v0  ;;  %2474 = vmatpush1.bf16.msra.mxu1 %v1952_v35  ;;  %v1249_v0 = vmul.f32 %v5574_v57, %v5574_v57  ;;  %v1467_v35 = vmax.f32 %v1459_v59, 0.0 }
 0x2ad   : > { %2311 = vmatprep.subr.bf16.mxu0 %v1959_v11  ;;  %2475 = vmatprep.subr.bf16.mxu1 %v1961_v14  ;;  %v1990_v11 = vunpack.c.l.s8.bf16 %v1606_v7  ;;  %v1992_v14 = vunpack.c.l.s8.bf16 %v1608_v12 }
 0x2ae   : > { %v1292_v18 = vrot.slane %v1249_v0, 4 }
 0x2b0   : > { %2312 = vmatpush1.bf16.msra.mxu0 %v1958_v22  ;;  %2476 = vmatpush1.bf16.msra.mxu1 %v1960_v23  ;;  %v1617_v22 = vld [vmem:[%s5274_s1 + $0x458] sm:$0xff]  ;;  %v5588_v23 = vpack.c.bf16 %v1467_v35, %v1467_v35  ;;  %v1293_v31 = vadd.f32 %v1292_v18, %v1249_v0 }
 0x2b1   : > { %2313 = vmatprep.subr.bf16.mxu0 %v1967_v26  ;;  %2477 = vmatprep.subr.bf16.mxu1 %v1969_v27  ;;  %v1998_v26 = vunpack.c.h.s8.bf16 %v1606_v7  ;;  %v2000_v27 = vunpack.c.h.s8.bf16 %v1608_v12  ;;  %v2009_v28 = vunpack.c.l.s8.bf16 %v1617_v22  ;;  %v680_v12 = vrot.slane %v5413_v41, %v5601_v5 }
 0x2b3   : > { %v5610_v18 = vadd.f32 %v5455_v63, %v680_v12  ;;  %v1355_v12 = vrot.slane %v5461_v13, %v5522_v53 }
 0x2b4   : > { %2314 = vmatpush1.bf16.msra.mxu0 %v1966_v32  ;;  %2478 = vmatpush1.bf16.msra.mxu1 %v1968_v34  ;;  %v1276_v32 = vrot.slane %v1275_v9, 2  ;;  %v2006_v34 = vunpack.c.l.s8.bf16 %v1614_v29 }
 0x2b5   : > { %2315 = vmatprep.subr.bf16.mxu0 %v1975_v43  ;;  %2479 = vmatprep.subr.bf16.mxu1 %v1977_v45  ;;  %v2017_v43 = vunpack.c.h.s8.bf16 %v1617_v22  ;;  %v1294_v45 = vrot.slane %v1293_v31, 2  ;;  %v1213_v29 = vrot.slane %v5610_v18, 4 }
 0x2b6   : > { %v1277_v50 = vadd.f32 %v1276_v32, %v1275_v9 }
 0x2b7   : > { %v1295_v56 = vadd.f32 %v1294_v45, %v1293_v31 }
 0x2b8   : > { %2316 = vmatpush1.bf16.msra.mxu0 %v1974_v37  ;;  %2480 = vmatpush1.bf16.msra.mxu1 %v1976_v55  ;;  %v2023_v37 = vunpack.c.l.s8.bf16 %v1623_v47  ;;  %v2025_v55 = vunpack.c.l.s8.bf16 %v1625_v48  ;;  %v1278_v46 = vrot.slane %v1277_v50, 1 }
 0x2b9   : > { %2317 = vmatprep.subr.bf16.mxu0 %v1983_v17  ;;  %2481 = vmatprep.subr.bf16.mxu1 %v1985_v19  ;;  %v1622_v17 = vld [vmem:[%s5274_s1 + $0x480] sm:$0xff]  ;;  %v1624_v19 = vld [vmem:[%s5274_s1 + $0x490] sm:$0xff] }
 0x2ba   : > { %v2022_v58 = vunpack.c.l.s8.bf16 %v1622_v17  ;;  %v2024_v59 = vunpack.c.l.s8.bf16 %v1624_v19  ;;  %v1279_v7 = vadd.f32 %v1278_v46, %v1277_v50  ;;  %v2030_v0 = vunpack.c.h.s8.bf16 %v1622_v17  ;;  %v1646_v46 = vld [vmem:[%s5274_s1 + $0x540] sm:$0xff] }
 0x2bb   : > { %v2032_v35 = vunpack.c.h.s8.bf16 %v1624_v19 }
 0x2bc   : > { %2318 = vmatpush1.bf16.msra.mxu0 %v1982_v61  ;;  %2482 = vmatpush1.bf16.msra.mxu1 %v1984_v62  ;;  %v1296_v61 = vrot.slane %v1295_v56, 1  ;;  %v2031_v62 = vunpack.c.h.s8.bf16 %v1623_v47 }
 0x2bd   : > { %2328 = vmatprep.subr.bf16.mxu0 %v1991_v2  ;;  %2492 = vmatprep.subr.bf16.mxu1 %v1993_v4  ;;  %v1631_v2 = vld [vmem:[%s5274_s1 + $0x4c8] sm:$0xff]  ;;  %v1633_v4 = vld [vmem:[%s5274_s1 + $0x4d8] sm:$0xff] }
 0x2be   : > { %v1297_v10 = vadd.f32 %v1296_v61, %v1295_v56  ;;  %v2039_v39 = vunpack.c.l.s8.bf16 %v1631_v2  ;;  %v2047_v9 = vunpack.c.h.s8.bf16 %v1631_v2  ;;  %v2070_v61 = vunpack.c.l.s8.bf16 %v1646_v46 }
 0x2bf   : > { %2320 = vmatmul.mubr.bf16.vlgmr.msra.gmra.mrb[8].mxu0 %v5584_v15  ;;  %2484 = vmatmul.mubr.bf16.vlgmr.msra.gmra.mrb[8].mxu1 %v5584_v15 }
 0x2c0   : > { %2329 = vmatpush1.bf16.msra.mxu0 %v1990_v11  ;;  %2493 = vmatpush1.bf16.msra.mxu1 %v1992_v14  ;;  %v2041_v11 = vunpack.c.l.s8.bf16 %v1633_v4  ;;  %v1630_v14 = vld [vmem:[%s5274_s1 + $0x4c0] sm:$0xff]  ;;  %v1305_v41 = vmul.f32 0.125, %v1297_v10 }
 0x2c1   : > { %2330 = vmatprep.subr.bf16.mxu0 %v1999_v16  ;;  %2494 = vmatprep.subr.bf16.mxu1 %v2001_v52  ;;  %v1632_v16 = vld [vmem:[%s5274_s1 + $0x4d0] sm:$0xff]  ;;  %v1302_v52 = vmul.f32 0.125, %v1279_v7  ;;  %v2038_v20 = vunpack.c.l.s8.bf16 %v1630_v14  ;;  %v2046_v63 = vunpack.c.h.s8.bf16 %v1630_v14 }
 0x2c2   : > { %2360 = vmatprep.mubr.bf16.mxu0 %v5588_v23  ;;  %2524 = vmatprep.mubr.bf16.mxu1 %v5588_v23  ;;  %v2040_v22 = vunpack.c.l.s8.bf16 %v1632_v16  ;;  %v2048_v30 = vunpack.c.h.s8.bf16 %v1632_v16  ;;  %v1313_v31 = vadd.f32 1e-05, %v1305_v41  ;;  %v1656_v41 = vld [vmem:[%s5274_s1 + $0x590] sm:$0xff] }
 0x2c4   : > { %2331 = vmatpush1.bf16.msra.mxu0 %v1998_v26  ;;  %2495 = vmatpush1.bf16.msra.mxu1 %v2000_v27  ;;  %v2049_v26 = vunpack.c.h.s8.bf16 %v1633_v4  ;;  %v1639_v27 = vld [vmem:[%s5274_s1 + $0x508] sm:$0xff] }
 0x2c5   : > { %2332 = vmatprep.subr.bf16.mxu0 %v2007_v3  ;;  %2496 = vmatprep.subr.bf16.mxu1 %v2009_v28  ;;  %v1641_v3 = vld [vmem:[%s5274_s1 + $0x518] sm:$0xff]  ;;  %v1310_v28 = vadd.f32 1e-05, %v1302_v52  ;;  %v2055_v32 = vunpack.c.l.s8.bf16 %v1639_v27  ;;  %v2063_v48 = vunpack.c.h.s8.bf16 %v1639_v27  ;;  %v2088_v27 = vunpack.c.l.s8.bf16 %v1656_v41 }
 0x2c6   : > { %v2065_v50 = vunpack.c.h.s8.bf16 %v1641_v3 }
 0x2c7   : > { %4389 = vrsqrt.f32 %v1310_v28 }
 0x2c8   : > { %2333 = vmatpush1.bf16.msra.mxu0 %v2006_v34  ;;  %2497 = vmatpush1.bf16.msra.mxu1 %v2008_v36  ;;  %v2057_v34 = vunpack.c.l.s8.bf16 %v1641_v3  ;;  %v1638_v36 = vld [vmem:[%s5274_s1 + $0x500] sm:$0xff]  ;;  %4391 = vrsqrt.f32 %v1313_v31  ;;  %v1665_v31 = vld [vmem:[%s5274_s1 + $0x5d8] sm:$0xff] }
 0x2c9   : > { %2334 = vmatprep.subr.bf16.mxu0 %v2015_v38  ;;  %2498 = vmatprep.subr.bf16.mxu1 %v2017_v43  ;;  %v1640_v38 = vld [vmem:[%s5274_s1 + $0x510] sm:$0xff]  ;;  %v1214_v43 = vadd.f32 %v1213_v29, %v5610_v18  ;;  %v2054_v45 = vunpack.c.l.s8.bf16 %v1638_v36 }
 0x2ca   : > { %v2056_v47 = vunpack.c.l.s8.bf16 %v1640_v38  ;;  %v2064_v17 = vunpack.c.h.s8.bf16 %v1640_v38 }
 0x2cc   : > { %2335 = vmatpush1.bf16.msra.mxu0 %v2014_v21  ;;  %2499 = vmatpush1.bf16.msra.mxu1 %v2016_v51  ;;  %v1647_v21 = vld [vmem:[%s5274_s1 + $0x548] sm:$0xff]  ;;  %v1649_v51 = vld [vmem:[%s5274_s1 + $0x558] sm:$0xff] }
 0x2cd   : > { %2336 = vmatprep.subr.bf16.mxu0 %v2023_v37  ;;  %2500 = vmatprep.subr.bf16.mxu1 %v2025_v55  ;;  %v1215_v37 = vrot.slane %v1214_v43, 2  ;;  %v2062_v55 = vunpack.c.h.s8.bf16 %v1638_v36  ;;  %v2071_v19 = vunpack.c.l.s8.bf16 %v1647_v21  ;;  %v2073_v56 = vunpack.c.l.s8.bf16 %v1649_v51 }
 0x2ce   : > { %v2079_v2 = vunpack.c.h.s8.bf16 %v1647_v21  ;;  %v2081_v4 = vunpack.c.h.s8.bf16 %v1649_v51  ;;  %v2096_v36 = vunpack.c.h.s8.bf16 %v1656_v41  ;;  %v1445_v51 = vrot.slane %v5469_v25, %v5522_v53 }
 0x2d0   : > { %2337 = vmatpush1.bf16.msra.mxu0 %v2022_v58  ;;  %2501 = vmatpush1.bf16.msra.mxu1 %v2024_v59  ;;  %v1648_v58 = vld [vmem:[%s5274_s1 + $0x550] sm:$0xff]  ;;  %v1216_v59 = vadd.f32 %v1215_v37, %v1214_v43 }
 0x2d1   : > { %2338 = vmatprep.subr.bf16.mxu0 %v2031_v62  ;;  %2502 = vmatprep.subr.bf16.mxu1 %v2033_v24  ;;  %v2072_v62 = vunpack.c.l.s8.bf16 %v1648_v58  ;;  %v1343_v24 = vrot.slane %v5461_v13, %v5519_v49  ;;  %v4390_v7 = vpop.eup %4389  ;;  %v2080_v14 = vunpack.c.h.s8.bf16 %v1648_v58  ;;  %v1673_v58 = vld [vmem:[%s5274_s1 + $0x618] sm:$0xff] }
 0x2d2   : > { %v4392_v10 = vpop.eup %4391 }
 0x2d3   : > { %v1368_v16 = vmul.f32 %v4390_v7, %v1343_v24  ;;  %v2121_v24 = vunpack.c.l.s8.bf16 %v1673_v58 }
 0x2d4   : > { %2339 = vmatpush1.bf16.msra.mxu0 %v2030_v0  ;;  %2503 = vmatpush1.bf16.msra.mxu1 %v2032_v35  ;;  %v1655_v0 = vld [vmem:[%s5274_s1 + $0x588] sm:$0xff]  ;;  %v1657_v35 = vld [vmem:[%s5274_s1 + $0x598] sm:$0xff] }
 0x2d5   : > { %2340 = vmatprep.subr.bf16.mxu0 %v2039_v39  ;;  %2504 = vmatprep.subr.bf16.mxu1 %v2041_v11  ;;  %v1217_v39 = vrot.slane %v1216_v59, 1  ;;  %v2078_v11 = vunpack.c.h.s8.bf16 %v1646_v46  ;;  %v2087_v52 = vunpack.c.l.s8.bf16 %v1655_v0  ;;  %v1391_v3 = vrot.slane %v1368_v16, %v5409_v40  ;;  %v1671_v46 = vld [vmem:[%s5274_s1 + $0x608] sm:$0xff]  ;;  %v1681_v16 = vld [vmem:[%s5274_s1 + $0x658] sm:$0xff] }
 0x2d6   : > { %v2095_v28 = vunpack.c.h.s8.bf16 %v1655_v0  ;;  %v2097_v29 = vunpack.c.h.s8.bf16 %v1657_v35 }
 0x2d7   : > { %v1408_v38 = vmul.f32 %v1391_v3, %v5571_v54 }
 0x2d8   : > { %2341 = vmatpush1.bf16.msra.mxu0 %v2038_v20  ;;  %2505 = vmatpush1.bf16.msra.mxu1 %v2040_v22  ;;  %v2089_v20 = vunpack.c.l.s8.bf16 %v1657_v35  ;;  %v1654_v22 = vld [vmem:[%s5274_s1 + $0x580] sm:$0xff] }
 0x2d9   : > { %2342 = vmatprep.subr.bf16.mxu0 %v2047_v9  ;;  %2506 = vmatprep.subr.bf16.mxu1 %v2049_v26  ;;  %v1371_v9 = vmul.f32 %v4392_v10, %v1355_v12  ;;  %v1218_v26 = vadd.f32 %v1217_v39, %v1216_v59  ;;  %v2086_v13 = vunpack.c.l.s8.bf16 %v1654_v22  ;;  %v2127_v39 = vunpack.c.h.s8.bf16 %v1671_v46 }
 0x2dc   : > { %2343 = vmatpush1.bf16.msra.mxu0 %v2046_v63  ;;  %2507 = vmatpush1.bf16.msra.mxu1 %v2048_v30  ;;  %v1403_v63 = vrot.slane %v1371_v9, %v5409_v40  ;;  %v1663_v30 = vld [vmem:[%s5274_s1 + $0x5c8] sm:$0xff] }
 0x2dd   : > { %2344 = vmatprep.subr.bf16.mxu0 %v2055_v32  ;;  %2508 = vmatprep.subr.bf16.mxu1 %v2057_v34  ;;  %v1232_v32 = vmul.f32 0.125, %v1218_v26  ;;  %v2094_v34 = vunpack.c.h.s8.bf16 %v1654_v22  ;;  %v2103_v43 = vunpack.c.l.s8.bf16 %v1663_v30  ;;  %v2137_v26 = vunpack.c.l.s8.bf16 %v1681_v16 }
 0x2de   : > { %v1411_v21 = vmul.f32 %v1403_v63, %v5574_v57 }
 0x2df   : > { %v5643_v37 = vsub.f32 %v5610_v18, %v1232_v32  ;;  %v1689_v32 = vld [vmem:[%s5274_s1 + $0x698] sm:$0xff] }
 0x2e0   : > { %2345 = vmatpush1.bf16.msra.mxu0 %v2054_v45  ;;  %2509 = vmatpush1.bf16.msra.mxu1 %v2056_v47  ;;  %v2105_v45 = vunpack.c.l.s8.bf16 %v1665_v31  ;;  %v1662_v47 = vld [vmem:[%s5274_s1 + $0x5c0] sm:$0xff]  ;;  %v1461_v57 = vadd.f32 %v1445_v51, %v1411_v21 }
 0x2e1   : > { %2346 = vmatprep.subr.bf16.mxu0 %v2063_v48  ;;  %2510 = vmatprep.subr.bf16.mxu1 %v2065_v50  ;;  %v1664_v48 = vld [vmem:[%s5274_s1 + $0x5d0] sm:$0xff]  ;;  %v1433_v50 = vrot.slane %v5469_v25, %v5519_v49  ;;  %v2102_v54 = vunpack.c.l.s8.bf16 %v1662_v47  ;;  %v1248_v25 = vmul.f32 %v5643_v37, %v5643_v37  ;;  %v2110_v18 = vunpack.c.h.s8.bf16 %v1662_v47  ;;  %v1686_v47 = vld [vmem:[%s5274_s1 + $0x680] sm:$0xff] }
 0x2e2   : > { %v2112_v59 = vunpack.c.h.s8.bf16 %v1664_v48  ;;  %v1469_v7 = vmax.f32 %v1461_v57, 0.0  ;;  %v2150_v21 = vunpack.c.l.s8.bf16 %v1686_v47 }
 0x2e3   : > { %v1286_v12 = vrot.slane %v1248_v25, 4 }
 0x2e4   : > { %2347 = vmatpush1.bf16.msra.mxu0 %v2062_v55  ;;  %2511 = vmatpush1.bf16.msra.mxu1 %v2064_v17  ;;  %v2104_v55 = vunpack.c.l.s8.bf16 %v1664_v48  ;;  %v2111_v17 = vunpack.c.h.s8.bf16 %v1663_v30  ;;  %v2145_v30 = vunpack.c.h.s8.bf16 %v1681_v16  ;;  %v1688_v48 = vld [vmem:[%s5274_s1 + $0x690] sm:$0xff]  ;;  %v1702_v16 = vld [vmem:[%s5274_s1 + $0x700] sm:$0xff] }
 0x2e5   : > { %2348 = vmatprep.subr.bf16.mxu0 %v2071_v19  ;;  %2512 = vmatprep.subr.bf16.mxu1 %v2073_v56  ;;  %v2113_v19 = vunpack.c.h.s8.bf16 %v1665_v31  ;;  %v1458_v56 = vadd.f32 %v1433_v50, %v1408_v38  ;;  %v1687_v31 = vld [vmem:[%s5274_s1 + $0x688] sm:$0xff]  ;;  %v2152_v51 = vunpack.c.l.s8.bf16 %v1688_v48 }
 0x2e8   : > { %2349 = vmatpush1.bf16.msra.mxu0 %v2070_v61  ;;  %2513 = vmatpush1.bf16.msra.mxu1 %v2072_v62  ;;  %v1466_v61 = vmax.f32 %v1458_v56, 0.0  ;;  %v2119_v62 = vunpack.c.l.s8.bf16 %v1671_v46  ;;  %v2158_v46 = vunpack.c.h.s8.bf16 %v1686_v47 }
 0x2e9   : > { %2350 = vmatprep.subr.bf16.mxu0 %v2079_v2  ;;  %2514 = vmatprep.subr.bf16.mxu1 %v2081_v4  ;;  %v1670_v2 = vld [vmem:[%s5274_s1 + $0x600] sm:$0xff]  ;;  %v1672_v4 = vld [vmem:[%s5274_s1 + $0x610] sm:$0xff] }
 0x2ea   : > { %v2118_v0 = vunpack.c.l.s8.bf16 %v1670_v2  ;;  %v2120_v35 = vunpack.c.l.s8.bf16 %v1672_v4  ;;  %v5651_v10 = vpack.c.bf16 %v1466_v61, %v1466_v61  ;;  %v2126_v22 = vunpack.c.h.s8.bf16 %v1670_v2 }
 0x2eb   : > { %v2128_v41 = vunpack.c.h.s8.bf16 %v1672_v4 }
 0x2ec   : > { %2351 = vmatpush1.bf16.msra.mxu0 %v2078_v11  ;;  %2515 = vmatpush1.bf16.msra.mxu1 %v2080_v14  ;;  %v2129_v11 = vunpack.c.h.s8.bf16 %v1673_v58  ;;  %v1679_v14 = vld [vmem:[%s5274_s1 + $0x648] sm:$0xff]  ;;  %v2160_v58 = vunpack.c.h.s8.bf16 %v1688_v48 }
 0x2ed   : > { %2352 = vmatprep.subr.bf16.mxu0 %v2087_v52  ;;  %2516 = vmatprep.subr.bf16.mxu1 %v2089_v20  ;;  %v5655_v52 = vpack.c.bf16 %v1469_v7, %v1469_v7  ;;  %v1287_v20 = vadd.f32 %v1286_v12, %v1248_v25  ;;  %v2135_v9 = vunpack.c.l.s8.bf16 %v1679_v14  ;;  %v2143_v63 = vunpack.c.h.s8.bf16 %v1679_v14  ;;  %v1703_v7 = vld [vmem:[%s5274_s1 + $0x708] sm:$0xff]  ;;  %v1705_v12 = vld [vmem:[%s5274_s1 + $0x718] sm:$0xff] }
 0x2ee   : > { %v2185_v14 = vunpack.c.l.s8.bf16 %v1705_v12  ;;  %v1719_v48 = vld [vmem:[%s5274_s1 + $0x788] sm:$0xff] }
 0x2ef   : > { %v1288_v3 = vrot.slane %v1287_v20, 2 }
 0x2f0   : > { %2353 = vmatpush1.bf16.msra.mxu0 %v2086_v13  ;;  %2517 = vmatpush1.bf16.msra.mxu1 %v2088_v27  ;;  %v1678_v13 = vld [vmem:[%s5274_s1 + $0x640] sm:$0xff]  ;;  %v1680_v27 = vld [vmem:[%s5274_s1 + $0x650] sm:$0xff] }
 0x2f1   : > { %2354 = vmatprep.subr.bf16.mxu0 %v2095_v28  ;;  %2518 = vmatprep.subr.bf16.mxu1 %v2097_v29  ;;  %v2134_v28 = vunpack.c.l.s8.bf16 %v1678_v13  ;;  %v2136_v29 = vunpack.c.l.s8.bf16 %v1680_v27  ;;  %v2144_v38 = vunpack.c.h.s8.bf16 %v1680_v27  ;;  %v1713_v27 = vld [vmem:[%s5274_s1 + $0x758] sm:$0xff] }
 0x2f4   : > { %2355 = vmatpush1.bf16.msra.mxu0 %v2094_v34  ;;  %2519 = vmatpush1.bf16.msra.mxu1 %v2096_v36  ;;  %v1289_v34 = vadd.f32 %v1288_v3, %v1287_v20  ;;  %v2142_v36 = vunpack.c.h.s8.bf16 %v1678_v13  ;;  %v1704_v20 = vld [vmem:[%s5274_s1 + $0x710] sm:$0xff]  ;;  %v1711_v13 = vld [vmem:[%s5274_s1 + $0x748] sm:$0xff]  ;;  %v2190_v3 = vunpack.c.h.s8.bf16 %v1702_v16 }
 0x2f5   : > { %2356 = vmatprep.subr.bf16.mxu0 %v2103_v43  ;;  %2520 = vmatprep.subr.bf16.mxu1 %v2105_v45  ;;  %v2151_v43 = vunpack.c.l.s8.bf16 %v1687_v31  ;;  %v2153_v45 = vunpack.c.l.s8.bf16 %v1689_v32 }
 0x2f6   : > { %v1290_v50 = vrot.slane %v1289_v34, 1 }
 0x2f8   : > { %2357 = vmatpush1.bf16.msra.mxu0 %v2102_v54  ;;  %2521 = vmatpush1.bf16.msra.mxu1 %v2104_v55  ;;  %v2159_v54 = vunpack.c.h.s8.bf16 %v1687_v31  ;;  %v2161_v55 = vunpack.c.h.s8.bf16 %v1689_v32  ;;  %v1291_v56 = vadd.f32 %v1290_v50, %v1289_v34  ;;  %v1712_v31 = vld [vmem:[%s5274_s1 + $0x750] sm:$0xff]  ;;  %v1721_v50 = vld [vmem:[%s5274_s1 + $0x798] sm:$0xff] }
 0x2f9   : > { %2358 = vmatprep.subr.bf16.mxu0 %v2111_v17  ;;  %2522 = vmatprep.subr.bf16.mxu1 %v2113_v19  ;;  %v1695_v17 = vld [vmem:[%s5274_s1 + $0x6c8] sm:$0xff]  ;;  %v1697_v19 = vld [vmem:[%s5274_s1 + $0x6d8] sm:$0xff]  ;;  %v2200_v34 = vunpack.c.l.s8.bf16 %v1712_v31 }
 0x2fa   : > { %v2167_v57 = vunpack.c.l.s8.bf16 %v1695_v17  ;;  %v2169_v25 = vunpack.c.l.s8.bf16 %v1697_v19  ;;  %v1304_v61 = vmul.f32 0.125, %v1291_v56  ;;  %v2175_v2 = vunpack.c.h.s8.bf16 %v1695_v17  ;;  %v1720_v56 = vld [vmem:[%s5274_s1 + $0x790] sm:$0xff] }
 0x2fb   : > { %v2177_v4 = vunpack.c.h.s8.bf16 %v1697_v19  ;;  %v2217_v17 = vunpack.c.l.s8.bf16 %v1721_v50  ;;  %v1718_v19 = vld [vmem:[%s5274_s1 + $0x780] sm:$0xff] }
 0x2fc   : > { %2359 = vmatpush1.bf16.msra.mxu0 %v2110_v18  ;;  %2523 = vmatpush1.bf16.msra.mxu1 %v2112_v59  ;;  %v1694_v18 = vld [vmem:[%s5274_s1 + $0x6c0] sm:$0xff]  ;;  %v1696_v59 = vld [vmem:[%s5274_s1 + $0x6d0] sm:$0xff] }
 0x2fd   : > { %2369 = vmatprep.subr.bf16.mxu0 %v2119_v62  ;;  %2533 = vmatprep.subr.bf16.mxu1 %v2121_v24  ;;  %v2166_v62 = vunpack.c.l.s8.bf16 %v1694_v18  ;;  %v2168_v24 = vunpack.c.l.s8.bf16 %v1696_v59 }
 0x2ff   : > { %2361 = vmatmul.mubr.bf16.vlgmr.msra.gmra.mrb[8].mxu0 %v5651_v10  ;;  %2525 = vmatmul.mubr.bf16.vlgmr.msra.gmra.mrb[8].mxu1 %v5651_v10 }
 0x300   : > { %2370 = vmatpush1.bf16.msra.mxu0 %v2118_v0  ;;  %2534 = vmatpush1.bf16.msra.mxu1 %v2120_v35  ;;  %v1312_v0 = vadd.f32 1e-05, %v1304_v61  ;;  %v2174_v35 = vunpack.c.h.s8.bf16 %v1694_v18  ;;  %v2225_v18 = vunpack.c.h.s8.bf16 %v1721_v50  ;;  %v1729_v61 = vld [vmem:[%s5274_s1 + $0x7d8] sm:$0xff] }
 0x301   : > { %2371 = vmatprep.subr.bf16.mxu0 %v2127_v39  ;;  %2535 = vmatprep.subr.bf16.mxu1 %v2129_v11  ;;  %v2176_v39 = vunpack.c.h.s8.bf16 %v1696_v59  ;;  %v2183_v11 = vunpack.c.l.s8.bf16 %v1703_v7  ;;  %v1727_v59 = vld [vmem:[%s5274_s1 + $0x7c8] sm:$0xff] }
 0x302   : > { %2401 = vmatprep.mubr.bf16.mxu0 %v5655_v52  ;;  %2565 = vmatprep.mubr.bf16.mxu1 %v5655_v52  ;;  %4393 = vrsqrt.f32 %v1312_v0  ;;  %v1728_v0 = vld [vmem:[%s5274_s1 + $0x7d0] sm:$0xff] }
 0x304   : > { %2372 = vmatpush1.bf16.msra.mxu0 %v2126_v22  ;;  %2536 = vmatpush1.bf16.msra.mxu1 %v2128_v41  ;;  %v2182_v22 = vunpack.c.l.s8.bf16 %v1702_v16  ;;  %v2184_v41 = vunpack.c.l.s8.bf16 %v1704_v20  ;;  %v2241_v16 = vunpack.c.h.s8.bf16 %v1729_v61 }
 0x305   : > { %2373 = vmatprep.subr.bf16.mxu0 %v2135_v9  ;;  %2537 = vmatprep.subr.bf16.mxu1 %v2137_v26  ;;  %v2191_v9 = vunpack.c.h.s8.bf16 %v1703_v7  ;;  %v2193_v26 = vunpack.c.h.s8.bf16 %v1705_v12  ;;  %v2233_v7 = vunpack.c.l.s8.bf16 %v1729_v61  ;;  %v1726_v12 = vld [vmem:[%s5274_s1 + $0x7c0] sm:$0xff] }
 0x308   : > { %2374 = vmatpush1.bf16.msra.mxu0 %v2134_v28  ;;  %2538 = vmatpush1.bf16.msra.mxu1 %v2136_v29  ;;  %v2192_v28 = vunpack.c.h.s8.bf16 %v1704_v20  ;;  %v2199_v29 = vunpack.c.l.s8.bf16 %v1711_v13 }
 0x309   : > { %2375 = vmatprep.subr.bf16.mxu0 %v2143_v63  ;;  %2539 = vmatprep.subr.bf16.mxu1 %v2145_v30  ;;  %v2201_v63 = vunpack.c.l.s8.bf16 %v1713_v27  ;;  %v1710_v30 = vld [vmem:[%s5274_s1 + $0x740] sm:$0xff] }
 0x30a   : > { %v2198_v32 = vunpack.c.l.s8.bf16 %v1710_v30 }
 0x30c   : > { %2376 = vmatpush1.bf16.msra.mxu0 %v2142_v36  ;;  %2540 = vmatpush1.bf16.msra.mxu1 %v2144_v38  ;;  %v4395_v36 = vld [vmem:[%s494_s12] sm:$0xff]  ;;  %v4394_v47 = vpop.eup %4393 }
 0x30d   : > { %2377 = vmatprep.subr.bf16.mxu0 %v2151_v43  ;;  %2541 = vmatprep.subr.bf16.mxu1 %v2153_v45  ;;  %v1351_v38 = vrot.slane %v4395_v36, %v5601_v5  ;;  %v2207_v43 = vunpack.c.h.s8.bf16 %v1711_v13  ;;  %v2209_v45 = vunpack.c.h.s8.bf16 %v1713_v27  ;;  %v1491_v36 = vld [vmem:[%s5274_s1 + $0x68] sm:$0xff] }
 0x310   : > { %2378 = vmatpush1.bf16.msra.mxu0 %v2150_v21  ;;  %2542 = vmatpush1.bf16.msra.mxu1 %v2152_v51  ;;  %v2206_v21 = vunpack.c.h.s8.bf16 %v1710_v30  ;;  %v2208_v51 = vunpack.c.h.s8.bf16 %v1712_v31 }
 0x311   : > { %2379 = vmatprep.subr.bf16.mxu0 %v2159_v54  ;;  %2543 = vmatprep.subr.bf16.mxu1 %v2161_v55  ;;  %v1370_v54 = vmul.f32 %v4394_v47, %v1351_v38  ;;  %v2215_v55 = vunpack.c.l.s8.bf16 %v1719_v48  ;;  %v1493_v38 = vld [vmem:[%s5274_s1 + $0x78] sm:$0xff]  ;;  %v1755_v47 = vunpack.c.l.s8.bf16 %v1491_v36 }
 0x312   : > { %v1757_v50 = vunpack.c.l.s8.bf16 %v1493_v38 }
 0x314   : > { %2380 = vmatpush1.bf16.msra.mxu0 %v2158_v46  ;;  %2544 = vmatpush1.bf16.msra.mxu1 %v2160_v58  ;;  %v2214_v46 = vunpack.c.l.s8.bf16 %v1718_v19  ;;  %v2216_v58 = vunpack.c.l.s8.bf16 %v1720_v56 }
 0x315   : > { %2381 = vmatprep.subr.bf16.mxu0 %v2167_v57  ;;  %2545 = vmatprep.subr.bf16.mxu1 %v2169_v25  ;;  %v1399_v57 = vrot.slane %v1370_v54, %v5409_v40  ;;  %v2223_v25 = vunpack.c.h.s8.bf16 %v1719_v48  ;;  %v1490_v48 = vld [vmem:[%s5274_s1 + $0x60] sm:$0xff] }
 0x318   : > { %2382 = vmatpush1.bf16.msra.mxu0 %v2166_v62  ;;  %2546 = vmatpush1.bf16.msra.mxu1 %v2168_v24  ;;  %v2222_v62 = vunpack.c.h.s8.bf16 %v1718_v19  ;;  %v2224_v24 = vunpack.c.h.s8.bf16 %v1720_v56  ;;  %v1501_v19 = vld [vmem:[%s5274_s1 + $0xb8] sm:$0xff]  ;;  %v1762_v56 = vunpack.c.h.s8.bf16 %v1490_v48 }
 0x319   : > { %2383 = vmatprep.subr.bf16.mxu0 %v2175_v2  ;;  %2547 = vmatprep.subr.bf16.mxu1 %v2177_v4  ;;  %v1410_v2 = vmul.f32 %v1399_v57, %v5643_v37  ;;  %v2231_v4 = vunpack.c.l.s8.bf16 %v1727_v59  ;;  %v2239_v37 = vunpack.c.h.s8.bf16 %v1727_v59  ;;  %v1498_v57 = vld [vmem:[%s5274_s1 + $0xa0] sm:$0xff] }
 0x31a   : > { %v1770_v59 = vunpack.c.l.s8.bf16 %v1498_v57 }
 0x31c   : > { %2384 = vmatpush1.bf16.msra.mxu0 %v2174_v35  ;;  %2548 = vmatpush1.bf16.msra.mxu1 %v2176_v39  ;;  %v4396_v35 = vld [vmem:[%s503_s25] sm:$0xff] }
 0x31d   : > { %2385 = vmatprep.subr.bf16.mxu0 %v2183_v11  ;;  %2549 = vmatprep.subr.bf16.mxu1 %v2185_v14  ;;  %v1441_v39 = vrot.slane %v4396_v35, %v5601_v5  ;;  %v2230_v11 = vunpack.c.l.s8.bf16 %v1726_v12  ;;  %v2232_v14 = vunpack.c.l.s8.bf16 %v1728_v0  ;;  %v1506_v35 = vld [vmem:[%s5274_s1 + $0xe0] sm:$0xff] }
 0x31f   : > { %v1460_v20 = vadd.f32 %v1441_v39, %v1410_v2  ;;  %v1507_v2 = vld [vmem:[%s5274_s1 + $0xe8] sm:$0xff] }
 0x320   : > { %2386 = vmatpush1.bf16.msra.mxu0 %v2182_v22  ;;  %2550 = vmatpush1.bf16.msra.mxu1 %v2184_v41  ;;  %v1483_v22 = vld [vmem:[%s5274_s1 + $0x28] sm:$0xff]  ;;  %v1485_v41 = vld [vmem:[%s5274_s1 + $0x38] sm:$0xff] }
 0x321   : > { %2387 = vmatprep.subr.bf16.mxu0 %v2191_v9  ;;  %2551 = vmatprep.subr.bf16.mxu1 %v2193_v26  ;;  %v2238_v9 = vunpack.c.h.s8.bf16 %v1726_v12  ;;  %v2240_v26 = vunpack.c.h.s8.bf16 %v1728_v0  ;;  %v1468_v13 = vmax.f32 %v1460_v20, 0.0  ;;  %v1739_v27 = vunpack.c.l.s8.bf16 %v1483_v22 }
 0x322   : > { %v1787_v0 = vunpack.c.l.s8.bf16 %v1507_v2 }
 0x323   : > { %v5699_v30 = vpack.c.bf16 %v1468_v13, %v1468_v13 }
 0x324   : > { %2388 = vmatpush1.bf16.msra.mxu0 %v2190_v3  ;;  %2552 = vmatpush1.bf16.msra.mxu1 %v2192_v28  ;;  %v1741_v3 = vunpack.c.l.s8.bf16 %v1485_v41  ;;  %v1482_v28 = vld [vmem:[%s5274_s1 + $0x20] sm:$0xff] }
 0x325   : > { %2389 = vmatprep.subr.bf16.mxu0 %v2199_v29  ;;  %2553 = vmatprep.subr.bf16.mxu1 %v2201_v63  ;;  %v1484_v29 = vld [vmem:[%s5274_s1 + $0x30] sm:$0xff]  ;;  %v1738_v63 = vunpack.c.l.s8.bf16 %v1482_v28 }
 0x326   : > { %v1740_v31 = vunpack.c.l.s8.bf16 %v1484_v29 }
 0x328   : > { %2390 = vmatpush1.bf16.msra.mxu0 %v2198_v32  ;;  %2554 = vmatpush1.bf16.msra.mxu1 %v2200_v34  ;;  %v1747_v32 = vunpack.c.h.s8.bf16 %v1483_v22  ;;  %v1749_v34 = vunpack.c.h.s8.bf16 %v1485_v41  ;;  %v1515_v22 = vld [vmem:[%s5274_s1 + $0x128] sm:$0xff]  ;;  %v1517_v41 = vld [vmem:[%s5274_s1 + $0x138] sm:$0xff] }
 0x329   : > { %2391 = vmatprep.subr.bf16.mxu0 %v2207_v43  ;;  %2555 = vmatprep.subr.bf16.mxu1 %v2209_v45  ;;  %v1746_v43 = vunpack.c.h.s8.bf16 %v1482_v28  ;;  %v1748_v45 = vunpack.c.h.s8.bf16 %v1484_v29  ;;  %v1803_v13 = vunpack.c.l.s8.bf16 %v1515_v22  ;;  %v1516_v28 = vld [vmem:[%s5274_s1 + $0x130] sm:$0xff] }
 0x32c   : > { %2392 = vmatpush1.bf16.msra.mxu0 %v2206_v21  ;;  %2556 = vmatpush1.bf16.msra.mxu1 %v2208_v51  ;;  %v1492_v21 = vld [vmem:[%s5274_s1 + $0x70] sm:$0xff]  ;;  %v1754_v51 = vunpack.c.l.s8.bf16 %v1490_v48 }
 0x32d   : > { %2393 = vmatprep.subr.bf16.mxu0 %v2215_v55  ;;  %2557 = vmatprep.subr.bf16.mxu1 %v2217_v17  ;;  %v1756_v54 = vunpack.c.l.s8.bf16 %v1492_v21  ;;  %v1763_v55 = vunpack.c.h.s8.bf16 %v1491_v36  ;;  %v1765_v17 = vunpack.c.h.s8.bf16 %v1493_v38  ;;  %v1525_v36 = vld [vmem:[%s5274_s1 + $0x178] sm:$0xff] }
 0x32e   : > { %v1821_v48 = vunpack.c.l.s8.bf16 %v1525_v36 }
 0x330   : > { %2394 = vmatpush1.bf16.msra.mxu0 %v2214_v46  ;;  %2558 = vmatpush1.bf16.msra.mxu1 %v2216_v58  ;;  %v1764_v46 = vunpack.c.h.s8.bf16 %v1492_v21 }
 0x331   : > { %2395 = vmatprep.subr.bf16.mxu0 %v2223_v25  ;;  %2559 = vmatprep.subr.bf16.mxu1 %v2225_v18  ;;  %v1773_v25 = vunpack.c.l.s8.bf16 %v1501_v19  ;;  %v1500_v18 = vld [vmem:[%s5274_s1 + $0xb0] sm:$0xff] }
 0x332   : > { %v1772_v61 = vunpack.c.l.s8.bf16 %v1500_v18  ;;  %v1780_v12 = vunpack.c.h.s8.bf16 %v1500_v18 }
 0x334   : > { %2396 = vmatpush1.bf16.msra.mxu0 %v2222_v62  ;;  %2560 = vmatpush1.bf16.msra.mxu1 %v2224_v24  ;;  %v1781_v24 = vunpack.c.h.s8.bf16 %v1501_v19 }
 0x335   : > { %2397 = vmatprep.subr.bf16.mxu0 %v2231_v4  ;;  %2561 = vmatprep.subr.bf16.mxu1 %v2233_v7  ;;  %v1509_v4 = vld [vmem:[%s5274_s1 + $0xf8] sm:$0xff]  ;;  %v1778_v7 = vunpack.c.h.s8.bf16 %v1498_v57 }
 0x336   : > { %v1789_v39 = vunpack.c.l.s8.bf16 %v1509_v4  ;;  %v1797_v20 = vunpack.c.h.s8.bf16 %v1509_v4 }
 0x338   : > { %2398 = vmatpush1.bf16.msra.mxu0 %v2230_v11  ;;  %2562 = vmatpush1.bf16.msra.mxu1 %v2232_v14  ;;  %v1508_v11 = vld [vmem:[%s5274_s1 + $0xf0] sm:$0xff]  ;;  %v1786_v14 = vunpack.c.l.s8.bf16 %v1506_v35 }
 0x339   : > { %2399 = vmatprep.subr.bf16.mxu0 %v2239_v37  ;;  %2563 = vmatprep.subr.bf16.mxu1 %v2241_v16  ;;  %v1788_v37 = vunpack.c.l.s8.bf16 %v1508_v11  ;;  %v1795_v16 = vunpack.c.h.s8.bf16 %v1507_v2  ;;  %v1541_v2 = vld [vmem:[%s5274_s1 + $0x1f8] sm:$0xff] }
 0x33c   : > { %2400 = vmatpush1.bf16.msra.mxu0 %v2238_v9  ;;  %2564 = vmatpush1.bf16.msra.mxu1 %v2240_v26  ;;  %v1794_v9 = vunpack.c.h.s8.bf16 %v1506_v35  ;;  %v1796_v26 = vunpack.c.h.s8.bf16 %v1508_v11  ;;  %v1853_v35 = vunpack.c.l.s8.bf16 %v1541_v2 }
 0x33d   : > { %2574 = vmatprep.subr.bf16.mxu0 %v1739_v27  ;;  %2738 = vmatprep.subr.bf16.mxu1 %v1741_v3  ;;  %v1514_v27 = vld [vmem:[%s5274_s1 + $0x120] sm:$0xff]  ;;  %v1805_v3 = vunpack.c.l.s8.bf16 %v1517_v41 }
 0x33e   : > { %v1802_v29 = vunpack.c.l.s8.bf16 %v1514_v27  ;;  %v1810_v38 = vunpack.c.h.s8.bf16 %v1514_v27 }
 0x33f   : > { %2402 = vmatmul.mubr.bf16.vlgmr.msra.gmra.mrb[8].mxu0 %v5699_v30  ;;  %2566 = vmatmul.mubr.bf16.vlgmr.msra.gmra.mrb[8].mxu1 %v5699_v30 }
 0x340   : > { %2575 = vmatpush1.bf16.msra.mxu0 %v1738_v63  ;;  %2606 = vmatprep.mubr.bf16.mxu0 %v5496_v60  ;;  %v1804_v63 = vunpack.c.l.s8.bf16 %v1516_v28 }
 0x341   : > { %2739 = vmatpush1.bf16.msra.mxu1 %v1740_v31  ;;  %2770 = vmatprep.mubr.bf16.mxu1 %v5496_v60  ;;  %v1499_v60 = vld [vmem:[%s5274_s1 + $0xa8] sm:$0xff]  ;;  %v1811_v31 = vunpack.c.h.s8.bf16 %v1515_v22  ;;  %v1549_v22 = vld [vmem:[%s5274_s1 + $0x238] sm:$0xff] }
 0x342   : > { %2576 = vmatprep.subr.bf16.mxu0 %v1747_v32  ;;  %2740 = vmatprep.subr.bf16.mxu1 %v1749_v34  ;;  %v1771_v58 = vunpack.c.l.s8.bf16 %v1499_v60  ;;  %v1779_v62 = vunpack.c.h.s8.bf16 %v1499_v60  ;;  %v1813_v32 = vunpack.c.h.s8.bf16 %v1517_v41  ;;  %v1523_v34 = vld [vmem:[%s5274_s1 + $0x168] sm:$0xff]  ;;  %v1533_v60 = vld [vmem:[%s5274_s1 + $0x1b8] sm:$0xff]  ;;  %v1869_v27 = vunpack.c.l.s8.bf16 %v1549_v22 }
 0x343   : > { %v1837_v57 = vunpack.c.l.s8.bf16 %v1533_v60 }
 0x344   : > { %2577 = vmatpush1.bf16.msra.mxu0 %v1746_v43  ;;  %v1812_v43 = vunpack.c.h.s8.bf16 %v1516_v28 }
 0x345   : > { %2741 = vmatpush1.bf16.msra.mxu1 %v1748_v45  ;;  %2578 = vmatprep.subr.bf16.mxu0 %v1755_v47  ;;  %v1819_v45 = vunpack.c.l.s8.bf16 %v1523_v34  ;;  %v1522_v47 = vld [vmem:[%s5274_s1 + $0x160] sm:$0xff] }
 0x346   : > { %2742 = vmatprep.subr.bf16.mxu1 %v1757_v50  ;;  %v1524_v50 = vld [vmem:[%s5274_s1 + $0x170] sm:$0xff]  ;;  %v1818_v21 = vunpack.c.l.s8.bf16 %v1522_v47  ;;  %v1826_v19 = vunpack.c.h.s8.bf16 %v1522_v47 }
 0x348   : > { %2579 = vmatpush1.bf16.msra.mxu0 %v1754_v51  ;;  %v1820_v51 = vunpack.c.l.s8.bf16 %v1524_v50 }
 0x349   : > { %2743 = vmatpush1.bf16.msra.mxu1 %v1756_v54  ;;  %2580 = vmatprep.subr.bf16.mxu0 %v1763_v55  ;;  %v1827_v54 = vunpack.c.h.s8.bf16 %v1523_v34  ;;  %v1829_v55 = vunpack.c.h.s8.bf16 %v1525_v36  ;;  %v1557_v34 = vld [vmem:[%s5274_s1 + $0x278] sm:$0xff] }
 0x34a   : > { %2744 = vmatprep.subr.bf16.mxu1 %v1765_v17  ;;  %v1531_v17 = vld [vmem:[%s5274_s1 + $0x1a8] sm:$0xff]  ;;  %v1885_v47 = vunpack.c.l.s8.bf16 %v1557_v34 }
 0x34c   : > { %2581 = vmatpush1.bf16.msra.mxu0 %v1762_v56  ;;  %v1828_v56 = vunpack.c.h.s8.bf16 %v1524_v50 }
 0x34d   : > { %2745 = vmatpush1.bf16.msra.mxu1 %v1764_v46  ;;  %2582 = vmatprep.subr.bf16.mxu0 %v1771_v58  ;;  %v1835_v46 = vunpack.c.l.s8.bf16 %v1531_v17  ;;  %v1530_v58 = vld [vmem:[%s5274_s1 + $0x1a0] sm:$0xff] }
 0x34e   : > { %2746 = vmatprep.subr.bf16.mxu1 %v1773_v25  ;;  %v1532_v25 = vld [vmem:[%s5274_s1 + $0x1b0] sm:$0xff]  ;;  %v1834_v18 = vunpack.c.l.s8.bf16 %v1530_v58  ;;  %v1842_v4 = vunpack.c.h.s8.bf16 %v1530_v58 }
 0x350   : > { %2583 = vmatpush1.bf16.msra.mxu0 %v1770_v59  ;;  %v1836_v59 = vunpack.c.l.s8.bf16 %v1532_v25 }
 0x351   : > { %2747 = vmatpush1.bf16.msra.mxu1 %v1772_v61  ;;  %2584 = vmatprep.subr.bf16.mxu0 %v1779_v62  ;;  %v1843_v61 = vunpack.c.h.s8.bf16 %v1531_v17  ;;  %v1845_v62 = vunpack.c.h.s8.bf16 %v1533_v60 }
 0x352   : > { %2748 = vmatprep.subr.bf16.mxu1 %v1781_v24  ;;  %v1539_v24 = vld [vmem:[%s5274_s1 + $0x1e8] sm:$0xff] }
 0x354   : > { %2585 = vmatpush1.bf16.msra.mxu0 %v1778_v7  ;;  %v1844_v7 = vunpack.c.h.s8.bf16 %v1532_v25 }
 0x355   : > { %2749 = vmatpush1.bf16.msra.mxu1 %v1780_v12  ;;  %2586 = vmatprep.subr.bf16.mxu0 %v1787_v0  ;;  %v1851_v12 = vunpack.c.l.s8.bf16 %v1539_v24  ;;  %v1538_v0 = vld [vmem:[%s5274_s1 + $0x1e0] sm:$0xff] }
 0x356   : > { %2750 = vmatprep.subr.bf16.mxu1 %v1789_v39  ;;  %v1540_v39 = vld [vmem:[%s5274_s1 + $0x1f0] sm:$0xff]  ;;  %v1850_v11 = vunpack.c.l.s8.bf16 %v1538_v0  ;;  %v1858_v41 = vunpack.c.h.s8.bf16 %v1538_v0 }
 0x358   : > { %2587 = vmatpush1.bf16.msra.mxu0 %v1786_v14  ;;  %v1852_v14 = vunpack.c.l.s8.bf16 %v1540_v39 }
 0x359   : > { %2751 = vmatpush1.bf16.msra.mxu1 %v1788_v37  ;;  %2588 = vmatprep.subr.bf16.mxu0 %v1795_v16  ;;  %v1859_v37 = vunpack.c.h.s8.bf16 %v1539_v24  ;;  %v1861_v16 = vunpack.c.h.s8.bf16 %v1541_v2 }
 0x35a   : > { %2752 = vmatprep.subr.bf16.mxu1 %v1797_v20  ;;  %v1547_v20 = vld [vmem:[%s5274_s1 + $0x228] sm:$0xff] }
 0x35c   : > { %2589 = vmatpush1.bf16.msra.mxu0 %v1794_v9  ;;  %v1860_v9 = vunpack.c.h.s8.bf16 %v1540_v39 }
 0x35d   : > { %2753 = vmatpush1.bf16.msra.mxu1 %v1796_v26  ;;  %2590 = vmatprep.subr.bf16.mxu0 %v1803_v13  ;;  %v1867_v26 = vunpack.c.l.s8.bf16 %v1547_v20  ;;  %v1546_v13 = vld [vmem:[%s5274_s1 + $0x220] sm:$0xff] }
 0x35e   : > { %2754 = vmatprep.subr.bf16.mxu1 %v1805_v3  ;;  %v1548_v3 = vld [vmem:[%s5274_s1 + $0x230] sm:$0xff]  ;;  %v1866_v28 = vunpack.c.l.s8.bf16 %v1546_v13  ;;  %v1874_v36 = vunpack.c.h.s8.bf16 %v1546_v13 }
 0x360   : > { %2591 = vmatpush1.bf16.msra.mxu0 %v1802_v29  ;;  %v1868_v29 = vunpack.c.l.s8.bf16 %v1548_v3 }
 0x361   : > { %2755 = vmatpush1.bf16.msra.mxu1 %v1804_v63  ;;  %2592 = vmatprep.subr.bf16.mxu0 %v1811_v31  ;;  %v1875_v63 = vunpack.c.h.s8.bf16 %v1547_v20  ;;  %v1555_v31 = vld [vmem:[%s5274_s1 + $0x268] sm:$0xff] }
 0x362   : > { %2756 = vmatprep.subr.bf16.mxu1 %v1813_v32  ;;  %v1877_v32 = vunpack.c.h.s8.bf16 %v1549_v22 }
 0x364   : > { %2593 = vmatpush1.bf16.msra.mxu0 %v1810_v38  ;;  %v1876_v38 = vunpack.c.h.s8.bf16 %v1548_v3 }
 0x365   : > { %2757 = vmatpush1.bf16.msra.mxu1 %v1812_v43  ;;  %2594 = vmatprep.subr.bf16.mxu0 %v1819_v45  ;;  %v1883_v43 = vunpack.c.l.s8.bf16 %v1555_v31  ;;  %v1554_v45 = vld [vmem:[%s5274_s1 + $0x260] sm:$0xff] }
 0x366   : > { %2758 = vmatprep.subr.bf16.mxu1 %v1821_v48  ;;  %v1556_v48 = vld [vmem:[%s5274_s1 + $0x270] sm:$0xff]  ;;  %v1882_v50 = vunpack.c.l.s8.bf16 %v1554_v45  ;;  %v1890_v17 = vunpack.c.h.s8.bf16 %v1554_v45 }
 0x368   : > { %2595 = vmatpush1.bf16.msra.mxu0 %v1818_v21  ;;  %v1891_v21 = vunpack.c.h.s8.bf16 %v1555_v31 }
 0x369   : > { %2759 = vmatpush1.bf16.msra.mxu1 %v1820_v51  ;;  %2596 = vmatprep.subr.bf16.mxu0 %v1827_v54  ;;  %v1893_v51 = vunpack.c.h.s8.bf16 %v1557_v34  ;;  %v1563_v54 = vld [vmem:[%s5274_s1 + $0x2a8] sm:$0xff] }
 0x36a   : > { %2760 = vmatprep.subr.bf16.mxu1 %v1829_v55  ;;  %v1565_v55 = vld [vmem:[%s5274_s1 + $0x2b8] sm:$0xff]  ;;  %v1899_v60 = vunpack.c.l.s8.bf16 %v1563_v54  ;;  %v1907_v25 = vunpack.c.h.s8.bf16 %v1563_v54 }
 0x36c   : > { %2597 = vmatpush1.bf16.msra.mxu0 %v1826_v19  ;;  %v1562_v19 = vld [vmem:[%s5274_s1 + $0x2a0] sm:$0xff] }
 0x36d   : > { %2761 = vmatpush1.bf16.msra.mxu1 %v1828_v56  ;;  %2598 = vmatprep.subr.bf16.mxu0 %v1835_v46  ;;  %v1901_v56 = vunpack.c.l.s8.bf16 %v1565_v55  ;;  %v1564_v46 = vld [vmem:[%s5274_s1 + $0x2b0] sm:$0xff]  ;;  %v1898_v58 = vunpack.c.l.s8.bf16 %v1562_v19 }
 0x36e   : > { %2762 = vmatprep.subr.bf16.mxu1 %v1837_v57  ;;  %v1900_v57 = vunpack.c.l.s8.bf16 %v1564_v46  ;;  %v1908_v24 = vunpack.c.h.s8.bf16 %v1564_v46 }
 0x370   : > { %2599 = vmatpush1.bf16.msra.mxu0 %v1834_v18  ;;  %v1909_v18 = vunpack.c.h.s8.bf16 %v1565_v55 }
 0x371   : > { %2763 = vmatpush1.bf16.msra.mxu1 %v1836_v59  ;;  %2600 = vmatprep.subr.bf16.mxu0 %v1843_v61  ;;  %v1571_v59 = vld [vmem:[%s5274_s1 + $0x2e8] sm:$0xff]  ;;  %v1573_v61 = vld [vmem:[%s5274_s1 + $0x2f8] sm:$0xff] }
 0x372   : > { %2764 = vmatprep.subr.bf16.mxu1 %v1845_v62  ;;  %v1906_v62 = vunpack.c.h.s8.bf16 %v1562_v19  ;;  %v1915_v2 = vunpack.c.l.s8.bf16 %v1571_v59  ;;  %v1923_v39 = vunpack.c.h.s8.bf16 %v1571_v59 }
 0x374   : > { %2601 = vmatpush1.bf16.msra.mxu0 %v1842_v4  ;;  %v1570_v4 = vld [vmem:[%s5274_s1 + $0x2e0] sm:$0xff] }
 0x375   : > { %2765 = vmatpush1.bf16.msra.mxu1 %v1844_v7  ;;  %2602 = vmatprep.subr.bf16.mxu0 %v1851_v12  ;;  %v1917_v7 = vunpack.c.l.s8.bf16 %v1573_v61  ;;  %v1572_v12 = vld [vmem:[%s5274_s1 + $0x2f0] sm:$0xff]  ;;  %v1914_v0 = vunpack.c.l.s8.bf16 %v1570_v4 }
 0x376   : > { %2766 = vmatprep.subr.bf16.mxu1 %v1853_v35  ;;  %v1916_v35 = vunpack.c.l.s8.bf16 %v1572_v12  ;;  %v1924_v20 = vunpack.c.h.s8.bf16 %v1572_v12 }
 0x378   : > { %2603 = vmatpush1.bf16.msra.mxu0 %v1850_v11  ;;  %v1925_v11 = vunpack.c.h.s8.bf16 %v1573_v61 }
 0x379   : > { %2767 = vmatpush1.bf16.msra.mxu1 %v1852_v14  ;;  %2604 = vmatprep.subr.bf16.mxu0 %v1859_v37  ;;  %v1579_v14 = vld [vmem:[%s5274_s1 + $0x328] sm:$0xff]  ;;  %v1581_v37 = vld [vmem:[%s5274_s1 + $0x338] sm:$0xff] }
 0x37a   : > { %2768 = vmatprep.subr.bf16.mxu1 %v1861_v16  ;;  %v1922_v16 = vunpack.c.h.s8.bf16 %v1570_v4  ;;  %v1931_v22 = vunpack.c.l.s8.bf16 %v1579_v14  ;;  %v1939_v3 = vunpack.c.h.s8.bf16 %v1579_v14 }
 0x37c   : > { %2605 = vmatpush1.bf16.msra.mxu0 %v1858_v41  ;;  %v1578_v41 = vld [vmem:[%s5274_s1 + $0x320] sm:$0xff] }
 0x37d   : > { %2769 = vmatpush1.bf16.msra.mxu1 %v1860_v9  ;;  %2615 = vmatprep.subr.bf16.mxu0 %v1867_v26  ;;  %v1933_v9 = vunpack.c.l.s8.bf16 %v1581_v37  ;;  %v1580_v26 = vld [vmem:[%s5274_s1 + $0x330] sm:$0xff]  ;;  %v1930_v13 = vunpack.c.l.s8.bf16 %v1578_v41  ;;  %v1938_v31 = vunpack.c.h.s8.bf16 %v1578_v41 }
 0x37e   : > { %2779 = vmatprep.subr.bf16.mxu1 %v1869_v27  ;;  %v1932_v27 = vunpack.c.l.s8.bf16 %v1580_v26 }
 0x37f   : > { %2607 = vmatmul.mubr.bf16.vlgmr.msra.gmra.mrb[12].mxu0 %v5499_v1 }
 0x380   : > { %2771 = vmatmul.mubr.bf16.vlgmr.msra.gmra.mrb[12].mxu1 %v5499_v1  ;;  %2616 = vmatpush1.bf16.msra.mxu0 %v1866_v28  ;;  %v1884_v1 = vunpack.c.l.s8.bf16 %v1556_v48  ;;  %v1941_v28 = vunpack.c.h.s8.bf16 %v1581_v37 }
 0x381   : > { %2647 = vmatprep.mubr.bf16.mxu0 %v5508_v8  ;;  %2780 = vmatpush1.bf16.msra.mxu1 %v1868_v29  ;;  %v1587_v29 = vld [vmem:[%s5274_s1 + $0x368] sm:$0xff] }
 0x382   : > { %2811 = vmatprep.mubr.bf16.mxu1 %v5508_v8  ;;  %2617 = vmatprep.subr.bf16.mxu0 %v1875_v63  ;;  %v1892_v8 = vunpack.c.h.s8.bf16 %v1556_v48  ;;  %v1589_v63 = vld [vmem:[%s5274_s1 + $0x378] sm:$0xff]  ;;  %v1947_v34 = vunpack.c.l.s8.bf16 %v1587_v29  ;;  %v1955_v48 = vunpack.c.h.s8.bf16 %v1587_v29 }
 0x383   : > { %2781 = vmatprep.subr.bf16.mxu1 %v1877_v32  ;;  %v1940_v32 = vunpack.c.h.s8.bf16 %v1580_v26 }
 0x384   : > { %2618 = vmatpush1.bf16.msra.mxu0 %v1874_v36  ;;  %v1586_v36 = vld [vmem:[%s5274_s1 + $0x360] sm:$0xff] }
 0x385   : > { %2782 = vmatpush1.bf16.msra.mxu1 %v1876_v38  ;;  %2619 = vmatprep.subr.bf16.mxu0 %v1883_v43  ;;  %v1949_v38 = vunpack.c.l.s8.bf16 %v1589_v63  ;;  %v1588_v43 = vld [vmem:[%s5274_s1 + $0x370] sm:$0xff]  ;;  %v1946_v45 = vunpack.c.l.s8.bf16 %v1586_v36 }
 0x386   : > { %2783 = vmatprep.subr.bf16.mxu1 %v1885_v47  ;;  %v1948_v47 = vunpack.c.l.s8.bf16 %v1588_v43  ;;  %v1956_v54 = vunpack.c.h.s8.bf16 %v1588_v43 }
 0x388   : > { %2620 = vmatpush1.bf16.msra.mxu0 %v1882_v50  ;;  %v1957_v50 = vunpack.c.h.s8.bf16 %v1589_v63 }
 0x389   : > { %2784 = vmatpush1.bf16.msra.mxu1 %v1884_v1  ;;  %2621 = vmatprep.subr.bf16.mxu0 %v1891_v21  ;;  %v1595_v1 = vld [vmem:[%s5274_s1 + $0x3a8] sm:$0xff]  ;;  %v1597_v21 = vld [vmem:[%s5274_s1 + $0x3b8] sm:$0xff] }
 0x38a   : > { %2785 = vmatprep.subr.bf16.mxu1 %v1893_v51  ;;  %v1954_v51 = vunpack.c.h.s8.bf16 %v1586_v36  ;;  %v1963_v55 = vunpack.c.l.s8.bf16 %v1595_v1  ;;  %v1971_v46 = vunpack.c.h.s8.bf16 %v1595_v1  ;;  %v1626_v1 = vld [vmem:[%s5274_s1 + $0x4a0] sm:$0xff] }
 0x38c   : > { %2622 = vmatpush1.bf16.msra.mxu0 %v1890_v17  ;;  %v1594_v17 = vld [vmem:[%s5274_s1 + $0x3a0] sm:$0xff] }
 0x38d   : > { %2786 = vmatpush1.bf16.msra.mxu1 %v1892_v8  ;;  %2623 = vmatprep.subr.bf16.mxu0 %v1899_v60  ;;  %v1965_v8 = vunpack.c.l.s8.bf16 %v1597_v21  ;;  %v1596_v60 = vld [vmem:[%s5274_s1 + $0x3b0] sm:$0xff]  ;;  %v1962_v19 = vunpack.c.l.s8.bf16 %v1594_v17 }
 0x38e   : > { %2787 = vmatprep.subr.bf16.mxu1 %v1901_v56  ;;  %v1964_v56 = vunpack.c.l.s8.bf16 %v1596_v60  ;;  %v1972_v59 = vunpack.c.h.s8.bf16 %v1596_v60  ;;  %v1635_v60 = vld [vmem:[%s5274_s1 + $0x4e8] sm:$0xff] }
 0x390   : > { %2624 = vmatpush1.bf16.msra.mxu0 %v1898_v58  ;;  %v1973_v58 = vunpack.c.h.s8.bf16 %v1597_v21 }
 0x391   : > { %2788 = vmatpush1.bf16.msra.mxu1 %v1900_v57  ;;  %2625 = vmatprep.subr.bf16.mxu0 %v1907_v25  ;;  %v1603_v57 = vld [vmem:[%s5274_s1 + $0x3e8] sm:$0xff]  ;;  %v1605_v25 = vld [vmem:[%s5274_s1 + $0x3f8] sm:$0xff] }
 0x392   : > { %2789 = vmatprep.subr.bf16.mxu1 %v1909_v18  ;;  %v1970_v18 = vunpack.c.h.s8.bf16 %v1594_v17  ;;  %v1979_v61 = vunpack.c.l.s8.bf16 %v1603_v57  ;;  %v1987_v12 = vunpack.c.h.s8.bf16 %v1603_v57  ;;  %v1634_v57 = vld [vmem:[%s5274_s1 + $0x4e0] sm:$0xff] }
 0x394   : > { %2626 = vmatpush1.bf16.msra.mxu0 %v1906_v62  ;;  %v1602_v62 = vld [vmem:[%s5274_s1 + $0x3e0] sm:$0xff] }
 0x395   : > { %2790 = vmatpush1.bf16.msra.mxu1 %v1908_v24  ;;  %2627 = vmatprep.subr.bf16.mxu0 %v1915_v2  ;;  %v1981_v24 = vunpack.c.l.s8.bf16 %v1605_v25  ;;  %v1604_v2 = vld [vmem:[%s5274_s1 + $0x3f0] sm:$0xff]  ;;  %v1978_v4 = vunpack.c.l.s8.bf16 %v1602_v62 }
 0x396   : > { %2791 = vmatprep.subr.bf16.mxu1 %v1917_v7  ;;  %v1980_v7 = vunpack.c.l.s8.bf16 %v1604_v2  ;;  %v1988_v14 = vunpack.c.h.s8.bf16 %v1604_v2  ;;  %v1643_v2 = vld [vmem:[%s5274_s1 + $0x528] sm:$0xff] }
 0x398   : > { %2628 = vmatpush1.bf16.msra.mxu0 %v1914_v0  ;;  %v1989_v0 = vunpack.c.h.s8.bf16 %v1605_v25 }
 0x399   : > { %2792 = vmatpush1.bf16.msra.mxu1 %v1916_v35  ;;  %2629 = vmatprep.subr.bf16.mxu0 %v1923_v39  ;;  %v1611_v35 = vld [vmem:[%s5274_s1 + $0x428] sm:$0xff]  ;;  %v1613_v39 = vld [vmem:[%s5274_s1 + $0x438] sm:$0xff] }
 0x39a   : > { %2793 = vmatprep.subr.bf16.mxu1 %v1925_v11  ;;  %v1986_v11 = vunpack.c.h.s8.bf16 %v1602_v62  ;;  %v1995_v37 = vunpack.c.l.s8.bf16 %v1611_v35  ;;  %v2003_v26 = vunpack.c.h.s8.bf16 %v1611_v35  ;;  %v2051_v62 = vunpack.c.h.s8.bf16 %v1635_v60  ;;  %v1642_v35 = vld [vmem:[%s5274_s1 + $0x520] sm:$0xff] }
 0x39c   : > { %2630 = vmatpush1.bf16.msra.mxu0 %v1922_v16  ;;  %v1610_v16 = vld [vmem:[%s5274_s1 + $0x420] sm:$0xff] }
 0x39d   : > { %2794 = vmatpush1.bf16.msra.mxu1 %v1924_v20  ;;  %2631 = vmatprep.subr.bf16.mxu0 %v1931_v22  ;;  %v1997_v20 = vunpack.c.l.s8.bf16 %v1613_v39  ;;  %v1612_v22 = vld [vmem:[%s5274_s1 + $0x430] sm:$0xff]  ;;  %v1994_v41 = vunpack.c.l.s8.bf16 %v1610_v16 }
 0x39e   : > { %2795 = vmatprep.subr.bf16.mxu1 %v1933_v9  ;;  %v1996_v9 = vunpack.c.l.s8.bf16 %v1612_v22  ;;  %v2004_v29 = vunpack.c.h.s8.bf16 %v1612_v22  ;;  %v1651_v22 = vld [vmem:[%s5274_s1 + $0x568] sm:$0xff] }
 0x3a0   : > { %2632 = vmatpush1.bf16.msra.mxu0 %v1930_v13  ;;  %v1619_v13 = vld [vmem:[%s5274_s1 + $0x468] sm:$0xff] }
 0x3a1   : > { %2796 = vmatpush1.bf16.msra.mxu1 %v1932_v27  ;;  %2633 = vmatprep.subr.bf16.mxu0 %v1939_v3  ;;  %v2005_v27 = vunpack.c.h.s8.bf16 %v1613_v39  ;;  %v1621_v3 = vld [vmem:[%s5274_s1 + $0x478] sm:$0xff]  ;;  %v2011_v63 = vunpack.c.l.s8.bf16 %v1619_v13 }
 0x3a2   : > { %2797 = vmatprep.subr.bf16.mxu1 %v1941_v28  ;;  %v2002_v28 = vunpack.c.h.s8.bf16 %v1610_v16  ;;  %v2021_v43 = vunpack.c.h.s8.bf16 %v1621_v3  ;;  %v2067_v16 = vunpack.c.h.s8.bf16 %v1643_v2 }
 0x3a4   : > { %2634 = vmatpush1.bf16.msra.mxu0 %v1938_v31  ;;  %v1618_v31 = vld [vmem:[%s5274_s1 + $0x460] sm:$0xff] }
 0x3a5   : > { %2798 = vmatpush1.bf16.msra.mxu1 %v1940_v32  ;;  %2635 = vmatprep.subr.bf16.mxu0 %v1947_v34  ;;  %v2013_v32 = vunpack.c.l.s8.bf16 %v1621_v3  ;;  %v1620_v34 = vld [vmem:[%s5274_s1 + $0x470] sm:$0xff]  ;;  %v2010_v36 = vunpack.c.l.s8.bf16 %v1618_v31 }
 0x3a6   : > { %2799 = vmatprep.subr.bf16.mxu1 %v1949_v38  ;;  %v2019_v38 = vunpack.c.h.s8.bf16 %v1619_v13  ;;  %v2075_v13 = vunpack.c.l.s8.bf16 %v1651_v22 }
 0x3a8   : > { %2636 = vmatpush1.bf16.msra.mxu0 %v1946_v45  ;;  %v1627_v45 = vld [vmem:[%s5274_s1 + $0x4a8] sm:$0xff] }
 0x3a9   : > { %2800 = vmatpush1.bf16.msra.mxu1 %v1948_v47  ;;  %2637 = vmatprep.subr.bf16.mxu0 %v1955_v48  ;;  %v1629_v47 = vld [vmem:[%s5274_s1 + $0x4b8] sm:$0xff]  ;;  %v2018_v48 = vunpack.c.h.s8.bf16 %v1618_v31  ;;  %v2035_v17 = vunpack.c.h.s8.bf16 %v1627_v45  ;;  %v2083_v31 = vunpack.c.h.s8.bf16 %v1651_v22  ;;  %v1682_v22 = vld [vmem:[%s5274_s1 + $0x660] sm:$0xff] }
 0x3aa   : > { %2801 = vmatprep.subr.bf16.mxu1 %v1957_v50  ;;  %v2027_v50 = vunpack.c.l.s8.bf16 %v1627_v45  ;;  %v2029_v21 = vunpack.c.l.s8.bf16 %v1629_v47  ;;  %v1658_v45 = vld [vmem:[%s5274_s1 + $0x5a0] sm:$0xff] }
 0x3ac   : > { %2638 = vmatpush1.bf16.msra.mxu0 %v1954_v51  ;;  %v1628_v51 = vld [vmem:[%s5274_s1 + $0x4b0] sm:$0xff] }
 0x3ad   : > { %2802 = vmatpush1.bf16.msra.mxu1 %v1956_v54  ;;  %2639 = vmatprep.subr.bf16.mxu0 %v1963_v55  ;;  %v2026_v54 = vunpack.c.l.s8.bf16 %v1626_v1  ;;  %v2028_v55 = vunpack.c.l.s8.bf16 %v1628_v51 }
 0x3ae   : > { %2803 = vmatprep.subr.bf16.mxu1 %v1965_v8  ;;  %v2037_v8 = vunpack.c.h.s8.bf16 %v1629_v47 }
 0x3b0   : > { %2640 = vmatpush1.bf16.msra.mxu0 %v1962_v19  ;;  %v1637_v19 = vld [vmem:[%s5274_s1 + $0x4f8] sm:$0xff] }
 0x3b1   : > { %2804 = vmatpush1.bf16.msra.mxu1 %v1964_v56  ;;  %2641 = vmatprep.subr.bf16.mxu0 %v1971_v46  ;;  %v2034_v56 = vunpack.c.h.s8.bf16 %v1626_v1  ;;  %v2036_v46 = vunpack.c.h.s8.bf16 %v1628_v51  ;;  %v2045_v25 = vunpack.c.l.s8.bf16 %v1637_v19  ;;  %v1667_v51 = vld [vmem:[%s5274_s1 + $0x5e8] sm:$0xff] }
 0x3b2   : > { %2805 = vmatprep.subr.bf16.mxu1 %v1973_v58  ;;  %v2043_v58 = vunpack.c.l.s8.bf16 %v1635_v60  ;;  %v1666_v60 = vld [vmem:[%s5274_s1 + $0x5e0] sm:$0xff] }
 0x3b4   : > { %2642 = vmatpush1.bf16.msra.mxu0 %v1970_v18  ;;  %v1636_v18 = vld [vmem:[%s5274_s1 + $0x4f0] sm:$0xff] }
 0x3b5   : > { %2806 = vmatpush1.bf16.msra.mxu1 %v1972_v59  ;;  %2643 = vmatprep.subr.bf16.mxu0 %v1979_v61  ;;  %v2042_v59 = vunpack.c.l.s8.bf16 %v1634_v57  ;;  %v2044_v61 = vunpack.c.l.s8.bf16 %v1636_v18 }
 0x3b6   : > { %2807 = vmatprep.subr.bf16.mxu1 %v1981_v24  ;;  %v2053_v24 = vunpack.c.h.s8.bf16 %v1637_v19 }
 0x3b8   : > { %2644 = vmatpush1.bf16.msra.mxu0 %v1978_v4  ;;  %v1645_v4 = vld [vmem:[%s5274_s1 + $0x538] sm:$0xff] }
 0x3b9   : > { %2808 = vmatpush1.bf16.msra.mxu1 %v1980_v7  ;;  %2645 = vmatprep.subr.bf16.mxu0 %v1987_v12  ;;  %v2050_v7 = vunpack.c.h.s8.bf16 %v1634_v57  ;;  %v2052_v12 = vunpack.c.h.s8.bf16 %v1636_v18  ;;  %v2061_v39 = vunpack.c.l.s8.bf16 %v1645_v4  ;;  %v2115_v57 = vunpack.c.h.s8.bf16 %v1667_v51  ;;  %v1675_v18 = vld [vmem:[%s5274_s1 + $0x628] sm:$0xff] }
 0x3ba   : > { %2809 = vmatprep.subr.bf16.mxu1 %v1989_v0  ;;  %v2059_v0 = vunpack.c.l.s8.bf16 %v1643_v2  ;;  %v1674_v2 = vld [vmem:[%s5274_s1 + $0x620] sm:$0xff] }
 0x3bc   : > { %2646 = vmatpush1.bf16.msra.mxu0 %v1986_v11  ;;  %v1644_v11 = vld [vmem:[%s5274_s1 + $0x530] sm:$0xff] }
 0x3bd   : > { %2810 = vmatpush1.bf16.msra.mxu1 %v1988_v14  ;;  %2656 = vmatprep.subr.bf16.mxu0 %v1995_v37  ;;  %v2058_v14 = vunpack.c.l.s8.bf16 %v1642_v35  ;;  %v2060_v37 = vunpack.c.l.s8.bf16 %v1644_v11 }
 0x3be   : > { %2820 = vmatprep.subr.bf16.mxu1 %v1997_v20  ;;  %v2069_v20 = vunpack.c.h.s8.bf16 %v1645_v4 }
 0x3bf   : > { %2648 = vmatmul.mubr.bf16.vlgmr.msra.gmra.mrb[12].mxu0 %v5584_v15 }
 0x3c0   : > { %2812 = vmatmul.mubr.bf16.vlgmr.msra.gmra.mrb[12].mxu1 %v5584_v15  ;;  %2657 = vmatpush1.bf16.msra.mxu0 %v1994_v41  ;;  %v2012_v15 = vunpack.c.l.s8.bf16 %v1620_v34  ;;  %v1653_v41 = vld [vmem:[%s5274_s1 + $0x578] sm:$0xff] }
 0x3c1   : > { %2688 = vmatprep.mubr.bf16.mxu0 %v5588_v23  ;;  %2821 = vmatpush1.bf16.msra.mxu1 %v1996_v9  ;;  %v2066_v9 = vunpack.c.h.s8.bf16 %v1642_v35  ;;  %v2077_v3 = vunpack.c.l.s8.bf16 %v1653_v41  ;;  %v2131_v35 = vunpack.c.h.s8.bf16 %v1675_v18 }
 0x3c2   : > { %2852 = vmatprep.mubr.bf16.mxu1 %v5588_v23  ;;  %2658 = vmatprep.subr.bf16.mxu0 %v2003_v26  ;;  %v2020_v23 = vunpack.c.h.s8.bf16 %v1620_v34  ;;  %v2068_v26 = vunpack.c.h.s8.bf16 %v1644_v11  ;;  %v1659_v34 = vld [vmem:[%s5274_s1 + $0x5a8] sm:$0xff] }
 0x3c3   : > { %2822 = vmatprep.subr.bf16.mxu1 %v2005_v27  ;;  %v1650_v27 = vld [vmem:[%s5274_s1 + $0x560] sm:$0xff]  ;;  %v2099_v1 = vunpack.c.h.s8.bf16 %v1659_v34 }
 0x3c4   : > { %2659 = vmatpush1.bf16.msra.mxu0 %v2002_v28  ;;  %v1652_v28 = vld [vmem:[%s5274_s1 + $0x570] sm:$0xff] }
 0x3c5   : > { %2823 = vmatpush1.bf16.msra.mxu1 %v2004_v29  ;;  %2660 = vmatprep.subr.bf16.mxu0 %v2011_v63  ;;  %v2074_v29 = vunpack.c.l.s8.bf16 %v1650_v27  ;;  %v2076_v63 = vunpack.c.l.s8.bf16 %v1652_v28 }
 0x3c6   : > { %2824 = vmatprep.subr.bf16.mxu1 %v2013_v32  ;;  %v2085_v32 = vunpack.c.h.s8.bf16 %v1653_v41 }
 0x3c8   : > { %2661 = vmatpush1.bf16.msra.mxu0 %v2010_v36  ;;  %v1661_v36 = vld [vmem:[%s5274_s1 + $0x5b8] sm:$0xff] }
 0x3c9   : > { %2825 = vmatpush1.bf16.msra.mxu1 %v2012_v15  ;;  %2662 = vmatprep.subr.bf16.mxu0 %v2019_v38  ;;  %v2082_v15 = vunpack.c.h.s8.bf16 %v1650_v27  ;;  %v2084_v38 = vunpack.c.h.s8.bf16 %v1652_v28  ;;  %v2093_v47 = vunpack.c.l.s8.bf16 %v1661_v36  ;;  %v1693_v28 = vld [vmem:[%s5274_s1 + $0x6b8] sm:$0xff] }
 0x3ca   : > { %2826 = vmatprep.subr.bf16.mxu1 %v2021_v43  ;;  %v2091_v43 = vunpack.c.l.s8.bf16 %v1659_v34  ;;  %v1692_v34 = vld [vmem:[%s5274_s1 + $0x6b0] sm:$0xff] }
 0x3cc   : > { %2663 = vmatpush1.bf16.msra.mxu0 %v2018_v48  ;;  %v1660_v48 = vld [vmem:[%s5274_s1 + $0x5b0] sm:$0xff] }
 0x3cd   : > { %2827 = vmatpush1.bf16.msra.mxu1 %v2020_v23  ;;  %2664 = vmatprep.subr.bf16.mxu0 %v2027_v50  ;;  %v2090_v23 = vunpack.c.l.s8.bf16 %v1658_v45  ;;  %v2092_v50 = vunpack.c.l.s8.bf16 %v1660_v48 }
 0x3ce   : > { %2828 = vmatprep.subr.bf16.mxu1 %v2029_v21  ;;  %v2101_v21 = vunpack.c.h.s8.bf16 %v1661_v36 }
 0x3d0   : > { %2665 = vmatpush1.bf16.msra.mxu0 %v2026_v54  ;;  %v1669_v54 = vld [vmem:[%s5274_s1 + $0x5f8] sm:$0xff] }
 0x3d1   : > { %2829 = vmatpush1.bf16.msra.mxu1 %v2028_v55  ;;  %2666 = vmatprep.subr.bf16.mxu0 %v2035_v17  ;;  %v2098_v55 = vunpack.c.h.s8.bf16 %v1658_v45  ;;  %v2100_v17 = vunpack.c.h.s8.bf16 %v1660_v48  ;;  %v2109_v19 = vunpack.c.l.s8.bf16 %v1669_v54  ;;  %v1699_v45 = vld [vmem:[%s5274_s1 + $0x6e8] sm:$0xff] }
 0x3d2   : > { %2830 = vmatprep.subr.bf16.mxu1 %v2037_v8  ;;  %v2107_v8 = vunpack.c.l.s8.bf16 %v1667_v51 }
 0x3d4   : > { %2667 = vmatpush1.bf16.msra.mxu0 %v2034_v56  ;;  %v1668_v56 = vld [vmem:[%s5274_s1 + $0x5f0] sm:$0xff] }
 0x3d5   : > { %2831 = vmatpush1.bf16.msra.mxu1 %v2036_v46  ;;  %2668 = vmatprep.subr.bf16.mxu0 %v2043_v58  ;;  %v2106_v46 = vunpack.c.l.s8.bf16 %v1666_v60  ;;  %v2108_v58 = vunpack.c.l.s8.bf16 %v1668_v56 }
 0x3d6   : > { %2832 = vmatprep.subr.bf16.mxu1 %v2045_v25  ;;  %v2117_v25 = vunpack.c.h.s8.bf16 %v1669_v54 }
 0x3d8   : > { %2669 = vmatpush1.bf16.msra.mxu0 %v2042_v59  ;;  %v1677_v59 = vld [vmem:[%s5274_s1 + $0x638] sm:$0xff] }
 0x3d9   : > { %2833 = vmatpush1.bf16.msra.mxu1 %v2044_v61  ;;  %2670 = vmatprep.subr.bf16.mxu0 %v2051_v62  ;;  %v2114_v61 = vunpack.c.h.s8.bf16 %v1666_v60  ;;  %v2116_v62 = vunpack.c.h.s8.bf16 %v1668_v56  ;;  %v2125_v4 = vunpack.c.l.s8.bf16 %v1677_v59  ;;  %v2133_v11 = vunpack.c.h.s8.bf16 %v1677_v59  ;;  %v1707_v59 = vld [vmem:[%s5274_s1 + $0x728] sm:$0xff] }
 0x3da   : > { %2834 = vmatprep.subr.bf16.mxu1 %v2053_v24  ;;  %v2123_v24 = vunpack.c.l.s8.bf16 %v1675_v18 }
 0x3dc   : > { %2671 = vmatpush1.bf16.msra.mxu0 %v2050_v7  ;;  %v1676_v7 = vld [vmem:[%s5274_s1 + $0x630] sm:$0xff] }
 0x3dd   : > { %2835 = vmatpush1.bf16.msra.mxu1 %v2052_v12  ;;  %2672 = vmatprep.subr.bf16.mxu0 %v2059_v0  ;;  %v2122_v12 = vunpack.c.l.s8.bf16 %v1674_v2  ;;  %v2124_v0 = vunpack.c.l.s8.bf16 %v1676_v7 }
 0x3de   : > { %2836 = vmatprep.subr.bf16.mxu1 %v2061_v39  ;;  %v1683_v39 = vld [vmem:[%s5274_s1 + $0x668] sm:$0xff] }
 0x3e0   : > { %2673 = vmatpush1.bf16.msra.mxu0 %v2058_v14  ;;  %v1685_v14 = vld [vmem:[%s5274_s1 + $0x678] sm:$0xff] }
 0x3e1   : > { %2837 = vmatpush1.bf16.msra.mxu1 %v2060_v37  ;;  %2674 = vmatprep.subr.bf16.mxu0 %v2067_v16  ;;  %v2130_v37 = vunpack.c.h.s8.bf16 %v1674_v2  ;;  %v2132_v16 = vunpack.c.h.s8.bf16 %v1676_v7  ;;  %v2141_v41 = vunpack.c.l.s8.bf16 %v1685_v14  ;;  %v2149_v27 = vunpack.c.h.s8.bf16 %v1685_v14  ;;  %v1715_v14 = vld [vmem:[%s5274_s1 + $0x768] sm:$0xff] }
 0x3e2   : > { %2838 = vmatprep.subr.bf16.mxu1 %v2069_v20  ;;  %v2139_v20 = vunpack.c.l.s8.bf16 %v1683_v39  ;;  %v2187_v2 = vunpack.c.l.s8.bf16 %v1707_v59 }
 0x3e4   : > { %2675 = vmatpush1.bf16.msra.mxu0 %v2066_v9  ;;  %v1684_v9 = vld [vmem:[%s5274_s1 + $0x670] sm:$0xff] }
 0x3e5   : > { %2839 = vmatpush1.bf16.msra.mxu1 %v2068_v26  ;;  %2676 = vmatprep.subr.bf16.mxu0 %v2075_v13  ;;  %v2138_v26 = vunpack.c.l.s8.bf16 %v1682_v22  ;;  %v2147_v13 = vunpack.c.h.s8.bf16 %v1683_v39  ;;  %v2195_v39 = vunpack.c.h.s8.bf16 %v1707_v59 }
 0x3e6   : > { %2840 = vmatprep.subr.bf16.mxu1 %v2077_v3  ;;  %v1691_v3 = vld [vmem:[%s5274_s1 + $0x6a8] sm:$0xff] }
 0x3e8   : > { %2677 = vmatpush1.bf16.msra.mxu0 %v2074_v29  ;;  %v2146_v29 = vunpack.c.h.s8.bf16 %v1682_v22  ;;  %v2203_v22 = vunpack.c.l.s8.bf16 %v1715_v14 }
 0x3e9   : > { %2841 = vmatpush1.bf16.msra.mxu1 %v2076_v63  ;;  %2678 = vmatprep.subr.bf16.mxu0 %v2083_v31  ;;  %v2155_v63 = vunpack.c.l.s8.bf16 %v1691_v3  ;;  %v1690_v31 = vld [vmem:[%s5274_s1 + $0x6a0] sm:$0xff] }
 0x3ea   : > { %2842 = vmatprep.subr.bf16.mxu1 %v2085_v32  ;;  %v2157_v32 = vunpack.c.l.s8.bf16 %v1693_v28  ;;  %v2154_v36 = vunpack.c.l.s8.bf16 %v1690_v31  ;;  %v2162_v48 = vunpack.c.h.s8.bf16 %v1690_v31 }
 0x3ec   : > { %2679 = vmatpush1.bf16.msra.mxu0 %v2082_v15  ;;  %v2156_v15 = vunpack.c.l.s8.bf16 %v1692_v34 }
 0x3ed   : > { %2843 = vmatpush1.bf16.msra.mxu1 %v2084_v38  ;;  %2680 = vmatprep.subr.bf16.mxu0 %v2091_v43  ;;  %v2163_v38 = vunpack.c.h.s8.bf16 %v1691_v3  ;;  %v2165_v43 = vunpack.c.h.s8.bf16 %v1693_v28  ;;  %v1723_v28 = vld [vmem:[%s5274_s1 + $0x7a8] sm:$0xff] }
 0x3ee   : > { %2844 = vmatprep.subr.bf16.mxu1 %v2093_v47  ;;  %v1701_v47 = vld [vmem:[%s5274_s1 + $0x6f8] sm:$0xff]  ;;  %v2219_v31 = vunpack.c.l.s8.bf16 %v1723_v28 }
 0x3ef   : > { %v2173_v54 = vunpack.c.l.s8.bf16 %v1701_v47  ;;  %v2181_v18 = vunpack.c.h.s8.bf16 %v1701_v47  ;;  %v1731_v47 = vld [vmem:[%s5274_s1 + $0x7e8] sm:$0xff] }
 0x3f0   : > { %2681 = vmatpush1.bf16.msra.mxu0 %v2090_v23  ;;  %v2164_v23 = vunpack.c.h.s8.bf16 %v1692_v34 }
 0x3f1   : > { %2845 = vmatpush1.bf16.msra.mxu1 %v2092_v50  ;;  %2682 = vmatprep.subr.bf16.mxu0 %v2099_v1  ;;  %v2171_v50 = vunpack.c.l.s8.bf16 %v1699_v45  ;;  %v1698_v1 = vld [vmem:[%s5274_s1 + $0x6e0] sm:$0xff] }
 0x3f2   : > { %2846 = vmatprep.subr.bf16.mxu1 %v2101_v21  ;;  %v2170_v56 = vunpack.c.l.s8.bf16 %v1698_v1 }
 0x3f4   : > { %2683 = vmatpush1.bf16.msra.mxu0 %v2098_v55  ;;  %v1700_v55 = vld [vmem:[%s5274_s1 + $0x6f0] sm:$0xff] }
 0x3f5   : > { %2847 = vmatpush1.bf16.msra.mxu1 %v2100_v17  ;;  %2684 = vmatprep.subr.bf16.mxu0 %v2107_v8 }
 0x3f6   : > { %2848 = vmatprep.subr.bf16.mxu1 %v2109_v19 }
 0x3f8   : > { %2685 = vmatpush1.bf16.msra.mxu0 %v2106_v46 }
 0x3f9   : > { %2849 = vmatpush1.bf16.msra.mxu1 %v2108_v58  ;;  %2686 = vmatprep.subr.bf16.mxu0 %v2115_v57  ;;  %v2172_v57 = vunpack.c.l.s8.bf16 %v1700_v55 }
 0x3fa   : > { %2850 = vmatprep.subr.bf16.mxu1 %v2117_v25  ;;  %v2179_v25 = vunpack.c.h.s8.bf16 %v1699_v45 }
 0x3fc   : > { %2687 = vmatpush1.bf16.msra.mxu0 %v2114_v61  ;;  %v1709_v61 = vld [vmem:[%s5274_s1 + $0x738] sm:$0xff] }
 0x3fd   : > { %2851 = vmatpush1.bf16.msra.mxu1 %v2116_v62  ;;  %2697 = vmatprep.subr.bf16.mxu0 %v2123_v24  ;;  %v2178_v62 = vunpack.c.h.s8.bf16 %v1698_v1  ;;  %v2180_v24 = vunpack.c.h.s8.bf16 %v1700_v55  ;;  %v2189_v7 = vunpack.c.l.s8.bf16 %v1709_v61  ;;  %v2235_v1 = vunpack.c.l.s8.bf16 %v1731_v47 }
 0x3fe   : > { %2861 = vmatprep.subr.bf16.mxu1 %v2125_v4  ;;  %v1706_v4 = vld [vmem:[%s5274_s1 + $0x720] sm:$0xff] }
 0x3ff   : > { %2689 = vmatmul.mubr.bf16.vlgmr.msra.gmra.mrb[12].mxu0 %v5651_v10 }
 0x400   : > { %2853 = vmatmul.mubr.bf16.vlgmr.msra.gmra.mrb[12].mxu1 %v5651_v10  ;;  %2698 = vmatpush1.bf16.msra.mxu0 %v2122_v12  ;;  %v2140_v10 = vunpack.c.l.s8.bf16 %v1684_v9  ;;  %v1708_v12 = vld [vmem:[%s5274_s1 + $0x730] sm:$0xff] }
 0x401   : > { %2729 = vmatprep.mubr.bf16.mxu0 %v5655_v52  ;;  %2862 = vmatpush1.bf16.msra.mxu1 %v2124_v0  ;;  %v2186_v0 = vunpack.c.l.s8.bf16 %v1706_v4 }
 0x402   : > { %2893 = vmatprep.mubr.bf16.mxu1 %v5655_v52  ;;  %2699 = vmatprep.subr.bf16.mxu0 %v2131_v35  ;;  %v2148_v52 = vunpack.c.h.s8.bf16 %v1684_v9  ;;  %v2188_v35 = vunpack.c.l.s8.bf16 %v1708_v12 }
 0x403   : > { %2863 = vmatprep.subr.bf16.mxu1 %v2133_v11  ;;  %v2197_v11 = vunpack.c.h.s8.bf16 %v1709_v61 }
 0x404   : > { %2700 = vmatpush1.bf16.msra.mxu0 %v2130_v37  ;;  %v1717_v37 = vld [vmem:[%s5274_s1 + $0x778] sm:$0xff] }
 0x405   : > { %2864 = vmatpush1.bf16.msra.mxu1 %v2132_v16  ;;  %2701 = vmatprep.subr.bf16.mxu0 %v2139_v20  ;;  %v2194_v16 = vunpack.c.h.s8.bf16 %v1706_v4  ;;  %v2196_v20 = vunpack.c.h.s8.bf16 %v1708_v12  ;;  %v2205_v9 = vunpack.c.l.s8.bf16 %v1717_v37  ;;  %v2213_v3 = vunpack.c.h.s8.bf16 %v1717_v37 }
 0x406   : > { %2865 = vmatprep.subr.bf16.mxu1 %v2141_v41  ;;  %v1714_v41 = vld [vmem:[%s5274_s1 + $0x760] sm:$0xff] }
 0x408   : > { %2702 = vmatpush1.bf16.msra.mxu0 %v2138_v26  ;;  %v1716_v26 = vld [vmem:[%s5274_s1 + $0x770] sm:$0xff] }
 0x409   : > { %2866 = vmatpush1.bf16.msra.mxu1 %v2140_v10  ;;  %2703 = vmatprep.subr.bf16.mxu0 %v2147_v13  ;;  %v2202_v10 = vunpack.c.l.s8.bf16 %v1714_v41  ;;  %v2204_v13 = vunpack.c.l.s8.bf16 %v1716_v26 }
 0x40a   : > { %2867 = vmatprep.subr.bf16.mxu1 %v2149_v27  ;;  %v2211_v27 = vunpack.c.h.s8.bf16 %v1715_v14 }
 0x40c   : > { %2704 = vmatpush1.bf16.msra.mxu0 %v2146_v29  ;;  %v1725_v29 = vld [vmem:[%s5274_s1 + $0x7b8] sm:$0xff] }
 0x40d   : > { %2868 = vmatpush1.bf16.msra.mxu1 %v2148_v52  ;;  %2705 = vmatprep.subr.bf16.mxu0 %v2155_v63  ;;  %v2210_v52 = vunpack.c.h.s8.bf16 %v1714_v41  ;;  %v2212_v63 = vunpack.c.h.s8.bf16 %v1716_v26  ;;  %v2221_v34 = vunpack.c.l.s8.bf16 %v1725_v29  ;;  %v2229_v45 = vunpack.c.h.s8.bf16 %v1725_v29 }
 0x40e   : > { %2869 = vmatprep.subr.bf16.mxu1 %v2157_v32  ;;  %v1722_v32 = vld [vmem:[%s5274_s1 + $0x7a0] sm:$0xff] }
 0x410   : > { %2706 = vmatpush1.bf16.msra.mxu0 %v2154_v36  ;;  %v1724_v36 = vld [vmem:[%s5274_s1 + $0x7b0] sm:$0xff] }
 0x411   : > { %2870 = vmatpush1.bf16.msra.mxu1 %v2156_v15  ;;  %2707 = vmatprep.subr.bf16.mxu0 %v2163_v38  ;;  %v2218_v15 = vunpack.c.l.s8.bf16 %v1722_v32  ;;  %v2220_v38 = vunpack.c.l.s8.bf16 %v1724_v36 }
 0x412   : > { %v5824_v21 = vpop.f32.mrb[8].mxu0  ;;  %v5826_v51 = vpop.f32.mrb[8].mxu1  ;;  %2871 = vmatprep.subr.bf16.mxu1 %v2165_v43  ;;  %v2227_v43 = vunpack.c.h.s8.bf16 %v1723_v28 }
 0x413   : > { %v5829_v17 = vpop.f32.mrb[9].mxu0  ;;  %v5831_v8 = vpop.f32.mrb[9].mxu1  ;;  %2906 = vst [vmem:[#allocation2] sm:$0xff] (!%p6011_p6), %v5824_v21  ;;  %2908 = vst [vmem:[#allocation2 + $0x10] sm:$0xff] (!%p6011_p6), %v5826_v51 }
 0x414   : > { %v2407_v60 = vpop.f32.mrb[10].mxu0  ;;  %v2571_v19 = vpop.f32.mrb[10].mxu1  ;;  %2708 = vmatpush1.bf16.msra.mxu0 %v2162_v48  ;;  %v1733_v48 = vld [vmem:[%s5274_s1 + $0x7f8] sm:$0xff]  ;;  %2907 = vst [vmem:[#allocation2 + $0x8] sm:$0xff] (!%p6011_p6), %v5829_v17  ;;  %2909 = vst [vmem:[#allocation2 + $0x18] sm:$0xff] (!%p6011_p6), %v5831_v8 }
 0x415   : > { %2872 = vmatpush1.bf16.msra.mxu1 %v2164_v23  ;;  %v2408_v46 = vpop.f32.mrb[11].mxu0  ;;  %v2572_v58 = vpop.f32.mrb[11].mxu1  ;;  %2709 = vmatprep.subr.bf16.mxu0 %v2171_v50  ;;  %v2226_v23 = vunpack.c.h.s8.bf16 %v1722_v32  ;;  %v2228_v50 = vunpack.c.h.s8.bf16 %v1724_v36  ;;  %v2237_v55 = vunpack.c.l.s8.bf16 %v1733_v48  ;;  %v1732_v60 = vld [vmem:[%s5274_s1 + $0x7f0] sm:$0xff] }
 0x416   : > { %2873 = vmatprep.subr.bf16.mxu1 %v2173_v54  ;;  %v1730_v54 = vld [vmem:[%s5274_s1 + $0x7e0] sm:$0xff]  ;;  %v2243_v46 = vunpack.c.h.s8.bf16 %v1731_v47  ;;  %v2245_v58 = vunpack.c.h.s8.bf16 %v1733_v48 }
 0x417   : > { %v2234_v19 = vunpack.c.l.s8.bf16 %v1730_v54 }
 0x418   : > { %2710 = vmatpush1.bf16.msra.mxu0 %v2170_v56  ;;  %v2236_v56 = vunpack.c.l.s8.bf16 %v1732_v60 }
 0x419   : > { %2874 = vmatpush1.bf16.msra.mxu1 %v2172_v57  ;;  %2711 = vmatprep.subr.bf16.mxu0 %v2179_v25  ;;  %v2242_v57 = vunpack.c.h.s8.bf16 %v1730_v54  ;;  %v2244_v25 = vunpack.c.h.s8.bf16 %v1732_v60 }
 0x41a   : > { %2875 = vmatprep.subr.bf16.mxu1 %v2181_v18 }
 0x41c   : > { %2712 = vmatpush1.bf16.msra.mxu0 %v2178_v62 }
 0x41d   : > { %2876 = vmatpush1.bf16.msra.mxu1 %v2180_v24  ;;  %2713 = vmatprep.subr.bf16.mxu0 %v2187_v2 }
 0x41e   : > { %2877 = vmatprep.subr.bf16.mxu1 %v2189_v7 }
 0x420   : > { %2714 = vmatpush1.bf16.msra.mxu0 %v2186_v0 }
 0x421   : > { %2878 = vmatpush1.bf16.msra.mxu1 %v2188_v35  ;;  %2715 = vmatprep.subr.bf16.mxu0 %v2195_v39 }
 0x422   : > { %2879 = vmatprep.subr.bf16.mxu1 %v2197_v11 }
 0x424   : > { %2716 = vmatpush1.bf16.msra.mxu0 %v2194_v16 }
 0x425   : > { %2880 = vmatpush1.bf16.msra.mxu1 %v2196_v20  ;;  %2717 = vmatprep.subr.bf16.mxu0 %v2203_v22 }
 0x426   : > { %2881 = vmatprep.subr.bf16.mxu1 %v2205_v9 }
 0x428   : > { %2718 = vmatpush1.bf16.msra.mxu0 %v2202_v10 }
 0x429   : > { %2882 = vmatpush1.bf16.msra.mxu1 %v2204_v13  ;;  %2719 = vmatprep.subr.bf16.mxu0 %v2211_v27 }
 0x42a   : > { %2883 = vmatprep.subr.bf16.mxu1 %v2213_v3 }
 0x42c   : > { %2720 = vmatpush1.bf16.msra.mxu0 %v2210_v52 }
 0x42d   : > { %2884 = vmatpush1.bf16.msra.mxu1 %v2212_v63  ;;  %2721 = vmatprep.subr.bf16.mxu0 %v2219_v31 }
 0x42e   : > { %2885 = vmatprep.subr.bf16.mxu1 %v2221_v34 }
 0x430   : > { %2722 = vmatpush1.bf16.msra.mxu0 %v2218_v15 }
 0x431   : > { %2886 = vmatpush1.bf16.msra.mxu1 %v2220_v38  ;;  %2723 = vmatprep.subr.bf16.mxu0 %v2227_v43 }
 0x432   : > { %2887 = vmatprep.subr.bf16.mxu1 %v2229_v45 }
 0x434   : > { %2724 = vmatpush1.bf16.msra.mxu0 %v2226_v23 }
 0x435   : > { %2888 = vmatpush1.bf16.msra.mxu1 %v2228_v50  ;;  %2725 = vmatprep.subr.bf16.mxu0 %v2235_v1 }
 0x436   : > { %2889 = vmatprep.subr.bf16.mxu1 %v2237_v55 }
 0x438   : > { %2726 = vmatpush1.bf16.msra.mxu0 %v2234_v19 }
 0x439   : > { %2890 = vmatpush1.bf16.msra.mxu1 %v2236_v56  ;;  %2727 = vmatprep.subr.bf16.mxu0 %v2243_v46 }
 0x43a   : > { %2891 = vmatprep.subr.bf16.mxu1 %v2245_v58 }
 0x43c   : > { %2728 = vmatpush1.bf16.msra.mxu0 %v2242_v57 }
 0x43d   : > { %2892 = vmatpush1.bf16.msra.mxu1 %v2244_v25 }
 0x43f   : > { %2730 = vmatmul.mubr.bf16.vlgmr.msra.gmra.mrb[12].mxu0 %v5699_v30 }
 0x440   : > { %2894 = vmatmul.mubr.bf16.vlgmr.msra.gmra.mrb[12].mxu1 %v5699_v30 }
 0x510   : > { %2905 = sbr.rel (%p6011_p6) target bundleno = 1303 (0x517), region = 104 }
 0x512   : > { %v2731_v18 = vpop.f32.mrb[12].mxu0 }
 0x513   : > { %v2895_v59 = vpop.f32.mrb[12].mxu1  ;;  %v2733_v61 = vpop.f32.mrb[13].mxu0  ;;  %2910 = vst [vmem:[#allocation2 + $0x20] sm:$0xff] (!%p6011_p6), %v2731_v18 }
 0x514   : > { %v2897_v62 = vpop.f32.mrb[13].mxu1  ;;  %v2735_v24 = vpop.f32.mrb[14].mxu0  ;;  %2911 = vst [vmem:[#allocation2 + $0x28] sm:$0xff] (!%p6011_p6), %v2733_v61  ;;  %2912 = vst [vmem:[#allocation2 + $0x30] sm:$0xff] (!%p6011_p6), %v2895_v59 }
 0x515   : > { %v2899_v2 = vpop.f32.mrb[14].mxu1  ;;  %v2736_v4 = vpop.f32.mrb[15].mxu0  ;;  %2913 = vst [vmem:[#allocation2 + $0x38] sm:$0xff] (!%p6011_p6), %v2897_v62 }
 0x516   : > { %v2900_v7 = vpop.f32.mrb[15].mxu1 }
 0x517 PF: > { %p4043_p12 = scmp.le.s32.totalorder %s4932_s17, 0 }
 0x518   : > { %v2918_v30 = vld [vmem:[#allocation2] sm:$0xff] (!%p4043_p12)  ;;  %v2919_v12 = vld [vmem:[#allocation2 + $0x8] sm:$0xff] (!%p4043_p12)  ;;  %v2920_v0 = vld [vmem:[#allocation2 + $0x10] sm:$0xff] (!%p4043_p12) }
 0x519   : > { %2917 = sbr.rel (%p4043_p12) target bundleno = 1312 (0x520), region = 108  ;;  %v2926_v35 = vadd.f32 (!%p4043_p12), %v2918_v30, %v5824_v21  ;;  %v2927_v39 = vadd.f32 (!%p4043_p12), %v2919_v12, %v5829_v17  ;;  %v2928_v11 = vadd.f32 (!%p4043_p12), %v2920_v0, %v5826_v51  ;;  %v2921_v14 = vld [vmem:[#allocation2 + $0x18] sm:$0xff] (!%p4043_p12) }
 0x51a   : > { %v2922_v37 = vld [vmem:[#allocation2 + $0x20] sm:$0xff] (!%p4043_p12)  ;;  %v2929_v20 = vadd.f32 (!%p4043_p12), %v2921_v14, %v5831_v8 }
 0x51b   : > { %v2923_v16 = vld [vmem:[#allocation2 + $0x28] sm:$0xff] (!%p4043_p12)  ;;  %v2930_v22 = vadd.f32 (!%p4043_p12), %v2922_v37, %v2731_v18  ;;  %v2924_v9 = vld [vmem:[#allocation2 + $0x30] sm:$0xff] (!%p4043_p12)  ;;  %2934 = vst [vmem:[#allocation2] sm:$0xff] (!%p4043_p12), %v2926_v35  ;;  %2935 = vst [vmem:[#allocation2 + $0x8] sm:$0xff] (!%p4043_p12), %v2927_v39 }
 0x51c   : > { %v2931_v41 = vadd.f32 (!%p4043_p12), %v2923_v16, %v2733_v61  ;;  %v2925_v26 = vld [vmem:[#allocation2 + $0x38] sm:$0xff] (!%p4043_p12)  ;;  %2936 = vst [vmem:[#allocation2 + $0x10] sm:$0xff] (!%p4043_p12), %v2928_v11  ;;  %v2932_v10 = vadd.f32 (!%p4043_p12), %v2924_v9, %v2895_v59  ;;  %2937 = vst [vmem:[#allocation2 + $0x18] sm:$0xff] (!%p4043_p12), %v2929_v20 }
 0x51d   : > { %v2933_v13 = vadd.f32 (!%p4043_p12), %v2925_v26, %v2897_v62  ;;  %2938 = vst [vmem:[#allocation2 + $0x20] sm:$0xff] (!%p4043_p12), %v2930_v22 }
 0x51e   : > { %2939 = vst [vmem:[#allocation2 + $0x28] sm:$0xff] (!%p4043_p12), %v2931_v41  ;;  %2940 = vst [vmem:[#allocation2 + $0x30] sm:$0xff] (!%p4043_p12), %v2932_v10 }
 0x51f   : > { %2941 = vst [vmem:[#allocation2 + $0x38] sm:$0xff] (!%p4043_p12), %v2933_v13 }
 0x520 PF: > { %p4044_p8 = scmp.ne.s32.totalorder %s4932_s17, 1 }
 0x521   : > { %v4397_v21 = vld [vmem:[#allocation17 + $0x40] sm:$0xff] (!%p4044_p8)   ;;  %v4401_v27 = vld [vmem:[#allocation17 + $0x48] sm:$0xff] (!%p4044_p8)   ;;  %v4405_v52 = vld [vmem:[#allocation17 + $0x50] sm:$0xff] (!%p4044_p8)  }
 0x522   : > { %2945 = sbr.rel (%p4044_p8) target bundleno = 1599 (0x63f), region = 112  ;;  %v4398_v51 = vld [vmem:[#allocation17 + $0xc0] sm:$0xff] (!%p4044_p8)   ;;  %4120 = vmatprep.subr.bf16.mxu0 (!%p4044_p8), %v4397_v21  ;;  %v4402_v3 = vld [vmem:[#allocation17 + $0xc8] sm:$0xff] (!%p4044_p8)   ;;  %v4406_v63 = vld [vmem:[#allocation17 + $0xd0] sm:$0xff] (!%p4044_p8)  }
 0x523   : > { %v4399_v17 = vld [vmem:[#allocation17] sm:$0xff] (!%p4044_p8)   ;;  %4142 = vmatprep.subr.bf16.mxu1 (!%p4044_p8), %v4398_v51  ;;  %v4403_v28 = vld [vmem:[#allocation17 + $0x8] sm:$0xff] (!%p4044_p8)   ;;  %v4407_v31 = vld [vmem:[#allocation17 + $0x10] sm:$0xff] (!%p4044_p8)  }
 0x524   : > { %v4400_v8 = vld [vmem:[#allocation17 + $0x80] sm:$0xff] (!%p4044_p8)   ;;  %4121 = vmatpush3.bf16.msra.mxu0 (!%p4044_p8), %v4399_v17  ;;  %v4404_v29 = vld [vmem:[#allocation17 + $0x88] sm:$0xff] (!%p4044_p8)   ;;  %v4408_v32 = vld [vmem:[#allocation17 + $0x90] sm:$0xff] (!%p4044_p8)  }
 0x525   : > { %4143 = vmatpush3.bf16.msra.mxu1 (!%p4044_p8), %v4400_v8  ;;  %4122 = vmatprep.subr.bf16.mxu0 (!%p4044_p8), %v4401_v27  ;;  %v4409_v34 = vld [vmem:[#allocation17 + $0x58] sm:$0xff] (!%p4044_p8)   ;;  %v4413_v43 = vld [vmem:[#allocation17 + $0x60] sm:$0xff] (!%p4044_p8)   ;;  %v4417_v23 = vld [vmem:[#allocation17 + $0x68] sm:$0xff] (!%p4044_p8)  }
 0x526   : > { %4144 = vmatprep.subr.bf16.mxu1 (!%p4044_p8), %v4402_v3  ;;  %v4410_v36 = vld [vmem:[#allocation17 + $0xd8] sm:$0xff] (!%p4044_p8)   ;;  %v4414_v45 = vld [vmem:[#allocation17 + $0xe0] sm:$0xff] (!%p4044_p8)   ;;  %v4418_v50 = vld [vmem:[#allocation17 + $0xe8] sm:$0xff] (!%p4044_p8)  }
 0x527   : > { %v4411_v15 = vld [vmem:[#allocation17 + $0x18] sm:$0xff] (!%p4044_p8)   ;;  %v4415_v47 = vld [vmem:[#allocation17 + $0x20] sm:$0xff] (!%p4044_p8)   ;;  %v4419_v1 = vld [vmem:[#allocation17 + $0x28] sm:$0xff] (!%p4044_p8)  }
 0x528   : > { %4123 = vmatpush3.bf16.msra.mxu0 (!%p4044_p8), %v4403_v28  ;;  %v4412_v38 = vld [vmem:[#allocation17 + $0x98] sm:$0xff] (!%p4044_p8)   ;;  %v4416_v48 = vld [vmem:[#allocation17 + $0xa0] sm:$0xff] (!%p4044_p8)   ;;  %v4420_v54 = vld [vmem:[#allocation17 + $0xa8] sm:$0xff] (!%p4044_p8)  }
 0x529   : > { %4145 = vmatpush3.bf16.msra.mxu1 %v4404_v29  ;;  %4124 = vmatprep.subr.bf16.mxu0 %v4405_v52  ;;  %v4421_v55 = vld [vmem:[#allocation17 + $0x70] sm:$0xff]   ;;  %v4425_v46 = vld [vmem:[#allocation17 + $0x78] sm:$0xff]   ;;  %v2947_v18 = vld [vmem:[#allocation2 + $0x8] sm:$0xff] }
 0x52a   : > { %4146 = vmatprep.subr.bf16.mxu1 %v4406_v63  ;;  %v4422_v60 = vld [vmem:[#allocation17 + $0xf0] sm:$0xff]   ;;  %v4426_v58 = vld [vmem:[#allocation17 + $0xf8] sm:$0xff]   ;;  %v4429_v11 = vld [vmem:[#allocation17 + $0x140] sm:$0xff]  }
 0x52b   : > { %v4423_v19 = vld [vmem:[#allocation17 + $0x30] sm:$0xff]   ;;  %v4427_v57 = vld [vmem:[#allocation17 + $0x38] sm:$0xff]   ;;  %v4430_v16 = vld [vmem:[#allocation17 + $0x1c0] sm:$0xff]  }
 0x52c   : > { %4125 = vmatpush3.bf16.msra.mxu0 %v4407_v31  ;;  %v4424_v56 = vld [vmem:[#allocation17 + $0xb0] sm:$0xff]   ;;  %v4428_v25 = vld [vmem:[#allocation17 + $0xb8] sm:$0xff]   ;;  %v4431_v13 = vld [vmem:[#allocation17 + $0x100] sm:$0xff]  }
 0x52d   : > { %4147 = vmatpush3.bf16.msra.mxu1 %v4408_v32  ;;  %4126 = vmatprep.subr.bf16.mxu0 %v4409_v34  ;;  %v5863_v59 = vld [vmem:[#allocation14] sm:$0xff]  ;;  %v5865_v61 = vld [vmem:[#allocation15] sm:$0xff]  ;;  %v4432_v17 = vld [vmem:[#allocation17 + $0x180] sm:$0xff]  }
 0x52e   : > { %4148 = vmatprep.subr.bf16.mxu1 %v4410_v36  ;;  %v2963_v62 = vrot.slane %v5863_v59, %v5416_v42  ;;  %v3013_v24 = vrot.slane %v5865_v61, %v5416_v42  ;;  %v2949_v2 = vld [vmem:[#allocation2 + $0x18] sm:$0xff]  ;;  %v2971_v4 = vrot.slane %v5863_v59, %v5421_v44  ;;  %v3021_v7 = vrot.slane %v5865_v61, %v5421_v44  ;;  %v2946_v30 = vld [vmem:[#allocation2] sm:$0xff]  ;;  %v2948_v12 = vld [vmem:[#allocation2 + $0x10] sm:$0xff] }
 0x52f   : > { %v2959_v0 = vrot.slane %v5863_v59, %v5409_v40  ;;  %v3009_v35 = vrot.slane %v5865_v61, %v5409_v40  ;;  %v2967_v39 = vrot.slane %v5863_v59, %v5428_v6  ;;  %v3017_v42 = vrot.slane %v5865_v61, %v5428_v6  ;;  %v4433_v8 = vld [vmem:[#allocation17 + $0x148] sm:$0xff]   ;;  %v4437_v31 = vld [vmem:[#allocation17 + $0x150] sm:$0xff]  }
 0x530   : > { %4127 = vmatpush3.bf16.msra.mxu0 %v4411_v15  ;;  %v2997_v14 = vmul.f32 %v2963_v62, %v2947_v18  ;;  %v2999_v37 = vmul.f32 %v2971_v4, %v2949_v2  ;;  %v4434_v29 = vld [vmem:[#allocation17 + $0x1c8] sm:$0xff]   ;;  %v4438_v32 = vld [vmem:[#allocation17 + $0x1d0] sm:$0xff]   ;;  %v4441_v15 = vld [vmem:[#allocation17 + $0x158] sm:$0xff]   ;;  %v2975_v18 = vrot.slane %v5863_v59, %v5519_v49  ;;  %v2983_v62 = vrot.slane %v5863_v59, %v5601_v5 }
 0x531   : > { %4149 = vmatpush3.bf16.msra.mxu1 %v4412_v38  ;;  %4128 = vmatprep.subr.bf16.mxu0 %v4413_v43  ;;  %v2996_v20 = vmul.f32 %v2959_v0, %v2946_v30  ;;  %v2998_v44 = vmul.f32 %v2967_v39, %v2948_v12  ;;  %v4435_v52 = vld [vmem:[#allocation17 + $0x108] sm:$0xff]   ;;  %v4439_v34 = vld [vmem:[#allocation17 + $0x110] sm:$0xff]   ;;  %v4442_v38 = vld [vmem:[#allocation17 + $0x1d8] sm:$0xff]   ;;  %v3029_v2 = vrot.slane %v5865_v61, %v5448_v33 }
 0x532   : > { %4150 = vmatprep.subr.bf16.mxu1 %v4414_v45  ;;  %v3047_v22 = vadd.f32 %v3013_v24, %v2997_v14  ;;  %v3049_v41 = vadd.f32 %v3021_v7, %v2999_v37  ;;  %v4436_v63 = vld [vmem:[#allocation17 + $0x188] sm:$0xff]   ;;  %v4440_v36 = vld [vmem:[#allocation17 + $0x190] sm:$0xff]   ;;  %v4443_v43 = vld [vmem:[#allocation17 + $0x118] sm:$0xff]   ;;  %v3037_v4 = vrot.slane %v5865_v61, %v5522_v53  ;;  %v3025_v0 = vrot.slane %v5865_v61, %v5519_v49 }
 0x533   : > { %v3046_v9 = vadd.f32 %v3009_v35, %v2996_v20  ;;  %v3048_v26 = vadd.f32 %v3017_v42, %v2998_v44  ;;  %v4444_v45 = vld [vmem:[#allocation17 + $0x198] sm:$0xff]   ;;  %v2951_v30 = vld [vmem:[#allocation2 + $0x28] sm:$0xff] }
 0x534   : > { %4129 = vmatpush3.bf16.msra.mxu0 %v4415_v47  ;;  %v3055_v10 = vmax.f32 %v3047_v22, 0.0  ;;  %v3057_v40 = vmax.f32 %v3049_v41, 0.0  ;;  %v4445_v47 = vld [vmem:[#allocation17 + $0x160] sm:$0xff]   ;;  %v4457_v24 = vld [vmem:[#allocation17 + $0x178] sm:$0xff]  }
 0x535   : > { %4151 = vmatpush3.bf16.msra.mxu1 %v4416_v48  ;;  %4130 = vmatprep.subr.bf16.mxu0 %v4417_v23  ;;  %v3054_v21 = vmax.f32 %v3046_v9, 0.0  ;;  %v3056_v51 = vmax.f32 %v3048_v26, 0.0  ;;  %v4446_v48 = vld [vmem:[#allocation17 + $0x1e0] sm:$0xff]   ;;  %v4458_v7 = vld [vmem:[#allocation17 + $0x1f8] sm:$0xff]  }
 0x536   : > { %4152 = vmatprep.subr.bf16.mxu1 %v4418_v50  ;;  %v3063_v6 = vpack.c.bf16 %v3055_v10, %v3055_v10  ;;  %v3065_v27 = vpack.c.bf16 %v3057_v40, %v3057_v40  ;;  %v4447_v23 = vld [vmem:[#allocation17 + $0x120] sm:$0xff]   ;;  %v2953_v12 = vld [vmem:[#allocation2 + $0x38] sm:$0xff] }
 0x537   : > { %v3062_v3 = vpack.c.bf16 %v3054_v21, %v3054_v21  ;;  %v3064_v28 = vpack.c.bf16 %v3056_v51, %v3056_v51  ;;  %v4448_v50 = vld [vmem:[#allocation17 + $0x1a0] sm:$0xff]   ;;  %v4460_v37 = vld [vmem:[#allocation17 + $0x1b8] sm:$0xff]  }
 0x538   : > { %4131 = vmatpush3.bf16.msra.mxu0 %v4419_v1  ;;  %3621 = vmatprep.mubr.bf16.mxu0 %v3063_v6  ;;  %v4449_v1 = vld [vmem:[#allocation17 + $0x168] sm:$0xff]   ;;  %v2950_v42 = vld [vmem:[#allocation2 + $0x20] sm:$0xff] }
 0x539   : > { %4153 = vmatpush3.bf16.msra.mxu1 %v4420_v54  ;;  %4132 = vmatprep.subr.bf16.mxu0 %v4421_v55  ;;  %v4450_v54 = vld [vmem:[#allocation17 + $0x1e8] sm:$0xff]   ;;  %v3000_v14 = vmul.f32 %v2975_v18, %v2950_v42  ;;  %v4045_v51 = vld [vmem:[#allocation18] ss:$0 sm:$0xff] }
 0x53a   : > { %4154 = vmatprep.subr.bf16.mxu1 %v4422_v60  ;;  %3661 = vmatprep.mubr.bf16.mxu1 %v3065_v27  ;;  %v4451_v55 = vld [vmem:[#allocation17 + $0x128] sm:$0xff]  }
 0x53b   : > { %v4452_v60 = vld [vmem:[#allocation17 + $0x1a8] sm:$0xff]   ;;  %v3050_v44 = vadd.f32 %v3025_v0, %v3000_v14 }
 0x53c   : > { %4133 = vmatpush3.bf16.msra.mxu0 %v4423_v19  ;;  %v4453_v19 = vld [vmem:[#allocation17 + $0x170] sm:$0xff]  }
 0x53d   : > { %4155 = vmatpush3.bf16.msra.mxu1 %v4424_v56  ;;  %4134 = vmatprep.subr.bf16.mxu0 %v4425_v46  ;;  %v4454_v56 = vld [vmem:[#allocation17 + $0x1f0] sm:$0xff]   ;;  %v3058_v9 = vmax.f32 %v3050_v44, 0.0 }
 0x53e   : > { %4156 = vmatprep.subr.bf16.mxu1 %v4426_v58  ;;  %v4455_v46 = vld [vmem:[#allocation17 + $0x130] sm:$0xff]   ;;  %v2979_v58 = vrot.slane %v5863_v59, %v5448_v33 }
 0x53f   : > { %v3066_v10 = vpack.c.bf16 %v3058_v9, %v3058_v9 }
 0x540   : > { %4135 = vmatpush3.bf16.msra.mxu0 %v4427_v57  ;;  %v2987_v57 = vrot.slane %v5863_v59, %v5522_v53  ;;  %v3033_v59 = vrot.slane %v5865_v61, %v5601_v5  ;;  %v3001_v35 = vmul.f32 %v2979_v58, %v2951_v30  ;;  %v4459_v53 = vld [vmem:[#allocation17 + $0x138] sm:$0xff]  }
 0x541   : > { %4157 = vmatpush3.bf16.msra.mxu1 %v4428_v25  ;;  %4164 = vmatprep.subr.bf16.mxu0 %v4429_v11  ;;  %v4456_v25 = vld [vmem:[#allocation17 + $0x1b0] sm:$0xff]  }
 0x542   : > { %4186 = vmatprep.subr.bf16.mxu1 %v4430_v16  ;;  %v3003_v39 = vmul.f32 %v2987_v57, %v2953_v12  ;;  %v2952_v11 = vld [vmem:[#allocation2 + $0x30] sm:$0xff]  ;;  %v3051_v16 = vadd.f32 %v3029_v2, %v3001_v35 }
 0x543   : > { %3622 = vmatmul.mubr.bf16.vlgmr.msra.gmra.mrb[0].mxu0 %v3062_v3  ;;  %v3002_v33 = vmul.f32 %v2983_v62, %v2952_v11 }
 0x544   : > { %3662 = vmatmul.mubr.bf16.vlgmr.msra.gmra.mrb[0].mxu1 %v3064_v28  ;;  %4165 = vmatpush3.bf16.msra.mxu0 %v4431_v13  ;;  %v3053_v20 = vadd.f32 %v3037_v4, %v3003_v39  ;;  %v3059_v49 = vmax.f32 %v3051_v16, 0.0 }
 0x545   : > { %4187 = vmatpush3.bf16.msra.mxu1 %v4432_v17  ;;  %4166 = vmatprep.subr.bf16.mxu0 %v4433_v8  ;;  %v3052_v22 = vadd.f32 %v3033_v59, %v3002_v33 }
 0x546   : > { %4188 = vmatprep.subr.bf16.mxu1 %v4434_v29  ;;  %v3061_v41 = vmax.f32 %v3053_v20, 0.0  ;;  %v3067_v61 = vpack.c.bf16 %v3059_v49, %v3059_v49 }
 0x547   : > { %v3060_v5 = vmax.f32 %v3052_v22, 0.0 }
 0x548   : > { %4167 = vmatpush3.bf16.msra.mxu0 %v4435_v52  ;;  %v3069_v26 = vpack.c.bf16 %v3061_v41, %v3061_v41  ;;  %3701 = vmatprep.mubr.bf16.mxu0 %v3067_v61 }
 0x549   : > { %4189 = vmatpush3.bf16.msra.mxu1 %v4436_v63  ;;  %4168 = vmatprep.subr.bf16.mxu0 %v4437_v31  ;;  %v3068_v40 = vpack.c.bf16 %v3060_v5, %v3060_v5 }
 0x54a   : > { %4190 = vmatprep.subr.bf16.mxu1 %v4438_v32  ;;  %3741 = vmatprep.mubr.bf16.mxu1 %v3069_v26 }
 0x54c   : > { %4169 = vmatpush3.bf16.msra.mxu0 %v4439_v34 }
 0x54d   : > { %4191 = vmatpush3.bf16.msra.mxu1 %v4440_v36  ;;  %4170 = vmatprep.subr.bf16.mxu0 %v4441_v15 }
 0x54e   : > { %4192 = vmatprep.subr.bf16.mxu1 %v4442_v38 }
 0x550   : > { %4171 = vmatpush3.bf16.msra.mxu0 %v4443_v43 }
 0x551   : > { %4193 = vmatpush3.bf16.msra.mxu1 %v4444_v45  ;;  %4172 = vmatprep.subr.bf16.mxu0 %v4445_v47 }
 0x552   : > { %4194 = vmatprep.subr.bf16.mxu1 %v4446_v48 }
 0x554   : > { %4173 = vmatpush3.bf16.msra.mxu0 %v4447_v23 }
 0x555   : > { %4195 = vmatpush3.bf16.msra.mxu1 %v4448_v50  ;;  %4174 = vmatprep.subr.bf16.mxu0 %v4449_v1 }
 0x556   : > { %4196 = vmatprep.subr.bf16.mxu1 %v4450_v54 }
 0x558   : > { %4175 = vmatpush3.bf16.msra.mxu0 %v4451_v55 }
 0x559   : > { %4197 = vmatpush3.bf16.msra.mxu1 %v4452_v60  ;;  %4176 = vmatprep.subr.bf16.mxu0 %v4453_v19 }
 0x55a   : > { %4198 = vmatprep.subr.bf16.mxu1 %v4454_v56 }
 0x55c   : > { %4177 = vmatpush3.bf16.msra.mxu0 %v4455_v46 }
 0x55d   : > { %4199 = vmatpush3.bf16.msra.mxu1 %v4456_v25  ;;  %4178 = vmatprep.subr.bf16.mxu0 %v4457_v24 }
 0x55e   : > { %4200 = vmatprep.subr.bf16.mxu1 %v4458_v7 }
 0x560   : > { %4179 = vmatpush3.bf16.msra.mxu0 %v4459_v53 }
 0x561   : > { %4201 = vmatpush3.bf16.msra.mxu1 %v4460_v37 }
 0x563   : > { %3702 = vmatmul.mubr.bf16.vlgmr.msra.gmra.mrb[4].mxu0 %v3066_v10 }
 0x564   : > { %3742 = vmatmul.mubr.bf16.vlgmr.msra.gmra.mrb[4].mxu1 %v3068_v40 }
 0x616   : > { %v4136_v13 = vpop.f32.mrb[0].mxu0 }
 0x617   : > { %v4158_v21 = vpop.f32.mrb[0].mxu1  ;;  %v4137_v17 = vpop.f32.mrb[1].mxu0 }
 0x618   : > { %v4159_v8 = vpop.f32.mrb[1].mxu1  ;;  %v4138_v6 = vadd.f32 %v4137_v17, %v4136_v13  ;;  %v4139_v3 = vpop.f32.mrb[2].mxu0 }
 0x619   : > { %v4160_v27 = vadd.f32 %v4159_v8, %v4158_v21  ;;  %v4161_v28 = vpop.f32.mrb[2].mxu1  ;;  %v4140_v29 = vpop.f32.mrb[3].mxu0 }
 0x61a   : > { %v4162_v52 = vpop.f32.mrb[3].mxu1  ;;  %v3624_v63 = vadd.f32 %v4138_v6, %v4045_v51 }
 0x61c   : > { %v3664_v31 = vadd.f32 %v4160_v27, %v3624_v63 }
 0x636   : > { %v4180_v32 = vpop.f32.mrb[4].mxu0 }
 0x637   : > { %v4202_v34 = vpop.f32.mrb[4].mxu1  ;;  %v4181_v36 = vpop.f32.mrb[5].mxu0 }
 0x638   : > { %v4203_v15 = vpop.f32.mrb[5].mxu1  ;;  %v4182_v38 = vadd.f32 %v4181_v36, %v4180_v32  ;;  %v4183_v45 = vpop.f32.mrb[6].mxu0 }
 0x639   : > { %v4204_v43 = vadd.f32 %v4203_v15, %v4202_v34  ;;  %v4205_v47 = vpop.f32.mrb[6].mxu1  ;;  %v4184_v48 = vpop.f32.mrb[7].mxu0 }
 0x63a   : > { %v4206_v23 = vpop.f32.mrb[7].mxu1  ;;  %v3704_v50 = vadd.f32 %v4182_v38, %v3664_v31 }
 0x63c   : > { %v3744_v1 = vadd.f32 %v4204_v43, %v3704_v50 }
 0x63e   : > { %3749 = vst [vmem:[#allocation20] sm:$0xff] %v3744_v1 }
 0x63f PF: > { %p4333_p10 = scmp.eq.s32.totalorder %s4932_s17, 1  ;;  %s4857_s16 = smov [#allocation20]  }
 0x640   : > { %s3757_s7 = sshll.u32 %s4857_s16, 4  ;;  %s3758_s7 = int_to_ptr.vmem [resolvable:$true] %s3757_s7 }
 0x641   : > { %s4751_s27 = scalar_lea.vmem %s3758_s7, 128  ;;  %p4758_p2 = scmp.lt.s32.totalorder %s3758_s7, %s3758_s7 }
 0x642   : > { %p4752_p13 = scmp.ne.s32.totalorder %s3758_s7, %s4751_s27  ;;  %p4759_p3 = scmp.lt.s32.totalorder %s4751_s27, %s4751_s27 }
 0x644   : > { %p4753_p7 = pnand %p4752_p13, %p4333_p10  ;;  %p4760_p1 = por %p4759_p3, %p4758_p2 }
 0x646   : > { %p4754_p9 = pneg %p4753_p7 }
 0x648   : > { %p4761_p5 = pnand %p4760_p1, %p4754_p9 }
 0x64a   : > { %4764 = shalt.err (!%p4761_p5)
}
 0x64b   : > { %s6012_s20 = sld [smem:[#allocation39_spill]] }
 0x651   : > { %s4765_s15 = scalar_lea.hbm %s6012_s20, 128 }
 0x652   : > { %p4766_p4 = scmp.ne.s32.totalorder %s6012_s20, %s4765_s15  ;;  %p4771_p6 = scmp.lt.u32.totalorder %s4765_s15, %s6012_s20 }
 0x654   : > { %p4767_p11 = pnand %p4766_p4, %p4333_p10 }
 0x656   : > { %p4768_p0 = pneg %p4767_p11 }
 0x658   : > { %p4773_p12 = pnand %p4771_p6, %p4768_p0 }
 0x65a   : > { %4776 = shalt.err (!%p4773_p12)
}
 0x65b   : > { %4287 = dma.vmem_to_hbm [thread:$0]  (%p4333_p10), %s3758_s7, 128, %s6012_s20, [#allocation5]  }
 0x65c   : > { %4822 = dma.done.wait (%p4333_p10), [#allocation5], 128  }
 0x65d   : > { %4824 = vsyncadd (%p4333_p10), [#allocation5], 4294967168 }
 0x65e PF: > { %s6013_s16 = sld [smem:[#allocation32_spill]]  ;;  %s6014_s13 = sld [smem:[#allocation29_spill]] }
 0x65f   : > { %s6015_s14 = sld [smem:[#allocation30_spill]]  ;;  %s6016_s15 = sld [smem:[#allocation33_spill]] }
 0x664   : > { %p30_p8 = scmp.ge.s32.totalorder %s6013_s16, 4  }
 0x666   :  { %32 = sbr.rel (!%p30_p8) target bundleno = 18 (0x12), region = 178 }
 0x66d   :  { %3770 = vsyncpa [#allocation4], 1 }
 0x66e   :  { %3772 = vsyncpa [#allocation4 + $0x1], 1 }
 0x66f   :  { %3773 = vsyncpa [#allocation7], 1 }
 0x670   :  { %3775 = vsyncpa [#allocation7 + $0x1], 1 }
 0x671   :  { %3776 = vsyncpa [#allocation10], 1 }
 0x672   :  { %3778 = vsyncpa [#allocation10 + $0x1], 1 }
 0x673   :  { %3779 = vsyncpa [#allocation13], 1 }
 0x674   :  { %3781 = vsyncpa [#allocation13 + $0x1], 1 }
 0x675   :  { %3782 = vsyncpa [#allocation16], 1 }
 0x676   :  { %3783 = vsyncpa [#allocation19], 1 }
 0x677   :  { %3784 = vsyncpa [#allocation5], 1 }
 0x678   :  { %3786 = vsyncpa [#allocation5 + $0x1], 1 }

</bundles_post_ra>
